<compile_context>
chip_gen: v7x
topology: tpu7x:2x2x1
jax: 0.10.0
libtpu: 0.0.40
codegen_flags: <defaults>
</compile_context>

<pallas_src>
import jax
import jax.numpy as jnp
from jax.experimental import pallas as pl
from jax.experimental.pallas import tpu as pltpu

# ---------------- configuration (small, consistent with the module) ----------
B = 2            # batch
C_IN = 3         # image channels
IMG = 32         # image height/width
PATCH = 16       # patch size -> 2x2 = 4 patches
NPATCH = (IMG // PATCH) ** 2
T = NPATCH + 1   # tokens incl. CLS (= 5)
T_PAD = 8        # token axis padded to a sublane multiple
D = 64           # transformer width
NHEADS = 2
HEAD_DIM = D // NHEADS
MLP = 4 * D
LAYERS = 2
OUT_DIM = 64     # visual projection dim (feat_dim of the heads)
NUM_CLASSES = 16
LANE = 128       # per-head lane-dense padding of the logits slab
CPP = C_IN * PATCH * PATCH
DTYPE = jnp.float32

# ---------------- static row offsets inside the packed slabs ------------------
# bf16 lane-64 slab: [w_pe | wo (per layer, per head) | w2 (per layer) | proj]
W64_PE = 0
W64_WO = W64_PE + CPP
W64_W2 = W64_WO + LAYERS * NHEADS * HEAD_DIM
W64_PROJ = W64_W2 + LAYERS * MLP
W64_ROWS = W64_PROJ + D
# bf16 lane-256 slab: [w1 (per layer) | heads_w (lane-dense, 128 per head)]
W256_W1 = 0
W256_HEADS = LAYERS * D
W256_ROWS = W256_HEADS + OUT_DIM
# f32 lane-64 slab: [pos(+cls) | ln_pre | per-layer(ln1, bo, ln2, b2) | ln_post | bqkv]
PO_POS = 0
PO_LNPRE_G = T_PAD
PO_LNPRE_B = PO_LNPRE_G + 1
PO_LAYER0 = PO_LNPRE_B + 1
PO_PER_LAYER = 6                 # ln1_g, ln1_b, bo, ln2_g, ln2_b, b2
PO_LNPOST_G = PO_LAYER0 + PO_PER_LAYER * LAYERS
PO_LNPOST_B = PO_LNPOST_G + 1
PO_BQKV = PO_LNPOST_B + 1        # row = PO_BQKV + (l*NHEADS + h)*3 + m
P64_ROWS = PO_BQKV + LAYERS * NHEADS * 3
# f32 lane-256 slab: [b1 (per layer) | heads_b]
PO_HEADS_B = LAYERS
P256_ROWS = LAYERS + 1


# ---------------- in-kernel helpers (elementwise math stays f32) --------------
def _layernorm(x, g, b, eps=1e-5):
    mean = jnp.mean(x, axis=-1, keepdims=True)
    var = jnp.mean(jnp.square(x - mean), axis=-1, keepdims=True)
    return (x - mean) * jax.lax.rsqrt(var + eps) * g + b


def _quick_gelu(x):
    # CLIP uses QuickGELU inside its residual attention blocks.
    return x * jax.nn.sigmoid(1.702 * x)


# ---------------- fused forward kernel ----------------------------------------
def _make_kernel(bb):
    """Fused ViT forward over `bb` images per grid step (bb = B or 1)."""
    rows = bb * T_PAD
    f32, bf16 = jnp.float32, jnp.bfloat16
    scale = HEAD_DIM ** -0.5

    def kernel(xp_ref, w64_ref, wqkv_ref, w256_ref, p64_ref, p256_ref, out_ref):
        def p64(i):                                     # (1, D) f32 param row
            return p64_ref[i:i + 1, :]

        # Additive mask for padded key tokens (columns >= T); padded query
        # rows are never read (only the CLS row is consumed at the end).
        kmask = jnp.where(
            jax.lax.broadcasted_iota(jnp.int32, (1, T_PAD), 1) < T,
            0.0, -1e9).astype(f32)

        # ---- patch embedding. CLS-slot / pad rows of xp are zero, so their
        #      embedding is zero and the CLS value lives in pos row 0.
        xp = xp_ref[...].reshape(rows, CPP)             # bf16
        emb = jnp.dot(xp, w64_ref[W64_PE:W64_PE + CPP, :],
                      preferred_element_type=f32)       # (rows, D) f32
        x = (emb.reshape(bb, T_PAD, D)
             + p64_ref[PO_POS:PO_POS + T_PAD, :][None]).reshape(rows, D)

        # ---- ln_pre
        x = _layernorm(x, p64(PO_LNPRE_G), p64(PO_LNPRE_B))

        for l in range(LAYERS):
            pb = PO_LAYER0 + l * PO_PER_LAYER
            # -- multi-head self-attention (pre-LN); heads split host-side,
            #    no lane slicing / lane concat inside the kernel.
            h = _layernorm(x, p64(pb + 0), p64(pb + 1))
            h16 = h.astype(bf16)
            attn = jnp.zeros((rows, D), f32)
            for hh in range(NHEADS):
                base = (l * NHEADS + hh) * 3

                def wqkv(m, _b=base):                   # (D, HEAD_DIM) bf16
                    r0 = (_b + m) * D
                    return wqkv_ref[r0:r0 + D, :]

                def bqkv(m, _b=base):                   # (1, HEAD_DIM) f32
                    r0 = PO_BQKV + _b + m
                    return p64_ref[r0:r0 + 1, :HEAD_DIM]

                q = jnp.dot(h16, wqkv(0), preferred_element_type=f32) + bqkv(0)
                k = jnp.dot(h16, wqkv(1), preferred_element_type=f32) + bqkv(1)
                v = jnp.dot(h16, wqkv(2), preferred_element_type=f32) + bqkv(2)
                q = q.reshape(bb, T_PAD, HEAD_DIM)      # 8-row chunks: no relayout
                k = k.reshape(bb, T_PAD, HEAD_DIM)
                v = v.reshape(bb, T_PAD, HEAD_DIM)
                s = jnp.einsum('bqd,bkd->bqk', q.astype(bf16), k.astype(bf16),
                               preferred_element_type=f32) * scale + kmask
                s = s - jnp.max(s, axis=-1, keepdims=True)
                p = jnp.exp(s)
                p = p / jnp.sum(p, axis=-1, keepdims=True)    # exact (parity)
                o = jnp.einsum('bqk,bkd->bqd', p.astype(bf16), v.astype(bf16),
                               preferred_element_type=f32)
                r0 = W64_WO + (l * NHEADS + hh) * HEAD_DIM
                # per-head (o @ wo_h) accumulation == concat(heads) @ wo
                attn = attn + jnp.dot(o.reshape(rows, HEAD_DIM).astype(bf16),
                                      w64_ref[r0:r0 + HEAD_DIM, :],
                                      preferred_element_type=f32)
            x = x + attn + p64(pb + 2)                  # + out-proj bias

            # -- MLP (pre-LN), batch folded into rows
            h = _layernorm(x, p64(pb + 3), p64(pb + 4))
            r1 = W256_W1 + l * D
            hm = jnp.dot(h.astype(bf16), w256_ref[r1:r1 + D, :],
                         preferred_element_type=f32) + p256_ref[l:l + 1, :]
            hm = _quick_gelu(hm)
            r2 = W64_W2 + l * MLP
            x = x + jnp.dot(hm.astype(bf16), w64_ref[r2:r2 + MLP, :],
                            preferred_element_type=f32) + p64(pb + 5)

        # ---- ln_post on CLS tokens, visual projection, both classifier heads
        cls_tok = x.reshape(bb, T_PAD, D)[:, 0, :]      # (bb, D)
        feat = _layernorm(cls_tok, p64(PO_LNPOST_G), p64(PO_LNPOST_B))
        feat = jnp.dot(feat.astype(bf16),
                       w64_ref[W64_PROJ:W64_PROJ + D, :],
                       preferred_element_type=f32)
        # Lane-dense (bb, 256) logits slab: head1 in lanes [0,16),
        # head2 in lanes [128,144); padding columns of heads_w are zero.
        logits = jnp.dot(feat.astype(bf16),
                         w256_ref[W256_HEADS:W256_HEADS + OUT_DIM, :],
                         preferred_element_type=f32) \
            + p256_ref[PO_HEADS_B:PO_HEADS_B + 1, :]
        out_ref[...] = logits[:, None, :].astype(out_ref.dtype)

    return kernel


def _multi_tensorcore():
    # Batch-parallel grid only pays when a chip has >1 TensorCore (v7x);
    # on single-TC v5e/v6e, extra grid steps are pure overhead.
    try:
        kind = jax.devices()[0].device_kind.lower()
    except Exception:
        return False
    return ("v7" in kind) or ("7x" in kind)


def fused_forward(xp, slabs):
    batch_parallel = _multi_tensorcore() and B > 1
    bb = 1 if batch_parallel else B
    act_map = (lambda i: (i, 0, 0)) if batch_parallel else (lambda i: (0, 0, 0))
    wmap = lambda i: (0, 0)   # weights: same block every step -> fetched once

    # NOTE: weights total <1 MiB, so even default double-buffering is far
    # below any VMEM limit; pl.Buffered(1) skipped for portability.
    in_specs = [
        pl.BlockSpec((bb, T_PAD, CPP), act_map),
        pl.BlockSpec((W64_ROWS, D), wmap),
        pl.BlockSpec((LAYERS * NHEADS * 3 * D, HEAD_DIM), wmap),
        pl.BlockSpec((W256_ROWS, MLP), wmap),
        pl.BlockSpec((P64_ROWS, D), wmap),
        pl.BlockSpec((P256_ROWS, 2 * LANE), wmap),
    ]
    return pl.pallas_call(
        _make_kernel(bb),
        out_shape=jax.ShapeDtypeStruct((B, 1, 2 * LANE), DTYPE),
        grid=(B // bb,),
        in_specs=in_specs,
        out_specs=pl.BlockSpec((bb, 1, 2 * LANE), act_map),
        compiler_params=pltpu.CompilerParams(
            dimension_semantics=("parallel",) if batch_parallel
            else ("arbitrary",)),
    )(xp, slabs["w64"], slabs["wqkv"], slabs["w256"],
      slabs["p64"], slabs["p256"])


# ---------------- parameter init (deterministic, synthetic) -------------------
def init_params(key):
    ks = iter(jax.random.split(key, 64))

    def nrm(shape, scale=0.02):
        return jax.random.normal(next(ks), shape, dtype=jnp.float32) * scale

    params = {
        "w_pe": nrm((CPP, D)),                 # conv1 (bias=False in CLIP)
        "cls": nrm((1, 1, D)),
        "pos": nrm((1, T, D)),
        "ln_pre_g": jnp.ones((1, D), jnp.float32),
        "ln_pre_b": jnp.zeros((1, D), jnp.float32),
        "ln_post_g": jnp.ones((1, D), jnp.float32),
        "ln_post_b": jnp.zeros((1, D), jnp.float32),
        "proj": nrm((D, OUT_DIM)),
        "head1_w": nrm((OUT_DIM, NUM_CLASSES)),
        "head1_b": jnp.zeros((1, NUM_CLASSES), jnp.float32),
        "head2_w": nrm((OUT_DIM, NUM_CLASSES)),
        "head2_b": jnp.zeros((1, NUM_CLASSES), jnp.float32),
        # ensemble()'s nn.Linear(num_classes*2, 2) exists in __init__ but is
        # not used by forward(); kept for completeness.
        "attn_fuse_w": nrm((NUM_CLASSES * 2, 2)),
        "attn_fuse_b": jnp.zeros((1, 2), jnp.float32),
        "layers": [],
    }
    for _ in range(LAYERS):
        params["layers"].append({
            "ln1_g": jnp.ones((1, D), jnp.float32),
            "ln1_b": jnp.zeros((1, D), jnp.float32),
            "wqkv": nrm((D, 3 * D)),
            "bqkv": jnp.zeros((1, 3 * D), jnp.float32),
            "wo": nrm((D, D)),
            "bo": jnp.zeros((1, D), jnp.float32),
            "ln2_g": jnp.ones((1, D), jnp.float32),
            "ln2_b": jnp.zeros((1, D), jnp.float32),
            "w1": nrm((D, MLP)),
            "b1": jnp.zeros((1, MLP), jnp.float32),
            "w2": nrm((MLP, D)),
            "b2": jnp.zeros((1, D), jnp.float32),
        })
    return params


def pack_params(p):
    """One-time host-side packing into 5 VMEM-resident slabs."""
    assert MLP == 2 * LANE   # MLP rows and the logits slab share 256 lanes
    f32, bf16 = jnp.float32, jnp.bfloat16
    layers = p["layers"]

    # -- bf16 lane-64 matmul slab ---------------------------------------------
    rows = [p["w_pe"]]
    for l in range(LAYERS):
        for h in range(NHEADS):
            rows.append(layers[l]["wo"][h * HEAD_DIM:(h + 1) * HEAD_DIM, :])
    for l in range(LAYERS):
        rows.append(layers[l]["w2"])
    rows.append(p["proj"])
    w64 = jnp.concatenate(rows, axis=0).astype(bf16)
    assert w64.shape == (W64_ROWS, D)

    # -- bf16 lane-32 per-head qkv slab -----------------------------------------
    rows = []
    for l in range(LAYERS):
        wqkv = layers[l]["wqkv"]                   # (D, 3D) = [wq | wk | wv]
        for h in range(NHEADS):
            for m in range(3):
                c0 = m * D + h * HEAD_DIM
                rows.append(wqkv[:, c0:c0 + HEAD_DIM])
    wqkv32 = jnp.concatenate(rows, axis=0).astype(bf16)
    assert wqkv32.shape == (LAYERS * NHEADS * 3 * D, HEAD_DIM)

    # -- bf16 lane-256 slab: per-layer w1 + lane-dense classifier weights ------
    heads_w = jnp.zeros((OUT_DIM, 2 * LANE), f32)
    heads_w = heads_w.at[:, :NUM_CLASSES].set(p["head1_w"])
    heads_w = heads_w.at[:, LANE:LANE + NUM_CLASSES].set(p["head2_w"])
    w256 = jnp.concatenate(
        [layers[l]["w1"] for l in range(LAYERS)] + [heads_w], axis=0
    ).astype(bf16)
    assert w256.shape == (W256_ROWS, MLP)

    # -- f32 lane-64 small-parameter slab ---------------------------------------
    pos = p["pos"].reshape(T, D)
    pos_eff = jnp.concatenate(
        [pos[0:1] + p["cls"].reshape(1, D),       # cls folded into pos row 0
         pos[1:],
         jnp.zeros((T_PAD - T, D), f32)], axis=0)
    rows = [pos_eff, p["ln_pre_g"], p["ln_pre_b"]]
    for l in range(LAYERS):
        lp = layers[l]
        rows += [lp["ln1_g"], lp["ln1_b"], lp["bo"],
                 lp["ln2_g"], lp["ln2_b"], lp["b2"]]
    rows += [p["ln_post_g"], p["ln_post_b"]]
    for l in range(LAYERS):
        bqkv = layers[l]["bqkv"].reshape(3 * D)
        for h in range(NHEADS):
            for m in range(3):
                c0 = m * D + h * HEAD_DIM
                bh = bqkv[c0:c0 + HEAD_DIM].reshape(1, HEAD_DIM)
                rows.append(jnp.pad(bh, ((0, 0), (0, D - HEAD_DIM))))
    p64 = jnp.concatenate(rows, axis=0).astype(f32)
    assert p64.shape == (P64_ROWS, D)

    # -- f32 lane-256 slab: per-layer b1 + lane-dense classifier biases --------
    heads_b = jnp.zeros((1, 2 * LANE), f32)
    heads_b = heads_b.at[:, :NUM_CLASSES].set(p["head1_b"])
    heads_b = heads_b.at[:, LANE:LANE + NUM_CLASSES].set(p["head2_b"])
    p256 = jnp.concatenate(
        [layers[l]["b1"] for l in range(LAYERS)] + [heads_b], axis=0
    ).astype(f32)
    assert p256.shape == (P256_ROWS, 2 * LANE)

    return {"w64": w64, "wqkv": wqkv32, "w256": w256, "p64": p64, "p256": p256}


# ---------------- forward (== PeftModelFromCLIP_HTC.forward) ------------------
def _patchify(image):
    # NCHW -> (B, NPATCH, C*p*p), channel-major within each patch (matches a
    # flattened Conv2d weight [D, C, p, p]); token axis padded to T_PAD with a
    # zero CLS-slot row (token 0) and zero tail rows.
    p = PATCH
    xb = image.reshape(B, C_IN, IMG // p, p, IMG // p, p)
    xb = xb.transpose(0, 2, 4, 1, 3, 5).reshape(B, NPATCH, CPP)
    xp = jnp.zeros((B, T_PAD, CPP), image.dtype)
    xp = xp.at[:, 1:1 + NPATCH, :].set(xb)
    return xp.astype(jnp.bfloat16)


@jax.jit
def _forward_jit(slabs, image):
    out = fused_forward(_patchify(image), slabs)[:, 0, :]   # (B, 2*LANE)
    return out[:, :NUM_CLASSES], out[:, LANE:LANE + NUM_CLASSES]


def forward(slabs, image, use_tuner=True, head=True, tail=True):
    # image: (B, C, H, W), PyTorch NCHW convention.
    del use_tuner  # TODO(synk): ViT_Tuner deltas unavailable; treated as identity.
    logits_head, logits_tail = _forward_jit(slabs, image)
    return (logits_head if head else None), (logits_tail if tail else None)


if __name__ == "__main__":
    key = jax.random.PRNGKey(0)
    k_param, k_img = jax.random.split(key)
    params = init_params(k_param)
    slabs = pack_params(params)               # one-time host-side packing
    image = jax.random.normal(k_img, (B, C_IN, IMG, IMG), dtype=DTYPE)

    logits_head, logits_tail = forward(slabs, image)
    jax.block_until_ready((logits_head, logits_tail))
    assert logits_head.shape == (B, NUM_CLASSES)
    assert logits_tail.shape == (B, NUM_CLASSES)
    print("KERNEL_OK")
</pallas_src>

<mosaic_0001>
module attributes {stable_mosaic.version = 11 : i64} {
  func.func @kernel(%arg0: i32, %arg1: memref<2x8x768xbf16, #tpu.memory_space<vmem>>, %arg2: memref<1472x64xbf16, #tpu.memory_space<vmem>>, %arg3: memref<768x32xbf16, #tpu.memory_space<vmem>>, %arg4: memref<192x256xbf16, #tpu.memory_space<vmem>>, %arg5: memref<36x64xf32, #tpu.memory_space<vmem>>, %arg6: memref<3x256xf32, #tpu.memory_space<vmem>>, %arg7: memref<2x1x256xf32, #tpu.memory_space<vmem>>) attributes {dimension_semantics = [#tpu.dimension_semantics<arbitrary>], iteration_bounds = array<i64: 1>, scalar_prefetch = 0 : i64, scratch_operands = 0 : i64, tpu.core_type = #tpu.core_type<tc>, window_params = [{pipeline_mode = #tpu.pipeline_mode<synchronous>, transform_indices = @transform_0, window_bounds = array<i64: 2, 8, 768>}, {pipeline_mode = #tpu.pipeline_mode<synchronous>, transform_indices = @transform_1, window_bounds = array<i64: 1472, 64>}, {pipeline_mode = #tpu.pipeline_mode<synchronous>, transform_indices = @transform_2, window_bounds = array<i64: 768, 32>}, {pipeline_mode = #tpu.pipeline_mode<synchronous>, transform_indices = @transform_3, window_bounds = array<i64: 192, 256>}, {pipeline_mode = #tpu.pipeline_mode<synchronous>, transform_indices = @transform_4, window_bounds = array<i64: 36, 64>}, {pipeline_mode = #tpu.pipeline_mode<synchronous>, transform_indices = @transform_5, window_bounds = array<i64: 3, 256>}, {pipeline_mode = #tpu.pipeline_mode<synchronous>, transform_indices = @transform_6, window_bounds = array<i64: 2, 1, 256>}]} {
    %0 = tpu.iota {dimensions = array<i32: 1>} : vector<1x8xi32>
    %c5_i32 = arith.constant 5 : i32
    %1 = vector.broadcast %c5_i32 : i32 to vector<1x8xi32>
    %2 = arith.cmpi slt, %0, %1 : vector<1x8xi32>
    %cst = arith.constant 0.000000e+00 : f32
    %cst_0 = arith.constant -1.000000e+09 : f32
    %3 = vector.broadcast %cst : f32 to vector<1x8xf32>
    %4 = vector.broadcast %cst_0 : f32 to vector<1x8xf32>
    %5 = arith.select %2, %3, %4 : vector<1x8xi1>, vector<1x8xf32>
    %c0 = arith.constant 0 : index
    %c0_1 = arith.constant 0 : index
    %c0_2 = arith.constant 0 : index
    %6 = vector.load %arg1[%c0, %c0_1, %c0_2] : memref<2x8x768xbf16, #tpu.memory_space<vmem>>, vector<2x8x768xbf16>
    %7 = vector.shape_cast %6 : vector<2x8x768xbf16> to vector<16x768xbf16>
    %c0_3 = arith.constant 0 : index
    %c0_4 = arith.constant 0 : index
    %8 = vector.load %arg2[%c0_3, %c0_4] : memref<1472x64xbf16, #tpu.memory_space<vmem>>, vector<768x64xbf16>
    %cst_5 = arith.constant dense<0.000000e+00> : vector<16x64xf32>
    %9 = tpu.matmul %7, %8, %cst_5 {dimension_numbers = #tpu.dot_dimension_numbers<[1], [0], [0], [1], [0, 0, 1, 1], [], []>} : vector<16x768xbf16>, vector<768x64xbf16>, vector<16x64xf32> -> vector<16x64xf32>
    %10 = vector.shape_cast %9 : vector<16x64xf32> to vector<2x8x64xf32>
    %c0_6 = arith.constant 0 : index
    %c0_7 = arith.constant 0 : index
    %11 = vector.load %arg5[%c0_6, %c0_7] : memref<36x64xf32, #tpu.memory_space<vmem>>, vector<8x64xf32>
    %12 = vector.shape_cast %11 : vector<8x64xf32> to vector<1x8x64xf32>
    %13 = vector.broadcast %12 : vector<1x8x64xf32> to vector<2x8x64xf32>
    %14 = arith.addf %10, %13 : vector<2x8x64xf32>
    %15 = vector.shape_cast %14 : vector<2x8x64xf32> to vector<16x64xf32>
    %c8 = arith.constant 8 : index
    %c0_8 = arith.constant 0 : index
    %16 = vector.load %arg5[%c8, %c0_8] : memref<36x64xf32, #tpu.memory_space<vmem>>, vector<1x64xf32>
    %c9 = arith.constant 9 : index
    %c0_9 = arith.constant 0 : index
    %17 = vector.load %arg5[%c9, %c0_9] : memref<36x64xf32, #tpu.memory_space<vmem>>, vector<1x64xf32>
    %cst_10 = arith.constant dense<0.000000e+00> : vector<16xf32>
    %18 = vector.multi_reduction <add>, %15, %cst_10 [1] : vector<16x64xf32> to vector<16xf32>
    %19 = vector.shape_cast %18 : vector<16xf32> to vector<16x1xf32>
    %cst_11 = arith.constant 6.400000e+01 : f32
    %20 = vector.broadcast %cst_11 : f32 to vector<16x1xf32>
    %21 = arith.divf %19, %20 : vector<16x1xf32>
    %22 = vector.broadcast %21 : vector<16x1xf32> to vector<16x64xf32>
    %23 = arith.subf %15, %22 : vector<16x64xf32>
    %24 = arith.mulf %23, %23 : vector<16x64xf32>
    %cst_12 = arith.constant dense<0.000000e+00> : vector<16xf32>
    %25 = vector.multi_reduction <add>, %24, %cst_12 [1] : vector<16x64xf32> to vector<16xf32>
    %26 = vector.shape_cast %25 : vector<16xf32> to vector<16x1xf32>
    %cst_13 = arith.constant 6.400000e+01 : f32
    %27 = vector.broadcast %cst_13 : f32 to vector<16x1xf32>
    %28 = arith.divf %26, %27 : vector<16x1xf32>
    %29 = vector.broadcast %21 : vector<16x1xf32> to vector<16x64xf32>
    %30 = arith.subf %15, %29 : vector<16x64xf32>
    %cst_14 = arith.constant 9.99999974E-6 : f32
    %31 = vector.broadcast %cst_14 : f32 to vector<16x1xf32>
    %32 = arith.addf %28, %31 : vector<16x1xf32>
    %33 = math.rsqrt %32 : vector<16x1xf32>
    %34 = vector.broadcast %33 : vector<16x1xf32> to vector<16x64xf32>
    %35 = arith.mulf %30, %34 : vector<16x64xf32>
    %36 = vector.broadcast %16 : vector<1x64xf32> to vector<16x64xf32>
    %37 = arith.mulf %35, %36 : vector<16x64xf32>
    %38 = vector.broadcast %17 : vector<1x64xf32> to vector<16x64xf32>
    %39 = arith.addf %37, %38 : vector<16x64xf32>
    %c10 = arith.constant 10 : index
    %c0_15 = arith.constant 0 : index
    %40 = vector.load %arg5[%c10, %c0_15] : memref<36x64xf32, #tpu.memory_space<vmem>>, vector<1x64xf32>
    %c11 = arith.constant 11 : index
    %c0_16 = arith.constant 0 : index
    %41 = vector.load %arg5[%c11, %c0_16] : memref<36x64xf32, #tpu.memory_space<vmem>>, vector<1x64xf32>
    %cst_17 = arith.constant dense<0.000000e+00> : vector<16xf32>
    %42 = vector.multi_reduction <add>, %39, %cst_17 [1] : vector<16x64xf32> to vector<16xf32>
    %43 = vector.shape_cast %42 : vector<16xf32> to vector<16x1xf32>
    %cst_18 = arith.constant 6.400000e+01 : f32
    %44 = vector.broadcast %cst_18 : f32 to vector<16x1xf32>
    %45 = arith.divf %43, %44 : vector<16x1xf32>
    %46 = vector.broadcast %45 : vector<16x1xf32> to vector<16x64xf32>
    %47 = arith.subf %39, %46 : vector<16x64xf32>
    %48 = arith.mulf %47, %47 : vector<16x64xf32>
    %cst_19 = arith.constant dense<0.000000e+00> : vector<16xf32>
    %49 = vector.multi_reduction <add>, %48, %cst_19 [1] : vector<16x64xf32> to vector<16xf32>
    %50 = vector.shape_cast %49 : vector<16xf32> to vector<16x1xf32>
    %cst_20 = arith.constant 6.400000e+01 : f32
    %51 = vector.broadcast %cst_20 : f32 to vector<16x1xf32>
    %52 = arith.divf %50, %51 : vector<16x1xf32>
    %53 = vector.broadcast %45 : vector<16x1xf32> to vector<16x64xf32>
    %54 = arith.subf %39, %53 : vector<16x64xf32>
    %cst_21 = arith.constant 9.99999974E-6 : f32
    %55 = vector.broadcast %cst_21 : f32 to vector<16x1xf32>
    %56 = arith.addf %52, %55 : vector<16x1xf32>
    %57 = math.rsqrt %56 : vector<16x1xf32>
    %58 = vector.broadcast %57 : vector<16x1xf32> to vector<16x64xf32>
    %59 = arith.mulf %54, %58 : vector<16x64xf32>
    %60 = vector.broadcast %40 : vector<1x64xf32> to vector<16x64xf32>
    %61 = arith.mulf %59, %60 : vector<16x64xf32>
    %62 = vector.broadcast %41 : vector<1x64xf32> to vector<16x64xf32>
    %63 = arith.addf %61, %62 : vector<16x64xf32>
    %64 = arith.truncf %63 : vector<16x64xf32> to vector<16x64xbf16>
    %cst_22 = arith.constant 0.000000e+00 : f32
    %65 = vector.broadcast %cst_22 : f32 to vector<16x64xf32>
    %c0_23 = arith.constant 0 : index
    %c0_24 = arith.constant 0 : index
    %66 = vector.load %arg3[%c0_23, %c0_24] : memref<768x32xbf16, #tpu.memory_space<vmem>>, vector<64x32xbf16>
    %cst_25 = arith.constant dense<0.000000e+00> : vector<16x32xf32>
    %67 = tpu.matmul %64, %66, %cst_25 {dimension_numbers = #tpu.dot_dimension_numbers<[1], [0], [0], [1], [0, 0, 1, 1], [], []>} : vector<16x64xbf16>, vector<64x32xbf16>, vector<16x32xf32> -> vector<16x32xf32>
    %c24 = arith.constant 24 : index
    %c0_26 = arith.constant 0 : index
    %68 = vector.load %arg5[%c24, %c0_26] : memref<36x64xf32, #tpu.memory_space<vmem>>, vector<1x32xf32>
    %69 = vector.broadcast %68 : vector<1x32xf32> to vector<16x32xf32>
    %70 = arith.addf %67, %69 : vector<16x32xf32>
    %c64 = arith.constant 64 : index
    %c0_27 = arith.constant 0 : index
    %71 = vector.load %arg3[%c64, %c0_27] : memref<768x32xbf16, #tpu.memory_space<vmem>>, vector<64x32xbf16>
    %cst_28 = arith.constant dense<0.000000e+00> : vector<16x32xf32>
    %72 = tpu.matmul %64, %71, %cst_28 {dimension_numbers = #tpu.dot_dimension_numbers<[1], [0], [0], [1], [0, 0, 1, 1], [], []>} : vector<16x64xbf16>, vector<64x32xbf16>, vector<16x32xf32> -> vector<16x32xf32>
    %c25 = arith.constant 25 : index
    %c0_29 = arith.constant 0 : index
    %73 = vector.load %arg5[%c25, %c0_29] : memref<36x64xf32, #tpu.memory_space<vmem>>, vector<1x32xf32>
    %74 = vector.broadcast %73 : vector<1x32xf32> to vector<16x32xf32>
    %75 = arith.addf %72, %74 : vector<16x32xf32>
    %c128 = arith.constant 128 : index
    %c0_30 = arith.constant 0 : index
    %76 = vector.load %arg3[%c128, %c0_30] : memref<768x32xbf16, #tpu.memory_space<vmem>>, vector<64x32xbf16>
    %cst_31 = arith.constant dense<0.000000e+00> : vector<16x32xf32>
    %77 = tpu.matmul %64, %76, %cst_31 {dimension_numbers = #tpu.dot_dimension_numbers<[1], [0], [0], [1], [0, 0, 1, 1], [], []>} : vector<16x64xbf16>, vector<64x32xbf16>, vector<16x32xf32> -> vector<16x32xf32>
    %c26 = arith.constant 26 : index
    %c0_32 = arith.constant 0 : index
    %78 = vector.load %arg5[%c26, %c0_32] : memref<36x64xf32, #tpu.memory_space<vmem>>, vector<1x32xf32>
    %79 = vector.broadcast %78 : vector<1x32xf32> to vector<16x32xf32>
    %80 = arith.addf %77, %79 : vector<16x32xf32>
    %81 = vector.shape_cast %70 : vector<16x32xf32> to vector<2x8x32xf32>
    %82 = vector.shape_cast %75 : vector<16x32xf32> to vector<2x8x32xf32>
    %83 = vector.shape_cast %80 : vector<16x32xf32> to vector<2x8x32xf32>
    %84 = arith.truncf %81 : vector<2x8x32xf32> to vector<2x8x32xbf16>
    %85 = arith.truncf %82 : vector<2x8x32xf32> to vector<2x8x32xbf16>
    "tpu.trace_start"() <{level = 10 : i32, message = "bqd,bkd->bqk"}> : () -> ()
    %cst_33 = arith.constant dense<0.000000e+00> : vector<2x8x8xf32>
    %86 = tpu.matmul %84, %85, %cst_33 {dimension_numbers = #tpu.dot_dimension_numbers<[2], [2], [1], [1], [0, 0, 0, 1, 1, 1], [0], [0]>} : vector<2x8x32xbf16>, vector<2x8x32xbf16>, vector<2x8x8xf32> -> vector<2x8x8xf32>
    "tpu.trace_stop"() : () -> ()
    %cst_34 = arith.constant 0.176776692 : f32
    %87 = vector.broadcast %cst_34 : f32 to vector<2x8x8xf32>
    %88 = arith.mulf %86, %87 : vector<2x8x8xf32>
    %89 = vector.shape_cast %5 : vector<1x8xf32> to vector<1x1x8xf32>
    %90 = vector.broadcast %89 : vector<1x1x8xf32> to vector<2x8x8xf32>
    %91 = arith.addf %88, %90 : vector<2x8x8xf32>
    %cst_35 = arith.constant dense<0xFF800000> : vector<2x8xf32>
    %92 = vector.multi_reduction <maximumf>, %91, %cst_35 [2] : vector<2x8x8xf32> to vector<2x8xf32>
    %93 = vector.shape_cast %92 : vector<2x8xf32> to vector<2x8x1xf32>
    %94 = vector.broadcast %93 : vector<2x8x1xf32> to vector<2x8x8xf32>
    %95 = arith.subf %91, %94 : vector<2x8x8xf32>
    %96 = math.exp %95 : vector<2x8x8xf32>
    %cst_36 = arith.constant dense<0.000000e+00> : vector<2x8xf32>
    %97 = vector.multi_reduction <add>, %96, %cst_36 [2] : vector<2x8x8xf32> to vector<2x8xf32>
    %98 = vector.shape_cast %97 : vector<2x8xf32> to vector<2x8x1xf32>
    %99 = vector.broadcast %98 : vector<2x8x1xf32> to vector<2x8x8xf32>
    %100 = arith.divf %96, %99 : vector<2x8x8xf32>
    %101 = arith.truncf %100 : vector<2x8x8xf32> to vector<2x8x8xbf16>
    %102 = arith.truncf %83 : vector<2x8x32xf32> to vector<2x8x32xbf16>
    "tpu.trace_start"() <{level = 10 : i32, message = "bqk,bkd->bqd"}> : () -> ()
    %cst_37 = arith.constant dense<0.000000e+00> : vector<2x8x32xf32>
    %103 = tpu.matmul %101, %102, %cst_37 {dimension_numbers = #tpu.dot_dimension_numbers<[2], [1], [1], [2], [0, 0, 0, 1, 1, 2], [0], [0]>} : vector<2x8x8xbf16>, vector<2x8x32xbf16>, vector<2x8x32xf32> -> vector<2x8x32xf32>
    "tpu.trace_stop"() : () -> ()
    %104 = vector.shape_cast %103 : vector<2x8x32xf32> to vector<16x32xf32>
    %105 = arith.truncf %104 : vector<16x32xf32> to vector<16x32xbf16>
    %c768 = arith.constant 768 : index
    %c0_38 = arith.constant 0 : index
    %106 = vector.load %arg2[%c768, %c0_38] : memref<1472x64xbf16, #tpu.memory_space<vmem>>, vector<32x64xbf16>
    %cst_39 = arith.constant dense<0.000000e+00> : vector<16x64xf32>
    %107 = tpu.matmul %105, %106, %cst_39 {dimension_numbers = #tpu.dot_dimension_numbers<[1], [0], [0], [1], [0, 0, 1, 1], [], []>} : vector<16x32xbf16>, vector<32x64xbf16>, vector<16x64xf32> -> vector<16x64xf32>
    %108 = arith.addf %65, %107 : vector<16x64xf32>
    %c192 = arith.constant 192 : index
    %c0_40 = arith.constant 0 : index
    %109 = vector.load %arg3[%c192, %c0_40] : memref<768x32xbf16, #tpu.memory_space<vmem>>, vector<64x32xbf16>
    %cst_41 = arith.constant dense<0.000000e+00> : vector<16x32xf32>
    %110 = tpu.matmul %64, %109, %cst_41 {dimension_numbers = #tpu.dot_dimension_numbers<[1], [0], [0], [1], [0, 0, 1, 1], [], []>} : vector<16x64xbf16>, vector<64x32xbf16>, vector<16x32xf32> -> vector<16x32xf32>
    %c27 = arith.constant 27 : index
    %c0_42 = arith.constant 0 : index
    %111 = vector.load %arg5[%c27, %c0_42] : memref<36x64xf32, #tpu.memory_space<vmem>>, vector<1x32xf32>
    %112 = vector.broadcast %111 : vector<1x32xf32> to vector<16x32xf32>
    %113 = arith.addf %110, %112 : vector<16x32xf32>
    %c256 = arith.constant 256 : index
    %c0_43 = arith.constant 0 : index
    %114 = vector.load %arg3[%c256, %c0_43] : memref<768x32xbf16, #tpu.memory_space<vmem>>, vector<64x32xbf16>
    %cst_44 = arith.constant dense<0.000000e+00> : vector<16x32xf32>
    %115 = tpu.matmul %64, %114, %cst_44 {dimension_numbers = #tpu.dot_dimension_numbers<[1], [0], [0], [1], [0, 0, 1, 1], [], []>} : vector<16x64xbf16>, vector<64x32xbf16>, vector<16x32xf32> -> vector<16x32xf32>
    %c28 = arith.constant 28 : index
    %c0_45 = arith.constant 0 : index
    %116 = vector.load %arg5[%c28, %c0_45] : memref<36x64xf32, #tpu.memory_space<vmem>>, vector<1x32xf32>
    %117 = vector.broadcast %116 : vector<1x32xf32> to vector<16x32xf32>
    %118 = arith.addf %115, %117 : vector<16x32xf32>
    %c320 = arith.constant 320 : index
    %c0_46 = arith.constant 0 : index
    %119 = vector.load %arg3[%c320, %c0_46] : memref<768x32xbf16, #tpu.memory_space<vmem>>, vector<64x32xbf16>
    %cst_47 = arith.constant dense<0.000000e+00> : vector<16x32xf32>
    %120 = tpu.matmul %64, %119, %cst_47 {dimension_numbers = #tpu.dot_dimension_numbers<[1], [0], [0], [1], [0, 0, 1, 1], [], []>} : vector<16x64xbf16>, vector<64x32xbf16>, vector<16x32xf32> -> vector<16x32xf32>
    %c29 = arith.constant 29 : index
    %c0_48 = arith.constant 0 : index
    %121 = vector.load %arg5[%c29, %c0_48] : memref<36x64xf32, #tpu.memory_space<vmem>>, vector<1x32xf32>
    %122 = vector.broadcast %121 : vector<1x32xf32> to vector<16x32xf32>
    %123 = arith.addf %120, %122 : vector<16x32xf32>
    %124 = vector.shape_cast %113 : vector<16x32xf32> to vector<2x8x32xf32>
    %125 = vector.shape_cast %118 : vector<16x32xf32> to vector<2x8x32xf32>
    %126 = vector.shape_cast %123 : vector<16x32xf32> to vector<2x8x32xf32>
    %127 = arith.truncf %124 : vector<2x8x32xf32> to vector<2x8x32xbf16>
    %128 = arith.truncf %125 : vector<2x8x32xf32> to vector<2x8x32xbf16>
    "tpu.trace_start"() <{level = 10 : i32, message = "bqd,bkd->bqk"}> : () -> ()
    %cst_49 = arith.constant dense<0.000000e+00> : vector<2x8x8xf32>
    %129 = tpu.matmul %127, %128, %cst_49 {dimension_numbers = #tpu.dot_dimension_numbers<[2], [2], [1], [1], [0, 0, 0, 1, 1, 1], [0], [0]>} : vector<2x8x32xbf16>, vector<2x8x32xbf16>, vector<2x8x8xf32> -> vector<2x8x8xf32>
    "tpu.trace_stop"() : () -> ()
    %cst_50 = arith.constant 0.176776692 : f32
    %130 = vector.broadcast %cst_50 : f32 to vector<2x8x8xf32>
    %131 = arith.mulf %129, %130 : vector<2x8x8xf32>
    %132 = vector.shape_cast %5 : vector<1x8xf32> to vector<1x1x8xf32>
    %133 = vector.broadcast %132 : vector<1x1x8xf32> to vector<2x8x8xf32>
    %134 = arith.addf %131, %133 : vector<2x8x8xf32>
    %cst_51 = arith.constant dense<0xFF800000> : vector<2x8xf32>
    %135 = vector.multi_reduction <maximumf>, %134, %cst_51 [2] : vector<2x8x8xf32> to vector<2x8xf32>
    %136 = vector.shape_cast %135 : vector<2x8xf32> to vector<2x8x1xf32>
    %137 = vector.broadcast %136 : vector<2x8x1xf32> to vector<2x8x8xf32>
    %138 = arith.subf %134, %137 : vector<2x8x8xf32>
    %139 = math.exp %138 : vector<2x8x8xf32>
    %cst_52 = arith.constant dense<0.000000e+00> : vector<2x8xf32>
    %140 = vector.multi_reduction <add>, %139, %cst_52 [2] : vector<2x8x8xf32> to vector<2x8xf32>
    %141 = vector.shape_cast %140 : vector<2x8xf32> to vector<2x8x1xf32>
    %142 = vector.broadcast %141 : vector<2x8x1xf32> to vector<2x8x8xf32>
    %143 = arith.divf %139, %142 : vector<2x8x8xf32>
    %144 = arith.truncf %143 : vector<2x8x8xf32> to vector<2x8x8xbf16>
    %145 = arith.truncf %126 : vector<2x8x32xf32> to vector<2x8x32xbf16>
    "tpu.trace_start"() <{level = 10 : i32, message = "bqk,bkd->bqd"}> : () -> ()
    %cst_53 = arith.constant dense<0.000000e+00> : vector<2x8x32xf32>
    %146 = tpu.matmul %144, %145, %cst_53 {dimension_numbers = #tpu.dot_dimension_numbers<[2], [1], [1], [2], [0, 0, 0, 1, 1, 2], [0], [0]>} : vector<2x8x8xbf16>, vector<2x8x32xbf16>, vector<2x8x32xf32> -> vector<2x8x32xf32>
    "tpu.trace_stop"() : () -> ()
    %147 = vector.shape_cast %146 : vector<2x8x32xf32> to vector<16x32xf32>
    %148 = arith.truncf %147 : vector<16x32xf32> to vector<16x32xbf16>
    %c800 = arith.constant 800 : index
    %c0_54 = arith.constant 0 : index
    %149 = vector.load %arg2[%c800, %c0_54] : memref<1472x64xbf16, #tpu.memory_space<vmem>>, vector<32x64xbf16>
    %cst_55 = arith.constant dense<0.000000e+00> : vector<16x64xf32>
    %150 = tpu.matmul %148, %149, %cst_55 {dimension_numbers = #tpu.dot_dimension_numbers<[1], [0], [0], [1], [0, 0, 1, 1], [], []>} : vector<16x32xbf16>, vector<32x64xbf16>, vector<16x64xf32> -> vector<16x64xf32>
    %151 = arith.addf %108, %150 : vector<16x64xf32>
    %152 = arith.addf %39, %151 : vector<16x64xf32>
    %c12 = arith.constant 12 : index
    %c0_56 = arith.constant 0 : index
    %153 = vector.load %arg5[%c12, %c0_56] : memref<36x64xf32, #tpu.memory_space<vmem>>, vector<1x64xf32>
    %154 = vector.broadcast %153 : vector<1x64xf32> to vector<16x64xf32>
    %155 = arith.addf %152, %154 : vector<16x64xf32>
    %c13 = arith.constant 13 : index
    %c0_57 = arith.constant 0 : index
    %156 = vector.load %arg5[%c13, %c0_57] : memref<36x64xf32, #tpu.memory_space<vmem>>, vector<1x64xf32>
    %c14 = arith.constant 14 : index
    %c0_58 = arith.constant 0 : index
    %157 = vector.load %arg5[%c14, %c0_58] : memref<36x64xf32, #tpu.memory_space<vmem>>, vector<1x64xf32>
    %cst_59 = arith.constant dense<0.000000e+00> : vector<16xf32>
    %158 = vector.multi_reduction <add>, %155, %cst_59 [1] : vector<16x64xf32> to vector<16xf32>
    %159 = vector.shape_cast %158 : vector<16xf32> to vector<16x1xf32>
    %cst_60 = arith.constant 6.400000e+01 : f32
    %160 = vector.broadcast %cst_60 : f32 to vector<16x1xf32>
    %161 = arith.divf %159, %160 : vector<16x1xf32>
    %162 = vector.broadcast %161 : vector<16x1xf32> to vector<16x64xf32>
    %163 = arith.subf %155, %162 : vector<16x64xf32>
    %164 = arith.mulf %163, %163 : vector<16x64xf32>
    %cst_61 = arith.constant dense<0.000000e+00> : vector<16xf32>
    %165 = vector.multi_reduction <add>, %164, %cst_61 [1] : vector<16x64xf32> to vector<16xf32>
    %166 = vector.shape_cast %165 : vector<16xf32> to vector<16x1xf32>
    %cst_62 = arith.constant 6.400000e+01 : f32
    %167 = vector.broadcast %cst_62 : f32 to vector<16x1xf32>
    %168 = arith.divf %166, %167 : vector<16x1xf32>
    %169 = vector.broadcast %161 : vector<16x1xf32> to vector<16x64xf32>
    %170 = arith.subf %155, %169 : vector<16x64xf32>
    %cst_63 = arith.constant 9.99999974E-6 : f32
    %171 = vector.broadcast %cst_63 : f32 to vector<16x1xf32>
    %172 = arith.addf %168, %171 : vector<16x1xf32>
    %173 = math.rsqrt %172 : vector<16x1xf32>
    %174 = vector.broadcast %173 : vector<16x1xf32> to vector<16x64xf32>
    %175 = arith.mulf %170, %174 : vector<16x64xf32>
    %176 = vector.broadcast %156 : vector<1x64xf32> to vector<16x64xf32>
    %177 = arith.mulf %175, %176 : vector<16x64xf32>
    %178 = vector.broadcast %157 : vector<1x64xf32> to vector<16x64xf32>
    %179 = arith.addf %177, %178 : vector<16x64xf32>
    %180 = arith.truncf %179 : vector<16x64xf32> to vector<16x64xbf16>
    %c0_64 = arith.constant 0 : index
    %c0_65 = arith.constant 0 : index
    %181 = vector.load %arg4[%c0_64, %c0_65] : memref<192x256xbf16, #tpu.memory_space<vmem>>, vector<64x256xbf16>
    %cst_66 = arith.constant dense<0.000000e+00> : vector<16x256xf32>
    %182 = tpu.matmul %180, %181, %cst_66 {dimension_numbers = #tpu.dot_dimension_numbers<[1], [0], [0], [1], [0, 0, 1, 1], [], []>} : vector<16x64xbf16>, vector<64x256xbf16>, vector<16x256xf32> -> vector<16x256xf32>
    %c0_67 = arith.constant 0 : index
    %c0_68 = arith.constant 0 : index
    %183 = vector.load %arg6[%c0_67, %c0_68] : memref<3x256xf32, #tpu.memory_space<vmem>>, vector<1x256xf32>
    %184 = vector.broadcast %183 : vector<1x256xf32> to vector<16x256xf32>
    %185 = arith.addf %182, %184 : vector<16x256xf32>
    %cst_69 = arith.constant 1.702000e+00 : f32
    %186 = vector.broadcast %cst_69 : f32 to vector<16x256xf32>
    %187 = arith.mulf %186, %185 : vector<16x256xf32>
    %188 = arith.negf %187 : vector<16x256xf32>
    %189 = math.exp %188 : vector<16x256xf32>
    %cst_70 = arith.constant 1.000000e+00 : f32
    %190 = vector.broadcast %cst_70 : f32 to vector<16x256xf32>
    %191 = arith.addf %190, %189 : vector<16x256xf32>
    %192 = arith.divf %190, %191 : vector<16x256xf32>
    %193 = arith.mulf %185, %192 : vector<16x256xf32>
    %194 = arith.truncf %193 : vector<16x256xf32> to vector<16x256xbf16>
    %c896 = arith.constant 896 : index
    %c0_71 = arith.constant 0 : index
    %195 = vector.load %arg2[%c896, %c0_71] : memref<1472x64xbf16, #tpu.memory_space<vmem>>, vector<256x64xbf16>
    %cst_72 = arith.constant dense<0.000000e+00> : vector<16x64xf32>
    %196 = tpu.matmul %194, %195, %cst_72 {dimension_numbers = #tpu.dot_dimension_numbers<[1], [0], [0], [1], [0, 0, 1, 1], [], []>} : vector<16x256xbf16>, vector<256x64xbf16>, vector<16x64xf32> -> vector<16x64xf32>
    %197 = arith.addf %155, %196 : vector<16x64xf32>
    %c15 = arith.constant 15 : index
    %c0_73 = arith.constant 0 : index
    %198 = vector.load %arg5[%c15, %c0_73] : memref<36x64xf32, #tpu.memory_space<vmem>>, vector<1x64xf32>
    %199 = vector.broadcast %198 : vector<1x64xf32> to vector<16x64xf32>
    %200 = arith.addf %197, %199 : vector<16x64xf32>
    %c16 = arith.constant 16 : index
    %c0_74 = arith.constant 0 : index
    %201 = vector.load %arg5[%c16, %c0_74] : memref<36x64xf32, #tpu.memory_space<vmem>>, vector<1x64xf32>
    %c17 = arith.constant 17 : index
    %c0_75 = arith.constant 0 : index
    %202 = vector.load %arg5[%c17, %c0_75] : memref<36x64xf32, #tpu.memory_space<vmem>>, vector<1x64xf32>
    %cst_76 = arith.constant dense<0.000000e+00> : vector<16xf32>
    %203 = vector.multi_reduction <add>, %200, %cst_76 [1] : vector<16x64xf32> to vector<16xf32>
    %204 = vector.shape_cast %203 : vector<16xf32> to vector<16x1xf32>
    %cst_77 = arith.constant 6.400000e+01 : f32
    %205 = vector.broadcast %cst_77 : f32 to vector<16x1xf32>
    %206 = arith.divf %204, %205 : vector<16x1xf32>
    %207 = vector.broadcast %206 : vector<16x1xf32> to vector<16x64xf32>
    %208 = arith.subf %200, %207 : vector<16x64xf32>
    %209 = arith.mulf %208, %208 : vector<16x64xf32>
    %cst_78 = arith.constant dense<0.000000e+00> : vector<16xf32>
    %210 = vector.multi_reduction <add>, %209, %cst_78 [1] : vector<16x64xf32> to vector<16xf32>
    %211 = vector.shape_cast %210 : vector<16xf32> to vector<16x1xf32>
    %cst_79 = arith.constant 6.400000e+01 : f32
    %212 = vector.broadcast %cst_79 : f32 to vector<16x1xf32>
    %213 = arith.divf %211, %212 : vector<16x1xf32>
    %214 = vector.broadcast %206 : vector<16x1xf32> to vector<16x64xf32>
    %215 = arith.subf %200, %214 : vector<16x64xf32>
    %cst_80 = arith.constant 9.99999974E-6 : f32
    %216 = vector.broadcast %cst_80 : f32 to vector<16x1xf32>
    %217 = arith.addf %213, %216 : vector<16x1xf32>
    %218 = math.rsqrt %217 : vector<16x1xf32>
    %219 = vector.broadcast %218 : vector<16x1xf32> to vector<16x64xf32>
    %220 = arith.mulf %215, %219 : vector<16x64xf32>
    %221 = vector.broadcast %201 : vector<1x64xf32> to vector<16x64xf32>
    %222 = arith.mulf %220, %221 : vector<16x64xf32>
    %223 = vector.broadcast %202 : vector<1x64xf32> to vector<16x64xf32>
    %224 = arith.addf %222, %223 : vector<16x64xf32>
    %225 = arith.truncf %224 : vector<16x64xf32> to vector<16x64xbf16>
    %cst_81 = arith.constant 0.000000e+00 : f32
    %226 = vector.broadcast %cst_81 : f32 to vector<16x64xf32>
    %c384 = arith.constant 384 : index
    %c0_82 = arith.constant 0 : index
    %227 = vector.load %arg3[%c384, %c0_82] : memref<768x32xbf16, #tpu.memory_space<vmem>>, vector<64x32xbf16>
    %cst_83 = arith.constant dense<0.000000e+00> : vector<16x32xf32>
    %228 = tpu.matmul %225, %227, %cst_83 {dimension_numbers = #tpu.dot_dimension_numbers<[1], [0], [0], [1], [0, 0, 1, 1], [], []>} : vector<16x64xbf16>, vector<64x32xbf16>, vector<16x32xf32> -> vector<16x32xf32>
    %c30 = arith.constant 30 : index
    %c0_84 = arith.constant 0 : index
    %229 = vector.load %arg5[%c30, %c0_84] : memref<36x64xf32, #tpu.memory_space<vmem>>, vector<1x32xf32>
    %230 = vector.broadcast %229 : vector<1x32xf32> to vector<16x32xf32>
    %231 = arith.addf %228, %230 : vector<16x32xf32>
    %c448 = arith.constant 448 : index
    %c0_85 = arith.constant 0 : index
    %232 = vector.load %arg3[%c448, %c0_85] : memref<768x32xbf16, #tpu.memory_space<vmem>>, vector<64x32xbf16>
    %cst_86 = arith.constant dense<0.000000e+00> : vector<16x32xf32>
    %233 = tpu.matmul %225, %232, %cst_86 {dimension_numbers = #tpu.dot_dimension_numbers<[1], [0], [0], [1], [0, 0, 1, 1], [], []>} : vector<16x64xbf16>, vector<64x32xbf16>, vector<16x32xf32> -> vector<16x32xf32>
    %c31 = arith.constant 31 : index
    %c0_87 = arith.constant 0 : index
    %234 = vector.load %arg5[%c31, %c0_87] : memref<36x64xf32, #tpu.memory_space<vmem>>, vector<1x32xf32>
    %235 = vector.broadcast %234 : vector<1x32xf32> to vector<16x32xf32>
    %236 = arith.addf %233, %235 : vector<16x32xf32>
    %c512 = arith.constant 512 : index
    %c0_88 = arith.constant 0 : index
    %237 = vector.load %arg3[%c512, %c0_88] : memref<768x32xbf16, #tpu.memory_space<vmem>>, vector<64x32xbf16>
    %cst_89 = arith.constant dense<0.000000e+00> : vector<16x32xf32>
    %238 = tpu.matmul %225, %237, %cst_89 {dimension_numbers = #tpu.dot_dimension_numbers<[1], [0], [0], [1], [0, 0, 1, 1], [], []>} : vector<16x64xbf16>, vector<64x32xbf16>, vector<16x32xf32> -> vector<16x32xf32>
    %c32 = arith.constant 32 : index
    %c0_90 = arith.constant 0 : index
    %239 = vector.load %arg5[%c32, %c0_90] : memref<36x64xf32, #tpu.memory_space<vmem>>, vector<1x32xf32>
    %240 = vector.broadcast %239 : vector<1x32xf32> to vector<16x32xf32>
    %241 = arith.addf %238, %240 : vector<16x32xf32>
    %242 = vector.shape_cast %231 : vector<16x32xf32> to vector<2x8x32xf32>
    %243 = vector.shape_cast %236 : vector<16x32xf32> to vector<2x8x32xf32>
    %244 = vector.shape_cast %241 : vector<16x32xf32> to vector<2x8x32xf32>
    %245 = arith.truncf %242 : vector<2x8x32xf32> to vector<2x8x32xbf16>
    %246 = arith.truncf %243 : vector<2x8x32xf32> to vector<2x8x32xbf16>
    "tpu.trace_start"() <{level = 10 : i32, message = "bqd,bkd->bqk"}> : () -> ()
    %cst_91 = arith.constant dense<0.000000e+00> : vector<2x8x8xf32>
    %247 = tpu.matmul %245, %246, %cst_91 {dimension_numbers = #tpu.dot_dimension_numbers<[2], [2], [1], [1], [0, 0, 0, 1, 1, 1], [0], [0]>} : vector<2x8x32xbf16>, vector<2x8x32xbf16>, vector<2x8x8xf32> -> vector<2x8x8xf32>
    "tpu.trace_stop"() : () -> ()
    %cst_92 = arith.constant 0.176776692 : f32
    %248 = vector.broadcast %cst_92 : f32 to vector<2x8x8xf32>
    %249 = arith.mulf %247, %248 : vector<2x8x8xf32>
    %250 = vector.shape_cast %5 : vector<1x8xf32> to vector<1x1x8xf32>
    %251 = vector.broadcast %250 : vector<1x1x8xf32> to vector<2x8x8xf32>
    %252 = arith.addf %249, %251 : vector<2x8x8xf32>
    %cst_93 = arith.constant dense<0xFF800000> : vector<2x8xf32>
    %253 = vector.multi_reduction <maximumf>, %252, %cst_93 [2] : vector<2x8x8xf32> to vector<2x8xf32>
    %254 = vector.shape_cast %253 : vector<2x8xf32> to vector<2x8x1xf32>
    %255 = vector.broadcast %254 : vector<2x8x1xf32> to vector<2x8x8xf32>
    %256 = arith.subf %252, %255 : vector<2x8x8xf32>
    %257 = math.exp %256 : vector<2x8x8xf32>
    %cst_94 = arith.constant dense<0.000000e+00> : vector<2x8xf32>
    %258 = vector.multi_reduction <add>, %257, %cst_94 [2] : vector<2x8x8xf32> to vector<2x8xf32>
    %259 = vector.shape_cast %258 : vector<2x8xf32> to vector<2x8x1xf32>
    %260 = vector.broadcast %259 : vector<2x8x1xf32> to vector<2x8x8xf32>
    %261 = arith.divf %257, %260 : vector<2x8x8xf32>
    %262 = arith.truncf %261 : vector<2x8x8xf32> to vector<2x8x8xbf16>
    %263 = arith.truncf %244 : vector<2x8x32xf32> to vector<2x8x32xbf16>
    "tpu.trace_start"() <{level = 10 : i32, message = "bqk,bkd->bqd"}> : () -> ()
    %cst_95 = arith.constant dense<0.000000e+00> : vector<2x8x32xf32>
    %264 = tpu.matmul %262, %263, %cst_95 {dimension_numbers = #tpu.dot_dimension_numbers<[2], [1], [1], [2], [0, 0, 0, 1, 1, 2], [0], [0]>} : vector<2x8x8xbf16>, vector<2x8x32xbf16>, vector<2x8x32xf32> -> vector<2x8x32xf32>
    "tpu.trace_stop"() : () -> ()
    %265 = vector.shape_cast %264 : vector<2x8x32xf32> to vector<16x32xf32>
    %266 = arith.truncf %265 : vector<16x32xf32> to vector<16x32xbf16>
    %c832 = arith.constant 832 : index
    %c0_96 = arith.constant 0 : index
    %267 = vector.load %arg2[%c832, %c0_96] : memref<1472x64xbf16, #tpu.memory_space<vmem>>, vector<32x64xbf16>
    %cst_97 = arith.constant dense<0.000000e+00> : vector<16x64xf32>
    %268 = tpu.matmul %266, %267, %cst_97 {dimension_numbers = #tpu.dot_dimension_numbers<[1], [0], [0], [1], [0, 0, 1, 1], [], []>} : vector<16x32xbf16>, vector<32x64xbf16>, vector<16x64xf32> -> vector<16x64xf32>
    %269 = arith.addf %226, %268 : vector<16x64xf32>
    %c576 = arith.constant 576 : index
    %c0_98 = arith.constant 0 : index
    %270 = vector.load %arg3[%c576, %c0_98] : memref<768x32xbf16, #tpu.memory_space<vmem>>, vector<64x32xbf16>
    %cst_99 = arith.constant dense<0.000000e+00> : vector<16x32xf32>
    %271 = tpu.matmul %225, %270, %cst_99 {dimension_numbers = #tpu.dot_dimension_numbers<[1], [0], [0], [1], [0, 0, 1, 1], [], []>} : vector<16x64xbf16>, vector<64x32xbf16>, vector<16x32xf32> -> vector<16x32xf32>
    %c33 = arith.constant 33 : index
    %c0_100 = arith.constant 0 : index
    %272 = vector.load %arg5[%c33, %c0_100] : memref<36x64xf32, #tpu.memory_space<vmem>>, vector<1x32xf32>
    %273 = vector.broadcast %272 : vector<1x32xf32> to vector<16x32xf32>
    %274 = arith.addf %271, %273 : vector<16x32xf32>
    %c640 = arith.constant 640 : index
    %c0_101 = arith.constant 0 : index
    %275 = vector.load %arg3[%c640, %c0_101] : memref<768x32xbf16, #tpu.memory_space<vmem>>, vector<64x32xbf16>
    %cst_102 = arith.constant dense<0.000000e+00> : vector<16x32xf32>
    %276 = tpu.matmul %225, %275, %cst_102 {dimension_numbers = #tpu.dot_dimension_numbers<[1], [0], [0], [1], [0, 0, 1, 1], [], []>} : vector<16x64xbf16>, vector<64x32xbf16>, vector<16x32xf32> -> vector<16x32xf32>
    %c34 = arith.constant 34 : index
    %c0_103 = arith.constant 0 : index
    %277 = vector.load %arg5[%c34, %c0_103] : memref<36x64xf32, #tpu.memory_space<vmem>>, vector<1x32xf32>
    %278 = vector.broadcast %277 : vector<1x32xf32> to vector<16x32xf32>
    %279 = arith.addf %276, %278 : vector<16x32xf32>
    %c704 = arith.constant 704 : index
    %c0_104 = arith.constant 0 : index
    %280 = vector.load %arg3[%c704, %c0_104] : memref<768x32xbf16, #tpu.memory_space<vmem>>, vector<64x32xbf16>
    %cst_105 = arith.constant dense<0.000000e+00> : vector<16x32xf32>
    %281 = tpu.matmul %225, %280, %cst_105 {dimension_numbers = #tpu.dot_dimension_numbers<[1], [0], [0], [1], [0, 0, 1, 1], [], []>} : vector<16x64xbf16>, vector<64x32xbf16>, vector<16x32xf32> -> vector<16x32xf32>
    %c35 = arith.constant 35 : index
    %c0_106 = arith.constant 0 : index
    %282 = vector.load %arg5[%c35, %c0_106] : memref<36x64xf32, #tpu.memory_space<vmem>>, vector<1x32xf32>
    %283 = vector.broadcast %282 : vector<1x32xf32> to vector<16x32xf32>
    %284 = arith.addf %281, %283 : vector<16x32xf32>
    %285 = vector.shape_cast %274 : vector<16x32xf32> to vector<2x8x32xf32>
    %286 = vector.shape_cast %279 : vector<16x32xf32> to vector<2x8x32xf32>
    %287 = vector.shape_cast %284 : vector<16x32xf32> to vector<2x8x32xf32>
    %288 = arith.truncf %285 : vector<2x8x32xf32> to vector<2x8x32xbf16>
    %289 = arith.truncf %286 : vector<2x8x32xf32> to vector<2x8x32xbf16>
    "tpu.trace_start"() <{level = 10 : i32, message = "bqd,bkd->bqk"}> : () -> ()
    %cst_107 = arith.constant dense<0.000000e+00> : vector<2x8x8xf32>
    %290 = tpu.matmul %288, %289, %cst_107 {dimension_numbers = #tpu.dot_dimension_numbers<[2], [2], [1], [1], [0, 0, 0, 1, 1, 1], [0], [0]>} : vector<2x8x32xbf16>, vector<2x8x32xbf16>, vector<2x8x8xf32> -> vector<2x8x8xf32>
    "tpu.trace_stop"() : () -> ()
    %cst_108 = arith.constant 0.176776692 : f32
    %291 = vector.broadcast %cst_108 : f32 to vector<2x8x8xf32>
    %292 = arith.mulf %290, %291 : vector<2x8x8xf32>
    %293 = vector.shape_cast %5 : vector<1x8xf32> to vector<1x1x8xf32>
    %294 = vector.broadcast %293 : vector<1x1x8xf32> to vector<2x8x8xf32>
    %295 = arith.addf %292, %294 : vector<2x8x8xf32>
    %cst_109 = arith.constant dense<0xFF800000> : vector<2x8xf32>
    %296 = vector.multi_reduction <maximumf>, %295, %cst_109 [2] : vector<2x8x8xf32> to vector<2x8xf32>
    %297 = vector.shape_cast %296 : vector<2x8xf32> to vector<2x8x1xf32>
    %298 = vector.broadcast %297 : vector<2x8x1xf32> to vector<2x8x8xf32>
    %299 = arith.subf %295, %298 : vector<2x8x8xf32>
    %300 = math.exp %299 : vector<2x8x8xf32>
    %cst_110 = arith.constant dense<0.000000e+00> : vector<2x8xf32>
    %301 = vector.multi_reduction <add>, %300, %cst_110 [2] : vector<2x8x8xf32> to vector<2x8xf32>
    %302 = vector.shape_cast %301 : vector<2x8xf32> to vector<2x8x1xf32>
    %303 = vector.broadcast %302 : vector<2x8x1xf32> to vector<2x8x8xf32>
    %304 = arith.divf %300, %303 : vector<2x8x8xf32>
    %305 = arith.truncf %304 : vector<2x8x8xf32> to vector<2x8x8xbf16>
    %306 = arith.truncf %287 : vector<2x8x32xf32> to vector<2x8x32xbf16>
    "tpu.trace_start"() <{level = 10 : i32, message = "bqk,bkd->bqd"}> : () -> ()
    %cst_111 = arith.constant dense<0.000000e+00> : vector<2x8x32xf32>
    %307 = tpu.matmul %305, %306, %cst_111 {dimension_numbers = #tpu.dot_dimension_numbers<[2], [1], [1], [2], [0, 0, 0, 1, 1, 2], [0], [0]>} : vector<2x8x8xbf16>, vector<2x8x32xbf16>, vector<2x8x32xf32> -> vector<2x8x32xf32>
    "tpu.trace_stop"() : () -> ()
    %308 = vector.shape_cast %307 : vector<2x8x32xf32> to vector<16x32xf32>
    %309 = arith.truncf %308 : vector<16x32xf32> to vector<16x32xbf16>
    %c864 = arith.constant 864 : index
    %c0_112 = arith.constant 0 : index
    %310 = vector.load %arg2[%c864, %c0_112] : memref<1472x64xbf16, #tpu.memory_space<vmem>>, vector<32x64xbf16>
    %cst_113 = arith.constant dense<0.000000e+00> : vector<16x64xf32>
    %311 = tpu.matmul %309, %310, %cst_113 {dimension_numbers = #tpu.dot_dimension_numbers<[1], [0], [0], [1], [0, 0, 1, 1], [], []>} : vector<16x32xbf16>, vector<32x64xbf16>, vector<16x64xf32> -> vector<16x64xf32>
    %312 = arith.addf %269, %311 : vector<16x64xf32>
    %313 = arith.addf %200, %312 : vector<16x64xf32>
    %c18 = arith.constant 18 : index
    %c0_114 = arith.constant 0 : index
    %314 = vector.load %arg5[%c18, %c0_114] : memref<36x64xf32, #tpu.memory_space<vmem>>, vector<1x64xf32>
    %315 = vector.broadcast %314 : vector<1x64xf32> to vector<16x64xf32>
    %316 = arith.addf %313, %315 : vector<16x64xf32>
    %c19 = arith.constant 19 : index
    %c0_115 = arith.constant 0 : index
    %317 = vector.load %arg5[%c19, %c0_115] : memref<36x64xf32, #tpu.memory_space<vmem>>, vector<1x64xf32>
    %c20 = arith.constant 20 : index
    %c0_116 = arith.constant 0 : index
    %318 = vector.load %arg5[%c20, %c0_116] : memref<36x64xf32, #tpu.memory_space<vmem>>, vector<1x64xf32>
    %cst_117 = arith.constant dense<0.000000e+00> : vector<16xf32>
    %319 = vector.multi_reduction <add>, %316, %cst_117 [1] : vector<16x64xf32> to vector<16xf32>
    %320 = vector.shape_cast %319 : vector<16xf32> to vector<16x1xf32>
    %cst_118 = arith.constant 6.400000e+01 : f32
    %321 = vector.broadcast %cst_118 : f32 to vector<16x1xf32>
    %322 = arith.divf %320, %321 : vector<16x1xf32>
    %323 = vector.broadcast %322 : vector<16x1xf32> to vector<16x64xf32>
    %324 = arith.subf %316, %323 : vector<16x64xf32>
    %325 = arith.mulf %324, %324 : vector<16x64xf32>
    %cst_119 = arith.constant dense<0.000000e+00> : vector<16xf32>
    %326 = vector.multi_reduction <add>, %325, %cst_119 [1] : vector<16x64xf32> to vector<16xf32>
    %327 = vector.shape_cast %326 : vector<16xf32> to vector<16x1xf32>
    %cst_120 = arith.constant 6.400000e+01 : f32
    %328 = vector.broadcast %cst_120 : f32 to vector<16x1xf32>
    %329 = arith.divf %327, %328 : vector<16x1xf32>
    %330 = vector.broadcast %322 : vector<16x1xf32> to vector<16x64xf32>
    %331 = arith.subf %316, %330 : vector<16x64xf32>
    %cst_121 = arith.constant 9.99999974E-6 : f32
    %332 = vector.broadcast %cst_121 : f32 to vector<16x1xf32>
    %333 = arith.addf %329, %332 : vector<16x1xf32>
    %334 = math.rsqrt %333 : vector<16x1xf32>
    %335 = vector.broadcast %334 : vector<16x1xf32> to vector<16x64xf32>
    %336 = arith.mulf %331, %335 : vector<16x64xf32>
    %337 = vector.broadcast %317 : vector<1x64xf32> to vector<16x64xf32>
    %338 = arith.mulf %336, %337 : vector<16x64xf32>
    %339 = vector.broadcast %318 : vector<1x64xf32> to vector<16x64xf32>
    %340 = arith.addf %338, %339 : vector<16x64xf32>
    %341 = arith.truncf %340 : vector<16x64xf32> to vector<16x64xbf16>
    %c64_122 = arith.constant 64 : index
    %c0_123 = arith.constant 0 : index
    %342 = vector.load %arg4[%c64_122, %c0_123] : memref<192x256xbf16, #tpu.memory_space<vmem>>, vector<64x256xbf16>
    %cst_124 = arith.constant dense<0.000000e+00> : vector<16x256xf32>
    %343 = tpu.matmul %341, %342, %cst_124 {dimension_numbers = #tpu.dot_dimension_numbers<[1], [0], [0], [1], [0, 0, 1, 1], [], []>} : vector<16x64xbf16>, vector<64x256xbf16>, vector<16x256xf32> -> vector<16x256xf32>
    %c1 = arith.constant 1 : index
    %c0_125 = arith.constant 0 : index
    %344 = vector.load %arg6[%c1, %c0_125] : memref<3x256xf32, #tpu.memory_space<vmem>>, vector<1x256xf32>
    %345 = vector.broadcast %344 : vector<1x256xf32> to vector<16x256xf32>
    %346 = arith.addf %343, %345 : vector<16x256xf32>
    %cst_126 = arith.constant 1.702000e+00 : f32
    %347 = vector.broadcast %cst_126 : f32 to vector<16x256xf32>
    %348 = arith.mulf %347, %346 : vector<16x256xf32>
    %349 = arith.negf %348 : vector<16x256xf32>
    %350 = math.exp %349 : vector<16x256xf32>
    %cst_127 = arith.constant 1.000000e+00 : f32
    %351 = vector.broadcast %cst_127 : f32 to vector<16x256xf32>
    %352 = arith.addf %351, %350 : vector<16x256xf32>
    %353 = arith.divf %351, %352 : vector<16x256xf32>
    %354 = arith.mulf %346, %353 : vector<16x256xf32>
    %355 = arith.truncf %354 : vector<16x256xf32> to vector<16x256xbf16>
    %c1152 = arith.constant 1152 : index
    %c0_128 = arith.constant 0 : index
    %356 = vector.load %arg2[%c1152, %c0_128] : memref<1472x64xbf16, #tpu.memory_space<vmem>>, vector<256x64xbf16>
    %cst_129 = arith.constant dense<0.000000e+00> : vector<16x64xf32>
    %357 = tpu.matmul %355, %356, %cst_129 {dimension_numbers = #tpu.dot_dimension_numbers<[1], [0], [0], [1], [0, 0, 1, 1], [], []>} : vector<16x256xbf16>, vector<256x64xbf16>, vector<16x64xf32> -> vector<16x64xf32>
    %358 = arith.addf %316, %357 : vector<16x64xf32>
    %c21 = arith.constant 21 : index
    %c0_130 = arith.constant 0 : index
    %359 = vector.load %arg5[%c21, %c0_130] : memref<36x64xf32, #tpu.memory_space<vmem>>, vector<1x64xf32>
    %360 = vector.broadcast %359 : vector<1x64xf32> to vector<16x64xf32>
    %361 = arith.addf %358, %360 : vector<16x64xf32>
    %362 = vector.shape_cast %361 : vector<16x64xf32> to vector<2x8x64xf32>
    %363 = vector.extract_strided_slice %362 {offsets = [0, 0, 0], sizes = [2, 1, 64], strides = [1, 1, 1]} : vector<2x8x64xf32> to vector<2x1x64xf32>
    %364 = vector.shape_cast %363 : vector<2x1x64xf32> to vector<2x64xf32>
    %c22 = arith.constant 22 : index
    %c0_131 = arith.constant 0 : index
    %365 = vector.load %arg5[%c22, %c0_131] : memref<36x64xf32, #tpu.memory_space<vmem>>, vector<1x64xf32>
    %c23 = arith.constant 23 : index
    %c0_132 = arith.constant 0 : index
    %366 = vector.load %arg5[%c23, %c0_132] : memref<36x64xf32, #tpu.memory_space<vmem>>, vector<1x64xf32>
    %cst_133 = arith.constant dense<0.000000e+00> : vector<2xf32>
    %367 = vector.multi_reduction <add>, %364, %cst_133 [1] : vector<2x64xf32> to vector<2xf32>
    %368 = vector.shape_cast %367 : vector<2xf32> to vector<2x1xf32>
    %cst_134 = arith.constant 6.400000e+01 : f32
    %369 = vector.broadcast %cst_134 : f32 to vector<2x1xf32>
    %370 = arith.divf %368, %369 : vector<2x1xf32>
    %371 = vector.broadcast %370 : vector<2x1xf32> to vector<2x64xf32>
    %372 = arith.subf %364, %371 : vector<2x64xf32>
    %373 = arith.mulf %372, %372 : vector<2x64xf32>
    %cst_135 = arith.constant dense<0.000000e+00> : vector<2xf32>
    %374 = vector.multi_reduction <add>, %373, %cst_135 [1] : vector<2x64xf32> to vector<2xf32>
    %375 = vector.shape_cast %374 : vector<2xf32> to vector<2x1xf32>
    %cst_136 = arith.constant 6.400000e+01 : f32
    %376 = vector.broadcast %cst_136 : f32 to vector<2x1xf32>
    %377 = arith.divf %375, %376 : vector<2x1xf32>
    %378 = vector.broadcast %370 : vector<2x1xf32> to vector<2x64xf32>
    %379 = arith.subf %364, %378 : vector<2x64xf32>
    %cst_137 = arith.constant 9.99999974E-6 : f32
    %380 = vector.broadcast %cst_137 : f32 to vector<2x1xf32>
    %381 = arith.addf %377, %380 : vector<2x1xf32>
    %382 = math.rsqrt %381 : vector<2x1xf32>
    %383 = vector.broadcast %382 : vector<2x1xf32> to vector<2x64xf32>
    %384 = arith.mulf %379, %383 : vector<2x64xf32>
    %385 = vector.broadcast %365 : vector<1x64xf32> to vector<2x64xf32>
    %386 = arith.mulf %384, %385 : vector<2x64xf32>
    %387 = vector.broadcast %366 : vector<1x64xf32> to vector<2x64xf32>
    %388 = arith.addf %386, %387 : vector<2x64xf32>
    %389 = arith.truncf %388 : vector<2x64xf32> to vector<2x64xbf16>
    %c1408 = arith.constant 1408 : index
    %c0_138 = arith.constant 0 : index
    %390 = vector.load %arg2[%c1408, %c0_138] : memref<1472x64xbf16, #tpu.memory_space<vmem>>, vector<64x64xbf16>
    %cst_139 = arith.constant dense<0.000000e+00> : vector<2x64xf32>
    %391 = tpu.matmul %389, %390, %cst_139 {dimension_numbers = #tpu.dot_dimension_numbers<[1], [0], [0], [1], [0, 0, 1, 1], [], []>} : vector<2x64xbf16>, vector<64x64xbf16>, vector<2x64xf32> -> vector<2x64xf32>
    %392 = arith.truncf %391 : vector<2x64xf32> to vector<2x64xbf16>
    %c128_140 = arith.constant 128 : index
    %c0_141 = arith.constant 0 : index
    %393 = vector.load %arg4[%c128_140, %c0_141] : memref<192x256xbf16, #tpu.memory_space<vmem>>, vector<64x256xbf16>
    %cst_142 = arith.constant dense<0.000000e+00> : vector<2x256xf32>
    %394 = tpu.matmul %392, %393, %cst_142 {dimension_numbers = #tpu.dot_dimension_numbers<[1], [0], [0], [1], [0, 0, 1, 1], [], []>} : vector<2x64xbf16>, vector<64x256xbf16>, vector<2x256xf32> -> vector<2x256xf32>
    %c2 = arith.constant 2 : index
    %c0_143 = arith.constant 0 : index
    %395 = vector.load %arg6[%c2, %c0_143] : memref<3x256xf32, #tpu.memory_space<vmem>>, vector<1x256xf32>
    %396 = vector.broadcast %395 : vector<1x256xf32> to vector<2x256xf32>
    %397 = arith.addf %394, %396 : vector<2x256xf32>
    %398 = vector.shape_cast %397 : vector<2x256xf32> to vector<2x1x256xf32>
    %c0_144 = arith.constant 0 : index
    %c0_145 = arith.constant 0 : index
    %c0_146 = arith.constant 0 : index
    %399 = vector.load %arg7[%c0_144, %c0_145, %c0_146] : memref<2x1x256xf32, #tpu.memory_space<vmem>>, vector<2x1x256xf32>
    tpu.vector_store %arg7[%c0_144, %c0_145, %c0_146], %398 {strides = array<i32>} : memref<2x1x256xf32, #tpu.memory_space<vmem>>, vector<2x1x256xf32>,
    return
  }
  func.func @transform_0(%arg0: i32) -> (i32, i32, i32) {
    %c0_i32 = arith.constant 0 : i32
    %c0_i32_0 = arith.constant 0 : i32
    %c0_i32_1 = arith.constant 0 : i32
    %c0_i32_2 = arith.constant 0 : i32
    return %c0_i32, %c0_i32_0, %c0_i32_1 : i32, i32, i32
  }
  func.func @transform_1(%arg0: i32) -> (i32, i32) {
    %c0_i32 = arith.constant 0 : i32
    %c0_i32_0 = arith.constant 0 : i32
    %c0_i32_1 = arith.constant 0 : i32
    return %c0_i32, %c0_i32_0 : i32, i32
  }
  func.func @transform_2(%arg0: i32) -> (i32, i32) {
    %c0_i32 = arith.constant 0 : i32
    %c0_i32_0 = arith.constant 0 : i32
    %c0_i32_1 = arith.constant 0 : i32
    return %c0_i32, %c0_i32_0 : i32, i32
  }
  func.func @transform_3(%arg0: i32) -> (i32, i32) {
    %c0_i32 = arith.constant 0 : i32
    %c0_i32_0 = arith.constant 0 : i32
    %c0_i32_1 = arith.constant 0 : i32
    return %c0_i32, %c0_i32_0 : i32, i32
  }
  func.func @transform_4(%arg0: i32) -> (i32, i32) {
    %c0_i32 = arith.constant 0 : i32
    %c0_i32_0 = arith.constant 0 : i32
    %c0_i32_1 = arith.constant 0 : i32
    return %c0_i32, %c0_i32_0 : i32, i32
  }
  func.func @transform_5(%arg0: i32) -> (i32, i32) {
    %c0_i32 = arith.constant 0 : i32
    %c0_i32_0 = arith.constant 0 : i32
    %c0_i32_1 = arith.constant 0 : i32
    return %c0_i32, %c0_i32_0 : i32, i32
  }
  func.func @transform_6(%arg0: i32) -> (i32, i32, i32) {
    %c0_i32 = arith.constant 0 : i32
    %c0_i32_0 = arith.constant 0 : i32
    %c0_i32_1 = arith.constant 0 : i32
    %c0_i32_2 = arith.constant 0 : i32
    return %c0_i32, %c0_i32_0, %c0_i32_1 : i32, i32, i32
  }
}

</mosaic_0001>

<bundles_post_ra>
// kernel: _forward_jit.1
= control target key start
LH: loop header
LB: loop body
LE: loop exit
PB: predicated region body
PF: predicated region fallthrough
CT: control target
= control target key end

     0   :  { %vm576_vm0 = vcmask 523264   ;;  %vm4797_vm1 = vmmov 0   ;;  %vm898_vm2 = vcmask 261120   ;;  %vm1025_vm3 = vcmask 1043456   ;;  %s5800_s1 = inlined_call_operand.vmem [shape: bf16[1472,64], index: 1, kind: input, shape index: {}]   ;;  %s5801_s0 = inlined_call_operand.vmem [shape: bf16[2,8,768], index: 0, kind: input, shape index: {}]   ;;  %s5802_s4 = inlined_call_operand.vmem [shape: f32[36,64], index: 4, kind: input, shape index: {}]   ;;  %s5803_s2 = inlined_call_operand.vmem [shape: bf16[768,32], index: 2, kind: input, shape index: {}]   ;;  %s5804_s3 = inlined_call_operand.vmem [shape: bf16[192,256], index: 3, kind: input, shape index: {}]   ;;  %s5805_s5 = inlined_call_operand.vmem [shape: f32[3,256], index: 5, kind: input, shape index: {}]   ;;  %s5806_s6 = inlined_call_operand.vmem [shape: f32[2,1,256], index: 6, kind: output, shape index: {}]  }
   0x1   :  { %v4525_v0 = vld [vmem:[%s5800_s1 + $0x40] sm:$0xff]   ;;  %v4529_v4 = vld [vmem:[%s5800_s1 + $0x48] sm:$0xff]   ;;  %v4533_v8 = vld [vmem:[%s5800_s1 + $0x50] sm:$0xff]   ;;  %vm995_vm5 = vcmask 64512   ;;  %vm3501_vm6 = vcmask 1041409   ;;  %vm3504_vm7 = vcmask 517120  }
   0x2   :  { %v4526_v1 = vld [vmem:[%s5800_s1 + $0xc0] sm:$0xff]   ;;  %4017 = vmatprep.subr.bf16.mxu0 %v4525_v0  ;;  %v4530_v5 = vld [vmem:[%s5800_s1 + $0xc8] sm:$0xff]   ;;  %v4534_v9 = vld [vmem:[%s5800_s1 + $0xd0] sm:$0xff]  }
   0x3   :  { %v4527_v2 = vld [vmem:[%s5800_s1] sm:$0xff]   ;;  %4039 = vmatprep.subr.bf16.mxu1 %v4526_v1  ;;  %v4531_v6 = vld [vmem:[%s5800_s1 + $0x8] sm:$0xff]   ;;  %v4535_v10 = vld [vmem:[%s5800_s1 + $0x10] sm:$0xff]  }
   0x4   :  { %v4528_v3 = vld [vmem:[%s5800_s1 + $0x80] sm:$0xff]   ;;  %4018 = vmatpush3.bf16.msra.mxu0 %v4527_v2  ;;  %v4532_v7 = vld [vmem:[%s5800_s1 + $0x88] sm:$0xff]   ;;  %v4536_v11 = vld [vmem:[%s5800_s1 + $0x90] sm:$0xff]  }
   0x5   :  { %4040 = vmatpush3.bf16.msra.mxu1 %v4528_v3  ;;  %4019 = vmatprep.subr.bf16.mxu0 %v4529_v4  ;;  %v4537_v12 = vld [vmem:[%s5800_s1 + $0x58] sm:$0xff]   ;;  %v4541_v16 = vld [vmem:[%s5800_s1 + $0x60] sm:$0xff]   ;;  %v4545_v20 = vld [vmem:[%s5800_s1 + $0x68] sm:$0xff]  }
   0x6   :  { %4041 = vmatprep.subr.bf16.mxu1 %v4530_v5  ;;  %v4538_v13 = vld [vmem:[%s5800_s1 + $0xd8] sm:$0xff]   ;;  %v4542_v17 = vld [vmem:[%s5800_s1 + $0xe0] sm:$0xff]   ;;  %v4546_v21 = vld [vmem:[%s5800_s1 + $0xe8] sm:$0xff]  }
   0x7   :  { %v4539_v14 = vld [vmem:[%s5800_s1 + $0x18] sm:$0xff]   ;;  %v4543_v18 = vld [vmem:[%s5800_s1 + $0x20] sm:$0xff]   ;;  %v4547_v22 = vld [vmem:[%s5800_s1 + $0x28] sm:$0xff]  }
   0x8   :  { %4020 = vmatpush3.bf16.msra.mxu0 %v4531_v6  ;;  %v4540_v15 = vld [vmem:[%s5800_s1 + $0x98] sm:$0xff]   ;;  %v4544_v19 = vld [vmem:[%s5800_s1 + $0xa0] sm:$0xff]   ;;  %v4548_v23 = vld [vmem:[%s5800_s1 + $0xa8] sm:$0xff]  }
   0x9   :  { %4042 = vmatpush3.bf16.msra.mxu1 %v4532_v7  ;;  %4021 = vmatprep.subr.bf16.mxu0 %v4533_v8  ;;  %v4549_v24 = vld [vmem:[%s5800_s1 + $0x70] sm:$0xff]   ;;  %v4553_v28 = vld [vmem:[%s5800_s1 + $0x78] sm:$0xff]   ;;  %v4560_v34 = vld [vmem:[%s5801_s0 + $0x8] ss:$24 sps:$4 sm:$0xff]  }
   0xa   :  { %4043 = vmatprep.subr.bf16.mxu1 %v4534_v9  ;;  %v4550_v25 = vld [vmem:[%s5800_s1 + $0xf0] sm:$0xff]   ;;  %v4554_v29 = vld [vmem:[%s5800_s1 + $0xf8] sm:$0xff]   ;;  %v4562_v35 = vld [vmem:[%s5801_s0 + $0xc] ss:$24 sps:$4 sm:$0xff]  }
   0xb   :  { %v4551_v26 = vld [vmem:[%s5800_s1 + $0x30] sm:$0xff]   ;;  %v4555_v30 = vld [vmem:[%s5800_s1 + $0x38] sm:$0xff]   ;;  %v4563_v36 = vld [vmem:[%s5800_s1 + $0x140] sm:$0xff]   ;;  %521 = vmatprep.mubr.bf16.mxu1 %v4562_v35 }
   0xc   :  { %4022 = vmatpush3.bf16.msra.mxu0 %v4535_v10  ;;  %v4552_v27 = vld [vmem:[%s5800_s1 + $0xb0] sm:$0xff]   ;;  %v4556_v31 = vld [vmem:[%s5800_s1 + $0xb8] sm:$0xff]   ;;  %v4564_v37 = vld [vmem:[%s5800_s1 + $0x100] sm:$0xff]  }
   0xd   :  { %4044 = vmatpush3.bf16.msra.mxu1 %v4536_v11  ;;  %4023 = vmatprep.subr.bf16.mxu0 %v4537_v12  ;;  %v4557_v32 = vld [vmem:[%s5801_s0] ss:$24 sps:$4 sm:$0xff]   ;;  %v4559_v33 = vld [vmem:[%s5801_s0 + $0x4] ss:$24 sps:$4 sm:$0xff]   ;;  %v4565_v38 = vld [vmem:[%s5800_s1 + $0x148] sm:$0xff]  }
   0xe   :  { %4045 = vmatprep.subr.bf16.mxu1 %v4538_v13  ;;  %480 = vmatprep.mubr.bf16.mxu0 %v4559_v33  ;;  %v4566_v39 = vld [vmem:[%s5800_s1 + $0x108] sm:$0xff]   ;;  %v4567_v40 = vld [vmem:[%s5800_s1 + $0x150] sm:$0xff]   ;;  %v4569_v42 = vld [vmem:[%s5800_s1 + $0x158] sm:$0xff]  }
   0xf   :  { %v4568_v41 = vld [vmem:[%s5800_s1 + $0x110] sm:$0xff]   ;;  %v4570_v43 = vld [vmem:[%s5800_s1 + $0x118] sm:$0xff]   ;;  %v4571_v44 = vld [vmem:[%s5800_s1 + $0x160] sm:$0xff]  }
  0x10   :  { %4024 = vmatpush3.bf16.msra.mxu0 %v4539_v14  ;;  %v4572_v45 = vld [vmem:[%s5800_s1 + $0x120] sm:$0xff]   ;;  %v4573_v46 = vld [vmem:[%s5800_s1 + $0x168] sm:$0xff]   ;;  %v4575_v49 = vld [vmem:[%s5800_s1 + $0x170] sm:$0xff]  }
  0x11   :  { %4046 = vmatpush3.bf16.msra.mxu1 %v4540_v15  ;;  %4025 = vmatprep.subr.bf16.mxu0 %v4541_v16  ;;  %v4581_v47 = vld [vmem:[%s5801_s0 + $0x14] ss:$24 sps:$4 sm:$0xff]   ;;  %v4577_v51 = vld [vmem:[%s5800_s1 + $0x178] sm:$0xff]   ;;  %v4579_v53 = vld [vmem:[%s5801_s0 + $0x10] ss:$24 sps:$4 sm:$0xff]  }
  0x12   :  { %4047 = vmatprep.subr.bf16.mxu1 %v4542_v17  ;;  %v4574_v48 = vld [vmem:[%s5800_s1 + $0x128] sm:$0xff]   ;;  %v4576_v50 = vld [vmem:[%s5800_s1 + $0x130] sm:$0xff]   ;;  %v4578_v52 = vld [vmem:[%s5800_s1 + $0x138] sm:$0xff]  }
  0x13   :  { %v571_v9 = vld [vmem:[%s5802_s4] sm:$0xff] }
  0x14   :  { %4026 = vmatpush3.bf16.msra.mxu0 %v4543_v18 }
  0x15   :  { %4048 = vmatpush3.bf16.msra.mxu1 %v4544_v19  ;;  %4027 = vmatprep.subr.bf16.mxu0 %v4545_v20 }
  0x16   :  { %4049 = vmatprep.subr.bf16.mxu1 %v4546_v21 }
  0x18   :  { %4028 = vmatpush3.bf16.msra.mxu0 %v4547_v22 }
  0x19   :  { %4050 = vmatpush3.bf16.msra.mxu1 %v4548_v23  ;;  %4029 = vmatprep.subr.bf16.mxu0 %v4549_v24 }
  0x1a   :  { %4051 = vmatprep.subr.bf16.mxu1 %v4550_v25 }
  0x1c   :  { %4030 = vmatpush3.bf16.msra.mxu0 %v4551_v26 }
  0x1d   :  { %4052 = vmatpush3.bf16.msra.mxu1 %v4552_v27  ;;  %4031 = vmatprep.subr.bf16.mxu0 %v4553_v28 }
  0x1e   :  { %4053 = vmatprep.subr.bf16.mxu1 %v4554_v29 }
  0x20   :  { %4032 = vmatpush3.bf16.msra.mxu0 %v4555_v30 }
  0x21   :  { %4054 = vmatpush3.bf16.msra.mxu1 %v4556_v31  ;;  %4061 = vmatprep.subr.bf16.mxu0 %v4563_v36  ;;  %v3828_v36 = vld [vmem:[%s5802_s4 + $0x9] ss:$0 sm:$0xff] }
  0x23   :  { %481 = vmatmul.mubr.bf16.vlgmr.msra.gmra.mrb[0].mxu0 %v4557_v32 }
  0x24   :  { %522 = vmatmul.mubr.bf16.vlgmr.msra.gmra.mrb[0].mxu1 %v4560_v34  ;;  %4062 = vmatpush3.bf16.msra.mxu0 %v4564_v37  ;;  %v3827_v34 = vld [vmem:[%s5802_s4 + $0x8] ss:$0 sm:$0xff] }
  0x25   :  { %4063 = vmatprep.subr.bf16.mxu0 %v4565_v38  ;;  %562 = vmatprep.mubr.bf16.mxu0 %v4581_v47 }
  0x28   :  { %4064 = vmatpush3.bf16.msra.mxu0 %v4566_v39 }
  0x29   :  { %4065 = vmatprep.subr.bf16.mxu0 %v4567_v40 }
  0x2c   :  { %4066 = vmatpush3.bf16.msra.mxu0 %v4568_v41 }
  0x2d   :  { %4067 = vmatprep.subr.bf16.mxu0 %v4569_v42 }
  0x30   :  { %4068 = vmatpush3.bf16.msra.mxu0 %v4570_v43 }
  0x31   :  { %4069 = vmatprep.subr.bf16.mxu0 %v4571_v44 }
  0x34   :  { %4070 = vmatpush3.bf16.msra.mxu0 %v4572_v45 }
  0x35   :  { %4071 = vmatprep.subr.bf16.mxu0 %v4573_v46 }
  0x38   :  { %4072 = vmatpush3.bf16.msra.mxu0 %v4574_v48 }
  0x39   :  { %4073 = vmatprep.subr.bf16.mxu0 %v4575_v49 }
  0x3c   :  { %4074 = vmatpush3.bf16.msra.mxu0 %v4576_v50 }
  0x3d   :  { %4075 = vmatprep.subr.bf16.mxu0 %v4577_v51 }
  0x40   :  { %4076 = vmatpush3.bf16.msra.mxu0 %v4578_v52 }
  0x43   :  { %563 = vmatmul.mubr.bf16.vlgmr.msra.gmra.mrb[4].mxu0 %v4579_v53 }
  0xf6   :  { %v4033_v54 = vpop.f32.mrb[0].mxu0 }
  0xf7   :  { %v4055_v55 = vpop.f32.mrb[0].mxu1  ;;  %v4034_v56 = vpop.f32.mrb[1].mxu0 }
  0xf8   :  { %v4035_v57 = vadd.f32 %v4034_v56, %v4033_v54  ;;  %v4056_v58 = vpop.f32.mrb[1].mxu1  ;;  %v4036_v59 = vpop.f32.mrb[2].mxu0  ;;  %v4796_v56 = vmov 0.0  }
  0xf9   :  { %v4057_v60 = vadd.f32 %v4056_v58, %v4055_v55  ;;  %v4058_v61 = vpop.f32.mrb[2].mxu1  ;;  %v4037_v62 = vpop.f32.mrb[3].mxu0  ;;  %v4582_v55 = vld [vmem:[%s5803_s2] sm:$0xff]   ;;  %4236 = vmatprep.subr.bf16.mxu1 %v4796_v56  ;;  %4260 = vmatprep.subr.bf16.mxu0 %v4796_v56  ;;  %v4584_v58 = vld [vmem:[%s5803_s2 + $0x8] sm:$0xff]  }
  0xfa   :  { %v4038_v63 = vadd.f32 %v4037_v62, %v4036_v59  ;;  %v4059_v0 = vpop.f32.mrb[3].mxu1  ;;  %4237 = vmatpush3.bf16.msra.mxu1 %v4582_v55  ;;  %v4585_v59 = vld [vmem:[%s5803_s2 + $0x48] sm:$0xff]   ;;  %v4588_v62 = vld [vmem:[%s5803_s2 + $0x18] sm:$0xff]   ;;  %4244 = vmatprep.mubr.msk.bf16.mxu1 %vm4797_vm1, %v4796_v56 }
  0xfb   :  { %v524_v1 = vadd.f32 %v4057_v60, %v4035_v57  ;;  %v4060_v2 = vadd.f32 %v4059_v0, %v4058_v61  ;;  %v4583_v57 = vld [vmem:[%s5803_s2 + $0x40] sm:$0xff]   ;;  %4238 = vmatprep.subr.bf16.mxu1 %v4796_v56  ;;  %v4586_v60 = vld [vmem:[%s5803_s2 + $0x10] sm:$0xff]   ;;  %4268 = vmatprep.mubr.msk.bf16.mxu0 %vm4797_vm1, %v4796_v56 }
  0xfc   :  { %4261 = vmatpush3.bf16.msra.mxu0 %v4583_v57  ;;  %v4587_v61 = vld [vmem:[%s5803_s2 + $0x50] sm:$0xff]  }
  0xfd   :  { %v527_v3 = vadd.f32 %v4060_v2, %v4038_v63  ;;  %4262 = vmatprep.subr.bf16.mxu0 %v4796_v56  ;;  %v4589_v63 = vld [vmem:[%s5803_s2 + $0x58] sm:$0xff]  }
  0xfe   :  { %4239 = vmatpush3.bf16.msra.mxu1 %v4584_v58 }
  0xff   :  { %4240 = vmatprep.subr.bf16.mxu1 %v4796_v56 }
 0x100   :  { %4263 = vmatpush3.bf16.msra.mxu0 %v4585_v59 }
 0x101   :  { %4264 = vmatprep.subr.bf16.mxu0 %v4796_v56 }
 0x102   :  { %4241 = vmatpush3.bf16.msra.mxu1 %v4586_v60 }
 0x103   :  { %4242 = vmatprep.subr.bf16.mxu1 %v4796_v56 }
 0x104   :  { %4265 = vmatpush3.bf16.msra.mxu0 %v4587_v61  ;;  %v3865_v61 = vld [vmem:[%s5802_s4 + $0x1d] ss:$0 sm:$0xff] }
 0x105   :  { %4266 = vmatprep.subr.bf16.mxu0 %v4796_v56 }
 0x106   :  { %4243 = vmatpush3.bf16.msra.mxu1 %v4588_v62 }
 0x107   :  { %4248 = vmatprep.subr.bf16.mxu1 %v4796_v56 }
 0x108   :  { %4267 = vmatpush3.bf16.msra.mxu0 %v4589_v63 }
 0x109   :  { %4296 = vmatprep.subr.bf16.mxu0 %v4796_v56 }
 0x116   :  { %v4077_v4 = vpop.f32.mrb[4].mxu0 }
 0x117   :  { %v4078_v5 = vpop.f32.mrb[5].mxu0 }
 0x118   :  { %v4079_v6 = vadd.f32 %v4078_v5, %v4077_v4  ;;  %v4080_v7 = vpop.f32.mrb[6].mxu0 }
 0x119   :  { %v4081_v8 = vpop.f32.mrb[7].mxu0 }
 0x11a   :  { %v565_v10 = vadd.f32 %v4079_v6, %v524_v1  ;;  %v4082_v11 = vadd.f32 %v4081_v8, %v4080_v7  ;;  %v3829_v8 = vld [vmem:[%s5802_s4 + $0xa] ss:$0 sm:$0xff] }
 0x11c   :  { %v568_v12 = vadd.f32 %v4082_v11, %v527_v3  ;;  %v572_v13 = vadd.f32 %v571_v9, %v565_v10 }
 0x11e   :  { %v577_v14 = vsel %vm576_vm0, %v572_v13, 0.0  ;;  %v573_v15 = vadd.f32 %v571_v9, %v568_v12  ;;  %v3830_v12 = vld [vmem:[%s5802_s4 + $0xb] ss:$0 sm:$0xff] }
 0x11f   :  { %578 = vadd.xlane.f32.xlu0 %v577_v14 }
 0x120   :  { %v580_v16 = vsel %vm576_vm0, %v573_v15, 0.0 }
 0x123   :  { %581 = vadd.xlane.f32.xlu0 %v580_v16  ;;  %v4590_v16 = vld [vmem:[%s5803_s2 + $0x20] sm:$0xff]  }
 0x1ac   :  { %v579_v17 = vpop.xlane.xlu0 %578 }
 0x1ad   :  { %v584_v18 = vmul.f32 0.015625, %v579_v17  ;;  %v4591_v17 = vld [vmem:[%s5803_s2 + $0x60] sm:$0xff]  }
 0x1af   :  { %v586_v19 = vsub.f32 %v572_v13, %v584_v18 }
 0x1b0   :  { %v582_v20 = vpop.xlane.xlu0 %581 }
 0x1b1   :  { %v585_v21 = vmul.f32 0.015625, %v582_v20  ;;  %v588_v22 = vmul.f32 %v586_v19, %v586_v19  ;;  %v4593_v20 = vld [vmem:[%s5803_s2 + $0x68] sm:$0xff]  }
 0x1b3   :  { %v587_v23 = vsub.f32 %v573_v15, %v585_v21  ;;  %v590_v24 = vsel %vm576_vm0, %v588_v22, 0.0  ;;  %v4594_v21 = vld [vmem:[%s5803_s2 + $0x30] sm:$0xff]  }
 0x1b4   :  { %591 = vadd.xlane.f32.xlu1 %v590_v24  ;;  %v4595_v22 = vld [vmem:[%s5803_s2 + $0x70] sm:$0xff]   ;;  %v4597_v24 = vld [vmem:[%s5803_s2 + $0x78] sm:$0xff]  }
 0x1b5   :  { %v589_v25 = vmul.f32 %v587_v23, %v587_v23 }
 0x1b7   :  { %v593_v26 = vsel %vm576_vm0, %v589_v25, 0.0  ;;  %v4598_v25 = vld [vmem:[%s5803_s2 + $0xa0] sm:$0xff]  }
 0x1b8   :  { %594 = vadd.xlane.f32.xlu1 %v593_v26  ;;  %v4599_v26 = vld [vmem:[%s5803_s2 + $0xa8] sm:$0xff]  }
 0x241   :  { %v592_v27 = vpop.xlane.xlu1 %591 }
 0x242   :  { %v596_v28 = vmul.f32 0.015625, %v592_v27  ;;  %v4600_v27 = vld [vmem:[%s5803_s2 + $0xb0] sm:$0xff]  }
 0x244   :  { %v598_v29 = vadd.f32 1e-05, %v596_v28  ;;  %v4601_v28 = vld [vmem:[%s5803_s2 + $0xb8] sm:$0xff]  }
 0x245   :  { %v595_v30 = vpop.xlane.xlu1 %594 }
 0x246   :  { %4710 = vrsqrt.f32 %v598_v29  ;;  %v597_v31 = vmul.f32 0.015625, %v595_v30 }
 0x248   :  { %v599_v32 = vadd.f32 1e-05, %v597_v31 }
 0x24a   :  { %4712 = vrsqrt.f32 %v599_v32 }
 0x250   :  { %v4711_v33 = vpop.eup %4710 }
 0x251   :  { %v602_v35 = vmul.f32 %v4711_v33, %v586_v19  ;;  %v4592_v19 = vld [vmem:[%s5803_s2 + $0x28] sm:$0xff]   ;;  %v3843_v33 = vld [vmem:[%s5802_s4 + $0x1a] ss:$0 sm:$0xff] }
 0x253   :  { %v608_v37 = vmul.f32 %v3827_v34, %v602_v35 }
 0x254   :  { %v4713_v38 = vpop.eup %4712 }
 0x255   :  { %v5011_v39 = vadd.f32 %v3828_v36, %v608_v37  ;;  %v603_v40 = vmul.f32 %v4713_v38, %v587_v23  ;;  %v4596_v23 = vld [vmem:[%s5803_s2 + $0x38] sm:$0xff]  }
 0x257   :  { %v618_v41 = vsel %vm576_vm0, %v5011_v39, 0.0  ;;  %v609_v42 = vmul.f32 %v3827_v34, %v603_v40  ;;  %v3837_v40 = vld [vmem:[%s5802_s4 + $0x19] ss:$0 sm:$0xff] }
 0x258   :  { %619 = vadd.xlane.f32.xlu0 %v618_v41 }
 0x259   :  { %v5015_v43 = vadd.f32 %v3828_v36, %v609_v42 }
 0x25b   :  { %v621_v44 = vsel %vm576_vm0, %v5015_v43, 0.0 }
 0x25c   :  { %622 = vadd.xlane.f32.xlu1 %v621_v44 }
 0x2e5   :  { %v620_v45 = vpop.xlane.xlu0 %619 }
 0x2e6   :  { %v624_v46 = vmul.f32 0.015625, %v620_v45 }
 0x2e8   :  { %v626_v47 = vsub.f32 %v5011_v39, %v624_v46 }
 0x2e9   :  { %v623_v48 = vpop.xlane.xlu1 %622 }
 0x2ea   :  { %v625_v49 = vmul.f32 0.015625, %v623_v48  ;;  %v628_v50 = vmul.f32 %v626_v47, %v626_v47 }
 0x2ec   :  { %v627_v51 = vsub.f32 %v5015_v43, %v625_v49  ;;  %v630_v52 = vsel %vm576_vm0, %v628_v50, 0.0 }
 0x2ed   :  { %631 = vadd.xlane.f32.xlu0 %v630_v52  ;;  %v3831_v52 = vld [vmem:[%s5802_s4 + $0x18] ss:$0 sm:$0xff] }
 0x2ee   :  { %v629_v53 = vmul.f32 %v627_v51, %v627_v51 }
 0x2f0   :  { %v633_v54 = vsel %vm576_vm0, %v629_v53, 0.0 }
 0x2f1   :  { %634 = vadd.xlane.f32.xlu1 %v633_v54 }
 0x37a   :  { %v632_v0 = vpop.xlane.xlu0 %631 }
 0x37b   :  { %v636_v1 = vmul.f32 0.015625, %v632_v0 }
 0x37d   :  { %v638_v2 = vadd.f32 1e-05, %v636_v1 }
 0x37e   :  { %v635_v3 = vpop.xlane.xlu1 %634 }
 0x37f   :  { %4714 = vrsqrt.f32 %v638_v2  ;;  %v637_v4 = vmul.f32 0.015625, %v635_v3 }
 0x381   :  { %v639_v5 = vadd.f32 1e-05, %v637_v4 }
 0x383   :  { %4716 = vrsqrt.f32 %v639_v5 }
 0x389   :  { %v4715_v6 = vpop.eup %4714 }
 0x38a   :  { %v642_v7 = vmul.f32 %v4715_v6, %v626_v47 }
 0x38c   :  { %v648_v10 = vmul.f32 %v3829_v8, %v642_v7 }
 0x38d   :  { %v4717_v9 = vpop.eup %4716 }
 0x38e   :  { %v643_v11 = vmul.f32 %v4717_v9, %v627_v51  ;;  %v654_v14 = vadd.f32 %v3830_v12, %v648_v10  ;;  %v24_v10 = vlaneseq }
 0x390   :  { %v649_v13 = vmul.f32 %v3829_v8, %v643_v11  ;;  %v25_v11 = vand.u32 127, %v24_v10  ;;  %vm3765_vm8 = vcmp.lt.s32.totalorder %v24_v10, 256 }
 0x392   :  { %v655_v15 = vadd.f32 %v3830_v12, %v649_v13  ;;  %vm26_vm4 = vcmp.lt.s32.totalorder %v25_v11, 5  ;;  %v4798_v13 = vmov -1e+09   ;;  %v3853_v11 = vld [vmem:[%s5802_s4 + $0x1b] ss:$0 sm:$0xff] }
 0x394   :  { %v5073_v18 = vpack.c.bf16 %v655_v15, %v654_v14  ;;  %v5172_v14 = vsel %vm26_vm4, 0.0, %v4798_v13 }
 0x396   :  { %4245 = vmatmul.mubr.msk.bf16.vlgmr.msra.gmra.mrb[4].mxu1 %vm576_vm0, %v5073_v18  ;;  %4269 = vmatmul.mubr.msk.bf16.vlgmr.msra.gmra.mrb[8].mxu0 %vm576_vm0, %v5073_v18 }
 0x397   :  { %4249 = vmatpush3.bf16.msra.mxu1 %v4590_v16  ;;  %4297 = vmatpush3.bf16.msra.mxu0 %v4591_v17 }
 0x398   :  { %4250 = vmatprep.subr.bf16.mxu1 %v4796_v56  ;;  %4298 = vmatprep.subr.bf16.mxu0 %v4796_v56 }
 0x399   :  { %4256 = vmatprep.mubr.msk.bf16.mxu1 %vm4797_vm1, %v4796_v56  ;;  %4304 = vmatprep.mubr.msk.bf16.mxu0 %vm4797_vm1, %v4796_v56 }
 0x39b   :  { %4251 = vmatpush3.bf16.msra.mxu1 %v4592_v19  ;;  %4299 = vmatpush3.bf16.msra.mxu0 %v4593_v20 }
 0x39c   :  { %4252 = vmatprep.subr.bf16.mxu1 %v4796_v56  ;;  %4300 = vmatprep.subr.bf16.mxu0 %v4796_v56 }
 0x39f   :  { %4253 = vmatpush3.bf16.msra.mxu1 %v4594_v21  ;;  %4301 = vmatpush3.bf16.msra.mxu0 %v4595_v22 }
 0x3a0   :  { %4254 = vmatprep.subr.bf16.mxu1 %v4796_v56  ;;  %4302 = vmatprep.subr.bf16.mxu0 %v4796_v56 }
 0x3a3   :  { %4255 = vmatpush3.bf16.msra.mxu1 %v4596_v23  ;;  %4303 = vmatpush3.bf16.msra.mxu0 %v4597_v24 }
 0x3a4   :  { %4320 = vmatprep.subr.bf16.mxu0 %v4796_v56  ;;  %4272 = vmatprep.subr.bf16.mxu1 %v4796_v56 }
 0x3a6   :  { %4257 = vmatmul.mubr.msk.bf16.vlgmr.msra.gmra.mrb[8].mxu1 %vm576_vm0, %v5073_v18  ;;  %4305 = vmatmul.mubr.msk.bf16.vlgmr.msra.gmra.mrb[12].mxu0 %vm576_vm0, %v5073_v18 }
 0x3a7   :  { %4321 = vmatpush3.bf16.msra.mxu0 %v4598_v25  ;;  %4328 = vmatprep.mubr.msk.bf16.mxu0 %vm4797_vm1, %v4796_v56 }
 0x3a8   :  { %4322 = vmatprep.subr.bf16.mxu0 %v4796_v56  ;;  %4274 = vmatprep.mubr.msk.bf16.mxu1 %vm4797_vm1, %v4796_v56 }
 0x3ab   :  { %4323 = vmatpush3.bf16.msra.mxu0 %v4599_v26 }
 0x3ac   :  { %4324 = vmatprep.subr.bf16.mxu0 %v4796_v56 }
 0x3af   :  { %4325 = vmatpush3.bf16.msra.mxu0 %v4600_v27 }
 0x3b0   :  { %4326 = vmatprep.subr.bf16.mxu0 %v4796_v56 }
 0x3b3   :  { %4327 = vmatpush3.bf16.msra.mxu0 %v4601_v28 }
 0x3b4   :  { %4344 = vmatprep.subr.bf16.mxu0 %v4796_v56 }
 0x3b6   :  { %4329 = vmatmul.mubr.msk.bf16.vlgmr.msra.gmra.mrb[16].mxu0 %vm576_vm0, %v5073_v18 }
 0x3b7   :  { %4346 = vmatprep.mubr.msk.bf16.mxu0 %vm4797_vm1, %v4796_v56 }
 0x469   :  { %v731_v29 = vpop.f32.mrb[4].mxu1  ;;  %v887_v30 = vpop.f32.mrb[8].mxu0 }
 0x46a   :  { %v4246_v31 = vpop.f32.mrb[5].mxu1  ;;  %v4270_v32 = vpop.f32.mrb[9].mxu0  ;;  %v732_v55 = vadd.f32 %v3831_v52, %v731_v29  ;;  %v888_v59 = vadd.f32 %v3843_v33, %v887_v30 }
 0x46b   :  { %v734_v34 = vpop.f32.mrb[6].mxu1  ;;  %v890_v35 = vpop.f32.mrb[10].mxu0 }
 0x46c   :  { %v5140_v36 = vadd.f32 %v3843_v33, %v890_v35  ;;  %v4247_v37 = vpop.f32.mrb[7].mxu1  ;;  %v4271_v38 = vpop.f32.mrb[11].mxu0  ;;  %v894_v58 = vpack.c.bf16 %v732_v55, %v732_v55  ;;  %v735_v62 = vadd.f32 %v3831_v52, %v734_v34  ;;  %v1020_v0 = vpack.c.bf16 %v888_v59, %v888_v59  ;;  %v4604_v55 = vld [vmem:[%s5803_s2 + $0x90] sm:$0xff]  }
 0x46e   :  { %v895_v4 = vpack.c.bf16 %v735_v62, %v735_v62  ;;  %v1027_v8 = vsel %vm1025_vm3, %v1020_v0, 0 }
 0x479   :  { %v809_v41 = vpop.f32.mrb[8].mxu1  ;;  %v5145_v42 = vpop.f32.mrb[12].mxu0 }
 0x47a   :  { %v810_v44 = vadd.f32 %v3837_v40, %v809_v41  ;;  %v4258_v45 = vpop.f32.mrb[9].mxu1  ;;  %v4306_v46 = vpop.f32.mrb[13].mxu0 }
 0x47b   :  { %v812_v47 = vpop.f32.mrb[10].mxu1  ;;  %v5147_v48 = vpop.f32.mrb[14].mxu0  ;;  %v1021_v46 = vpack.c.bf16 %v5140_v36, %v5140_v36  ;;  %v4603_v36 = vld [vmem:[%s5803_s2 + $0x88] sm:$0xff]  }
 0x47c   :  { %v896_v49 = vpack.c.bf16 %v810_v44, %v810_v44  ;;  %v4259_v50 = vpop.f32.mrb[11].mxu1  ;;  %v4307_v51 = vpop.f32.mrb[15].mxu0  ;;  %v813_v54 = vadd.f32 %v3837_v40, %v812_v47 }
 0x47d   :  { %v1073_v50 = vsel %vm1025_vm3, %v1021_v46, 0 }
 0x47e   :  { %v903_v53 = vsel %vm898_vm2, %v896_v49, 0  ;;  %v897_v57 = vpack.c.bf16 %v813_v54, %v813_v54 }
 0x47f   :  { %4273 = vmatpush3.bf16.xpose.msra.mxu1 %v903_v53  ;;  %v4602_v53 = vld [vmem:[%s5803_s2 + $0x80] sm:$0xff]  }
 0x480   :  { %4278 = vmatprep.subr.bf16.mxu1 %v4796_v56  ;;  %v949_v60 = vsel %vm898_vm2, %v897_v57, 0  ;;  %v4605_v57 = vld [vmem:[%s5803_s2 + $0x98] sm:$0xff]  }
 0x486   :  { %4275 = vmatmul.mubr.msk.bf16.vlgmr.msra.gmra.mrb[12].mxu1 %vm898_vm2, %v894_v58 }
 0x487   :  { %4279 = vmatpush3.bf16.xpose.msra.mxu1 %v949_v60  ;;  %4280 = vmatprep.mubr.msk.bf16.mxu1 %vm4797_vm1, %v4796_v56 }
 0x488   :  { %4284 = vmatprep.subr.bf16.mxu1 %v4796_v56 }
 0x489   :  { %v1347_v63 = vpop.f32.mrb[16].mxu0 }
 0x48a   :  { %v1348_v1 = vadd.f32 %v3865_v61, %v1347_v63  ;;  %v4330_v2 = vpop.f32.mrb[17].mxu0 }
 0x48b   :  { %v1350_v3 = vpop.f32.mrb[18].mxu0 }
 0x48c   :  { %v1478_v5 = vpack.c.bf16 %v1348_v1, %v1348_v1  ;;  %v5162_v6 = vadd.f32 %v3865_v61, %v1350_v3  ;;  %v4331_v7 = vpop.f32.mrb[19].mxu0 }
 0x48e   :  { %v1484_v9 = vsel %vm1025_vm3, %v1478_v5, 0  ;;  %4281 = vmatmul.mubr.msk.bf16.vlgmr.msra.gmra.mrb[16].mxu1 %vm898_vm2, %v895_v4 }
 0x48f   :  { %4285 = vmatpush3.bf16.msra.mxu1 %v1027_v8  ;;  %4345 = vmatpush3.bf16.msra.mxu0 %v1484_v9 }
 0x490   :  { %4286 = vmatprep.mubr.msk.bf16.mxu1 %vm4797_vm1, %v4796_v56  ;;  %4290 = vmatprep.subr.bf16.mxu1 %v4796_v56 }
 0x491   :  { %4356 = vmatprep.subr.bf16.mxu0 %v4796_v56 }
 0x559   :  { %v939_v12 = vpop.f32.mrb[12].mxu1 }
 0x55a   :  { %v991_v15 = vmul.f32 0.17677669, %v939_v12  ;;  %v4276_v16 = vpop.f32.mrb[13].mxu1 }
 0x55b   :  { %v942_v17 = vpop.f32.mrb[14].mxu1 }
 0x55c   :  { %v4277_v19 = vpop.f32.mrb[15].mxu1  ;;  %v993_v20 = vadd.f32 %v991_v15, %v5172_v14  ;;  %v1192_v15 = vadd.f32 %v3853_v11, %v5145_v42 }
 0x55e   :  { %v996_v21 = vsel %vm995_vm5, %v993_v20, -inf  ;;  %v1354_v17 = vpack.c.bf16 %v1192_v15, %v1192_v15 }
 0x55f   :  { %997 = vmax.xlane.f32.xlu0 %v996_v21  ;;  %v1479_v21 = vpack.c.bf16 %v5162_v6, %v5162_v6 }
 0x561   :  { %v985_v22 = vpop.f32.mrb[16].mxu1 }
 0x562   :  { %v992_v23 = vmul.f32 0.17677669, %v985_v22  ;;  %v4282_v24 = vpop.f32.mrb[17].mxu1  ;;  %v1530_v22 = vsel %vm1025_vm3, %v1479_v21, 0 }
 0x563   :  { %v988_v25 = vpop.f32.mrb[18].mxu1 }
 0x564   :  { %v4283_v26 = vpop.f32.mrb[19].mxu1  ;;  %v994_v27 = vadd.f32 %v992_v23, %v5172_v14 }
 0x566   :  { %v999_v28 = vsel %vm995_vm5, %v994_v27, -inf }
 0x567   :  { %1000 = vmax.xlane.f32.xlu1 %v999_v28 }
 0x5ec   :  { %v998_v29 = vpop.xlane.xlu0 %997 }
 0x5ed   :  { %v1002_v30 = vsub.f32 %v993_v20, %v998_v29  ;;  %v1195_v20 = vadd.f32 %v3853_v11, %v5147_v48 }
 0x5ef   :  { %v1004_v31 = vmul.f32 1.442695, %v1002_v30  ;;  %v1355_v42 = vpack.c.bf16 %v1195_v20, %v1195_v20 }
 0x5f1   :  { %4718 = vpow2.f32 %v1004_v31 }
 0x5f4   :  { %v1001_v32 = vpop.xlane.xlu1 %1000 }
 0x5f5   :  { %v1003_v33 = vsub.f32 %v994_v27, %v1001_v32 }
 0x5f7   :  { %v1006_v34 = vmul.f32 1.442695, %v1003_v33 }
 0x5f9   :  { %4720 = vpow2.f32 %v1006_v34 }
 0x5fb   :  { %v4719_v35 = vpop.eup %4718 }
 0x5fc   :  { %v1008_v37 = vsel %vm995_vm5, %v4719_v35, 0.0 }
 0x5fd   :  { %1009 = vadd.xlane.f32.xlu0 %v1008_v37 }
 0x603   :  { %v4721_v38 = vpop.eup %4720 }
 0x604   :  { %v1011_v40 = vsel %vm995_vm5, %v4721_v38, 0.0 }
 0x605   :  { %1012 = vadd.xlane.f32.xlu1 %v1011_v40 }
 0x68a   :  { %v1010_v41 = vpop.xlane.xlu0 %1009 }
 0x68b   :  { %4722 = vrcp.f32 %v1010_v41 }
 0x692   :  { %v1013_v44 = vpop.xlane.xlu1 %1012 }
 0x693   :  { %4724 = vrcp.f32 %v1013_v44 }
 0x695   :  { %v4723_v45 = vpop.eup %4722 }
 0x696   :  { %v1015_v47 = vmul.f32 %v4723_v45, %v4719_v35 }
 0x698   :  { %v1018_v49 = vpack.c.bf16 %v1015_v47, %v1015_v47 }
 0x69a   :  { %4287 = vmatmul.mubr.msk.bf16.vlgmr.msra.gmra.mrb[20].mxu1 %vm995_vm5, %v1018_v49 }
 0x69b   :  { %4291 = vmatpush3.bf16.msra.mxu1 %v1073_v50  ;;  %4292 = vmatprep.mubr.msk.bf16.mxu1 %vm4797_vm1, %v4796_v56 }
 0x69c   :  { %4308 = vmatprep.subr.bf16.mxu1 %v4796_v56 }
 0x69d   :  { %v4725_v51 = vpop.eup %4724 }
 0x69e   :  { %v1017_v52 = vmul.f32 %v4725_v51, %v4721_v38 }
 0x6a0   :  { %v1019_v54 = vpack.c.bf16 %v1017_v52, %v1017_v52 }
 0x6a2   :  { %4293 = vmatmul.mubr.msk.bf16.vlgmr.msra.gmra.mrb[24].mxu1 %vm995_vm5, %v1019_v54 }
 0x6a3   :  { %4309 = vmatpush3.bf16.msra.mxu1 %v4602_v53  ;;  %4316 = vmatprep.mubr.msk.bf16.mxu1 %vm4797_vm1, %v4796_v56 }
 0x6a4   :  { %4310 = vmatprep.subr.bf16.mxu1 %v4796_v56 }
 0x6a7   :  { %4311 = vmatpush3.bf16.msra.mxu1 %v4603_v36 }
 0x6a8   :  { %4312 = vmatprep.subr.bf16.mxu1 %v4796_v56 }
 0x6ab   :  { %4313 = vmatpush3.bf16.msra.mxu1 %v4604_v55 }
 0x6ac   :  { %4314 = vmatprep.subr.bf16.mxu1 %v4796_v56 }
 0x6af   :  { %4315 = vmatpush3.bf16.msra.mxu1 %v4605_v57  ;;  %v4606_v57 = vld [vmem:[%s5800_s1 + $0x180] sm:$0xff]  }
 0x6b0   :  { %4332 = vmatprep.subr.bf16.mxu1 %v4796_v56 }
 0x6b2   :  { %4317 = vmatmul.mubr.msk.bf16.vlgmr.msra.gmra.mrb[28].mxu1 %vm576_vm0, %v5073_v18  ;;  %v3859_v18 = vld [vmem:[%s5802_s4 + $0x1c] ss:$0 sm:$0xff] }
 0x6b3   :  { %4334 = vmatprep.mubr.msk.bf16.mxu1 %vm4797_vm1, %v4796_v56 }
 0x76d   :  { %v5210_v58 = vpop.f32.mrb[20].mxu1 }
 0x76e   :  { %v4288_v59 = vpop.f32.mrb[21].mxu1 }
 0x76f   :  { %v1066_v60 = vpop.f32.mrb[22].mxu1 }
 0x770   :  { %v4289_v61 = vpop.f32.mrb[23].mxu1  ;;  %v4607_v60 = vld [vmem:[%s5800_s1 + $0x188] sm:$0xff]  }
 0x771   :  { %v4608_v61 = vld [vmem:[%s5800_s1 + $0x190] sm:$0xff]  }
 0x775   :  { %v5212_v62 = vpop.f32.mrb[24].mxu1 }
 0x776   :  { %v1115_v63 = vpack.c.bf16 %v5212_v62, %v5210_v58  ;;  %v4294_v0 = vpop.f32.mrb[25].mxu1 }
 0x777   :  { %v1112_v1 = vpop.f32.mrb[26].mxu1  ;;  %v4609_v0 = vld [vmem:[%s5800_s1 + $0x198] sm:$0xff]  }
 0x778   :  { %v4295_v2 = vpop.f32.mrb[27].mxu1 }
 0x785   :  { %v1269_v3 = vpop.f32.mrb[28].mxu1 }
 0x786   :  { %v1270_v4 = vadd.f32 %v3859_v18, %v1269_v3  ;;  %v4318_v5 = vpop.f32.mrb[29].mxu1 }
 0x787   :  { %v1272_v7 = vpop.f32.mrb[30].mxu1 }
 0x788   :  { %v1356_v8 = vpack.c.bf16 %v1270_v4, %v1270_v4  ;;  %v4319_v9 = vpop.f32.mrb[31].mxu1  ;;  %v1273_v13 = vadd.f32 %v3859_v18, %v1272_v7 }
 0x78a   :  { %v1362_v12 = vsel %vm898_vm2, %v1356_v8, 0  ;;  %v1357_v16 = vpack.c.bf16 %v1273_v13, %v1273_v13 }
 0x78b   :  { %4333 = vmatpush3.bf16.xpose.msra.mxu1 %v1362_v12 }
 0x78c   :  { %4338 = vmatprep.subr.bf16.mxu1 %v4796_v56  ;;  %v1408_v19 = vsel %vm898_vm2, %v1357_v16, 0  ;;  %v3881_v16 = vld [vmem:[%s5802_s4 + $0xc] ss:$0 sm:$0xff] }
 0x792   :  { %4335 = vmatmul.mubr.msk.bf16.vlgmr.msra.gmra.mrb[32].mxu1 %vm898_vm2, %v1354_v17 }
 0x793   :  { %4339 = vmatpush3.bf16.xpose.msra.mxu1 %v1408_v19  ;;  %4340 = vmatprep.mubr.msk.bf16.mxu1 %vm4797_vm1, %v4796_v56 }
 0x794   :  { %4350 = vmatprep.subr.bf16.mxu1 %v4796_v56 }
 0x79a   :  { %4341 = vmatmul.mubr.msk.bf16.vlgmr.msra.gmra.mrb[36].mxu1 %vm898_vm2, %v1355_v42 }
 0x79b   :  { %4351 = vmatpush3.bf16.msra.mxu1 %v1530_v22  ;;  %4352 = vmatprep.mubr.msk.bf16.mxu1 %vm4797_vm1, %v4796_v56 }
 0x79c   :  { %4364 = vmatprep.subr.bf16.mxu1 %v4796_v56 }
 0x865   :  { %v1398_v23 = vpop.f32.mrb[32].mxu1 }
 0x866   :  { %v1450_v24 = vmul.f32 0.17677669, %v1398_v23  ;;  %v4336_v25 = vpop.f32.mrb[33].mxu1 }
 0x867   :  { %v1401_v48 = vpop.f32.mrb[34].mxu1 }
 0x868   :  { %v4337_v26 = vpop.f32.mrb[35].mxu1  ;;  %v1452_v27 = vadd.f32 %v1450_v24, %v5172_v14 }
 0x86a   :  { %v1454_v6 = vsel %vm995_vm5, %v1452_v27, -inf }
 0x86b   :  { %1455 = vmax.xlane.f32.xlu0 %v1454_v6 }
 0x86d   :  { %v1444_v28 = vpop.f32.mrb[36].mxu1 }
 0x86e   :  { %v1451_v29 = vmul.f32 0.17677669, %v1444_v28  ;;  %v4342_v30 = vpop.f32.mrb[37].mxu1 }
 0x86f   :  { %v1447_v31 = vpop.f32.mrb[38].mxu1 }
 0x870   :  { %v4343_v32 = vpop.f32.mrb[39].mxu1  ;;  %v1453_v33 = vadd.f32 %v1451_v29, %v5172_v14 }
 0x871   :  { %v4612_v32 = vld [vmem:[%s5804_s3 + $0x4] ss:$8 sps:$4 sm:$0xff]  }
 0x872   :  { %v1457_v34 = vsel %vm995_vm5, %v1453_v33, -inf }
 0x873   :  { %1458 = vmax.xlane.f32.xlu1 %v1457_v34  ;;  %v4615_v34 = vld [vmem:[%s5804_s3 + $0x14] ss:$8 sps:$4 sm:$0xff]  }
 0x8f8   :  { %v1456_v35 = vpop.xlane.xlu0 %1455 }
 0x8f9   :  { %v1460_v37 = vsub.f32 %v1452_v27, %v1456_v35  ;;  %v4613_v35 = vld [vmem:[%s5804_s3 + $0x10] ss:$8 sps:$4 sm:$0xff]  }
 0x8fb   :  { %v1462_v38 = vmul.f32 1.442695, %v1460_v37  ;;  %v4618_v37 = vld [vmem:[%s5804_s3 + $0x24] ss:$8 sps:$4 sm:$0xff]  }
 0x8fd   :  { %4726 = vpow2.f32 %v1462_v38  ;;  %v4616_v38 = vld [vmem:[%s5804_s3 + $0x20] ss:$8 sps:$4 sm:$0xff]  }
 0x900   :  { %v1459_v40 = vpop.xlane.xlu1 %1458 }
 0x901   :  { %v1461_v41 = vsub.f32 %v1453_v33, %v1459_v40  ;;  %v4610_v33 = vld [vmem:[%s5804_s3] ss:$8 sps:$4 sm:$0xff]   ;;  %v4619_v40 = vld [vmem:[%s5804_s3 + $0x30] ss:$8 sps:$4 sm:$0xff]  }
 0x903   :  { %v1464_v44 = vmul.f32 1.442695, %v1461_v41  ;;  %v4621_v41 = vld [vmem:[%s5804_s3 + $0x34] ss:$8 sps:$4 sm:$0xff]  }
 0x905   :  { %4728 = vpow2.f32 %v1464_v44  ;;  %v4799_v44 = vmov 0  }
 0x907   :  { %v4727_v45 = vpop.eup %4726 }
 0x908   :  { %v1466_v46 = vsel %vm995_vm5, %v4727_v45, 0.0 }
 0x909   :  { %1467 = vadd.xlane.f32.xlu0 %v1466_v46 }
 0x90f   :  { %v4729_v47 = vpop.eup %4728 }
 0x910   :  { %v1469_v49 = vsel %vm995_vm5, %v4729_v47, 0.0 }
 0x911   :  { %1470 = vadd.xlane.f32.xlu1 %v1469_v49 }
 0x996   :  { %v1468_v50 = vpop.xlane.xlu0 %1467 }
 0x997   :  { %4730 = vrcp.f32 %v1468_v50 }
 0x99e   :  { %v1471_v51 = vpop.xlane.xlu1 %1470 }
 0x99f   :  { %4732 = vrcp.f32 %v1471_v51 }
 0x9a1   :  { %v4731_v52 = vpop.eup %4730 }
 0x9a2   :  { %v1473_v53 = vmul.f32 %v4731_v52, %v4727_v45 }
 0x9a4   :  { %v1476_v54 = vpack.c.bf16 %v1473_v53, %v1473_v53  ;;  %v3882_v53 = vld [vmem:[%s5802_s4 + $0xd] ss:$0 sm:$0xff] }
 0x9a6   :  { %4347 = vmatmul.mubr.msk.bf16.vlgmr.msra.gmra.mrb[20].mxu0 %vm995_vm5, %v1476_v54 }
 0x9a7   :  { %4360 = vmatprep.mubr.msk.bf16.mxu0 %vm4797_vm1, %v4796_v56  ;;  %4357 = vmatpush3.bf16.msra.mxu0 %v4608_v61 }
 0x9a8   :  { %4358 = vmatprep.subr.bf16.mxu0 %v4796_v56 }
 0x9a9   :  { %v4733_v36 = vpop.eup %4732 }
 0x9aa   :  { %v1475_v55 = vmul.f32 %v4733_v36, %v4729_v47 }
 0x9ab   :  { %4359 = vmatpush3.bf16.msra.mxu0 %v4609_v0 }
 0x9ac   :  { %v1477_v59 = vpack.c.bf16 %v1475_v55, %v1475_v55  ;;  %1802 = vmatprep.subr.bf16.mxu0 %v4612_v32 }
 0x9ae   :  { %4353 = vmatmul.mubr.msk.bf16.vlgmr.msra.gmra.mrb[40].mxu1 %vm995_vm5, %v1477_v59  ;;  %v3883_v59 = vld [vmem:[%s5802_s4 + $0xe] ss:$0 sm:$0xff] }
 0x9af   :  { %4365 = vmatpush3.bf16.msra.mxu1 %v4606_v57  ;;  %4368 = vmatprep.mubr.msk.bf16.mxu1 %vm4797_vm1, %v4796_v56 }
 0x9b0   :  { %4366 = vmatprep.subr.bf16.mxu1 %v4796_v56 }
 0x9b3   :  { %4367 = vmatpush3.bf16.msra.mxu1 %v4607_v60 }
 0x9b6   :  { %4369 = vmatmul.mubr.msk.bf16.vlgmr.msra.gmra.mrb[44].mxu1 %vm898_vm2, %v1115_v63 }
 0xa79   :  { %v1520_v1 = vpop.f32.mrb[20].mxu0 }
 0xa7a   :  { %v4348_v2 = vpop.f32.mrb[21].mxu0 }
 0xa7b   :  { %v1523_v18 = vpop.f32.mrb[22].mxu0  ;;  %v4622_v2 = vld [vmem:[%s5800_s1 + $0x200] sm:$0xff]  }
 0xa7c   :  { %v4349_v3 = vpop.f32.mrb[23].mxu0  ;;  %v4623_v18 = vld [vmem:[%s5800_s1 + $0x1c0] sm:$0xff]   ;;  %4135 = vmatprep.subr.bf16.mxu1 %v4622_v2 }
 0xa7d   :  { %4136 = vmatpush3.bf16.msra.mxu1 %v4623_v18  ;;  %v4624_v3 = vld [vmem:[%s5800_s1 + $0x208] sm:$0xff]  }
 0xa7e   :  { %4137 = vmatprep.subr.bf16.mxu1 %v4624_v3  ;;  %v3913_v3 = vld [vmem:[%s5802_s4 + $0xf] ss:$0 sm:$0xff] }
 0xa81   :  { %v1566_v4 = vpop.f32.mrb[40].mxu1 }
 0xa82   :  { %v1572_v58 = vpack.c.bf16 %v1566_v4, %v1520_v1  ;;  %v4354_v62 = vpop.f32.mrb[41].mxu1  ;;  %v4625_v4 = vld [vmem:[%s5800_s1 + $0x1c8] sm:$0xff]  }
 0xa83   :  { %v1569_v63 = vpop.f32.mrb[42].mxu1  ;;  %4138 = vmatpush3.bf16.msra.mxu1 %v4625_v4  ;;  %v4627_v62 = vld [vmem:[%s5800_s1 + $0x1d0] sm:$0xff]  }
 0xa84   :  { %v4355_v5 = vpop.f32.mrb[43].mxu1  ;;  %4361 = vmatmul.mubr.msk.bf16.vlgmr.msra.gmra.mrb[24].mxu0 %vm898_vm2, %v1572_v58  ;;  %v4626_v58 = vld [vmem:[%s5800_s1 + $0x210] sm:$0xff]   ;;  %v4628_v63 = vld [vmem:[%s5800_s1 + $0x218] sm:$0xff]  }
 0xa85   :  { %1803 = vmatpush1.bf16.msra.mxu0 %v4610_v33  ;;  %1834 = vmatprep.mubr.bf16.mxu0 %v4799_v44  ;;  %v4629_v5 = vld [vmem:[%s5800_s1 + $0x1d8] sm:$0xff]  }
 0xa86   :  { %1804 = vmatprep.subr.bf16.mxu0 %v4615_v34  ;;  %4139 = vmatprep.subr.bf16.mxu1 %v4626_v58 }
 0xa87   :  { %4140 = vmatpush3.bf16.msra.mxu1 %v4627_v62 }
 0xa88   :  { %4141 = vmatprep.subr.bf16.mxu1 %v4628_v63 }
 0xa89   :  { %v1682_v7 = vpop.f32.mrb[44].mxu1  ;;  %1805 = vmatpush1.bf16.msra.mxu0 %v4613_v35 }
 0xa8a   :  { %v4370_v8 = vpop.f32.mrb[45].mxu1  ;;  %1806 = vmatprep.subr.bf16.mxu0 %v4618_v37 }
 0xa8b   :  { %v1685_v9 = vpop.f32.mrb[46].mxu1  ;;  %4142 = vmatpush3.bf16.msra.mxu1 %v4629_v5  ;;  %v4631_v8 = vld [vmem:[%s5800_s1 + $0x1e0] sm:$0xff]  }
 0xa8c   :  { %v4371_v11 = vpop.f32.mrb[47].mxu1 }
 0xa8d   :  { %1807 = vmatpush1.bf16.msra.mxu0 %v4616_v38  ;;  %v4633_v11 = vld [vmem:[%s5800_s1 + $0x1e8] sm:$0xff]  }
 0xa8e   :  { %1808 = vmatprep.subr.bf16.mxu0 %v4621_v41 }
 0xa91   :  { %1809 = vmatpush1.bf16.msra.mxu0 %v4619_v40 }
 0xa92   :  { %4372 = vmatprep.subr.bf16.mxu0 %v4796_v56 }
 0xb57   :  { %v1626_v12 = vpop.f32.mrb[24].mxu0 }
 0xb58   :  { %v1683_v13 = vadd.f32 %v1682_v7, %v1626_v12  ;;  %v4362_v15 = vpop.f32.mrb[25].mxu0  ;;  %v4630_v7 = vld [vmem:[%s5800_s1 + $0x220] sm:$0xff]   ;;  %v4634_v12 = vld [vmem:[%s5800_s1 + $0x230] sm:$0xff]  }
 0xb59   :  { %v1629_v17 = vpop.f32.mrb[26].mxu0  ;;  %4143 = vmatprep.subr.bf16.mxu1 %v4630_v7  ;;  %v4636_v15 = vld [vmem:[%s5800_s1 + $0x238] sm:$0xff]  }
 0xb5a   :  { %v1689_v19 = vadd.f32 %v1683_v13, %v5011_v39  ;;  %v1686_v20 = vadd.f32 %v1685_v9, %v1629_v17  ;;  %v4363_v21 = vpop.f32.mrb[27].mxu0  ;;  %4144 = vmatpush3.bf16.msra.mxu1 %v4631_v8  ;;  %v4632_v9 = vld [vmem:[%s5800_s1 + $0x228] sm:$0xff]   ;;  %v4635_v13 = vld [vmem:[%s5800_s1 + $0x1f0] sm:$0xff]   ;;  %v5371_v17 = vshrl.u32 %v24_v10, 7 }
 0xb5b   :  { %4145 = vmatprep.subr.bf16.mxu1 %v4632_v9 }
 0xb5c   :  { %v5273_v42 = vadd.f32 %v3881_v16, %v1689_v19  ;;  %v1690_v22 = vadd.f32 %v1686_v20, %v5015_v43  ;;  %v5374_v19 = vsub.s32 0, %v5371_v17  ;;  %v1747_v20 = vld [vmem:[%s5805_s5] ss:$4 sm:$0x3]  ;;  %v5380_v21 = vsub.s32 1, %v5371_v17 }
 0xb5e   :  { %v5276_v23 = vadd.f32 %v3881_v16, %v1690_v22  ;;  %v1700_v24 = vsel %vm576_vm0, %v5273_v42, 0.0  ;;  %4146 = vmatpush3.bf16.msra.mxu1 %v4633_v11  ;;  %v4637_v16 = vld [vmem:[%s5800_s1 + $0x1f8] sm:$0xff]   ;;  %v1752_v22 = vrot.slane %v1747_v20, %v5374_v19 }
 0xb5f   :  { %1701 = vadd.xlane.f32.xlu0 %v1700_v24  ;;  %4147 = vmatprep.subr.bf16.mxu1 %v4634_v12  ;;  %v1756_v24 = vrot.slane %v1747_v20, %v5380_v21 }
 0xb60   :  { %v1703_v25 = vsel %vm576_vm0, %v5276_v23, 0.0 }
 0xb61   :  { %1704 = vadd.xlane.f32.xlu1 %v1703_v25 }
 0xb62   :  { %4148 = vmatpush3.bf16.msra.mxu1 %v4635_v13 }
 0xb63   :  { %4149 = vmatprep.subr.bf16.mxu1 %v4636_v15 }
 0xb66   :  { %4150 = vmatpush3.bf16.msra.mxu1 %v4637_v16 }
 0xb67   :  { %4396 = vmatprep.subr.bf16.mxu1 %v4796_v56 }
 0xbec   :  { %v1702_v48 = vpop.xlane.xlu0 %1701 }
 0xbed   :  { %v1706_v26 = vmul.f32 0.015625, %v1702_v48 }
 0xbee   :  { %v1705_v27 = vpop.xlane.xlu1 %1704 }
 0xbef   :  { %v1708_v39 = vsub.f32 %v5273_v42, %v1706_v26  ;;  %v1707_v6 = vmul.f32 0.015625, %v1705_v27 }
 0xbf1   :  { %v1709_v28 = vsub.f32 %v5276_v23, %v1707_v6  ;;  %v1710_v29 = vmul.f32 %v1708_v39, %v1708_v39 }
 0xbf3   :  { %v1712_v43 = vsel %vm576_vm0, %v1710_v29, 0.0  ;;  %v1711_v30 = vmul.f32 %v1709_v28, %v1709_v28 }
 0xbf4   :  { %1713 = vadd.xlane.f32.xlu0 %v1712_v43 }
 0xbf5   :  { %v1715_v31 = vsel %vm576_vm0, %v1711_v30, 0.0 }
 0xbf6   :  { %1716 = vadd.xlane.f32.xlu1 %v1715_v31 }
 0xc81   :  { %v1714_v45 = vpop.xlane.xlu0 %1713 }
 0xc82   :  { %v1718_v46 = vmul.f32 0.015625, %v1714_v45 }
 0xc83   :  { %v1717_v47 = vpop.xlane.xlu1 %1716 }
 0xc84   :  { %v1720_v49 = vadd.f32 1e-05, %v1718_v46  ;;  %v1719_v50 = vmul.f32 0.015625, %v1717_v47 }
 0xc86   :  { %4734 = vrsqrt.f32 %v1720_v49  ;;  %v1721_v51 = vadd.f32 1e-05, %v1719_v50 }
 0xc88   :  { %4736 = vrsqrt.f32 %v1721_v51 }
 0xc90   :  { %v4735_v52 = vpop.eup %4734 }
 0xc91   :  { %v1724_v54 = vmul.f32 %v4735_v52, %v1708_v39 }
 0xc92   :  { %v4737_v36 = vpop.eup %4736 }
 0xc93   :  { %v1730_v55 = vmul.f32 %v3882_v53, %v1724_v54  ;;  %v1725_v57 = vmul.f32 %v4737_v36, %v1709_v28 }
 0xc95   :  { %v1731_v60 = vmul.f32 %v3882_v53, %v1725_v57  ;;  %v1736_v61 = vadd.f32 %v3883_v59, %v1730_v55 }
 0xc97   :  { %v1737_v0 = vadd.f32 %v3883_v59, %v1731_v60 }
 0xc99   :  { %v1738_v1 = vpack.c.bf16 %v1737_v0, %v1736_v61 }
 0xc9b   :  { %3892 = vmatmul.mubr.msk.bf16.vlgmr.msra.gmra.mrb[28].mxu0 %vm576_vm0, %v1738_v1 }
 0xc9c   :  { %4380 = vmatprep.mubr.msk.bf16.mxu0 %vm4797_vm1, %v4796_v56 }
 0xd6e   :  { %v1836_v25 = vpop.f32.mrb[28].mxu0 }
 0xd6f   :  { %v1837_v48 = vadd.f32 %v1836_v25, %v1752_v22  ;;  %v1838_v26 = vpop.f32.mrb[29].mxu0  ;;  %v4638_v25 = vld [vmem:[%s5803_s2 + $0xc0] sm:$0xff]  }
 0xd70   :  { %v1839_v27 = vadd.f32 %v1838_v26, %v1756_v24  ;;  %v1840_v39 = vpop.f32.mrb[30].mxu0  ;;  %4373 = vmatpush3.bf16.msra.mxu0 %v4638_v25  ;;  %v4640_v26 = vld [vmem:[%s5803_s2 + $0xc8] sm:$0xff]  }
 0xd71   :  { %v3893_v6 = vmul.f32 -1.702, %v1837_v48  ;;  %v1841_v28 = vadd.f32 %v1840_v39, %v1752_v22  ;;  %v1842_v29 = vpop.f32.mrb[31].mxu0  ;;  %4374 = vmatprep.subr.bf16.mxu0 %v4796_v56  ;;  %v4642_v39 = vld [vmem:[%s5803_s2 + $0xd0] sm:$0xff]  }
 0xd72   :  { %v3894_v43 = vmul.f32 -1.702, %v1839_v27  ;;  %v1843_v30 = vadd.f32 %v1842_v29, %v1756_v24  ;;  %v4645_v29 = vld [vmem:[%s5803_s2 + $0x118] sm:$0xff]  }
 0xd73   :  { %v1853_v31 = vmul.f32 1.442695, %v3893_v6  ;;  %v3895_v32 = vmul.f32 -1.702, %v1841_v28  ;;  %v4643_v6 = vld [vmem:[%s5803_s2 + $0x110] sm:$0xff]  }
 0xd74   :  { %v1855_v33 = vmul.f32 1.442695, %v3894_v43  ;;  %v3896_v34 = vmul.f32 -1.702, %v1843_v30  ;;  %4375 = vmatpush3.bf16.msra.mxu0 %v4640_v26 }
 0xd75   :  { %4738 = vpow2.f32 %v1853_v31  ;;  %v1857_v35 = vmul.f32 1.442695, %v3895_v32  ;;  %4376 = vmatprep.subr.bf16.mxu0 %v4796_v56 }
 0xd76   :  { %4740 = vpow2.f32 %v1855_v33  ;;  %v1859_v37 = vmul.f32 1.442695, %v3896_v34 }
 0xd77   :  { %4742 = vpow2.f32 %v1857_v35 }
 0xd78   :  { %4744 = vpow2.f32 %v1859_v37  ;;  %4377 = vmatpush3.bf16.msra.mxu0 %v4642_v39  ;;  %v3914_v37 = vld [vmem:[%s5802_s4 + $0x10] ss:$0 sm:$0xff] }
 0xd79   :  { %4378 = vmatprep.subr.bf16.mxu0 %v4796_v56 }
 0xd7f   :  { %v4739_v38 = vpop.eup %4738 }
 0xd80   :  { %v4741_v40 = vpop.eup %4740  ;;  %v1861_v41 = vadd.f32 1.0, %v4739_v38 }
 0xd81   :  { %v4743_v45 = vpop.eup %4742  ;;  %v1862_v46 = vadd.f32 1.0, %v4741_v40 }
 0xd82   :  { %v4745_v47 = vpop.eup %4744  ;;  %4746 = vrcp.f32 %v1861_v41  ;;  %v1863_v49 = vadd.f32 1.0, %v4743_v45 }
 0xd83   :  { %4748 = vrcp.f32 %v1862_v46  ;;  %v1864_v50 = vadd.f32 1.0, %v4745_v47  ;;  %v3915_v46 = vld [vmem:[%s5802_s4 + $0x11] ss:$0 sm:$0xff] }
 0xd84   :  { %4750 = vrcp.f32 %v1863_v49 }
 0xd85   :  { %4752 = vrcp.f32 %v1864_v50 }
 0xd8c   :  { %v4747_v51 = vpop.eup %4746 }
 0xd8d   :  { %v4749_v52 = vpop.eup %4748  ;;  %v1873_v36 = vmul.f32 %v4747_v51, %v1837_v48  ;;  %v4639_v48 = vld [vmem:[%s5803_s2 + $0x100] sm:$0xff]  }
 0xd8e   :  { %v4751_v53 = vpop.eup %4750  ;;  %v1874_v57 = vmul.f32 %v4749_v52, %v1839_v27  ;;  %v4641_v27 = vld [vmem:[%s5803_s2 + $0x108] sm:$0xff]   ;;  %v4646_v51 = vld [vmem:[%s5803_s2 + $0xe0] sm:$0xff]  }
 0xd8f   :  { %v4753_v54 = vpop.eup %4752  ;;  %v1875_v55 = vmul.f32 %v4751_v53, %v1841_v28  ;;  %v4644_v28 = vld [vmem:[%s5803_s2 + $0xd8] sm:$0xff]   ;;  %v4647_v53 = vld [vmem:[%s5803_s2 + $0xe8] sm:$0xff]  }
 0xd90   :  { %v1876_v59 = vmul.f32 %v4753_v54, %v1843_v30  ;;  %4379 = vmatpush3.bf16.msra.mxu0 %v4644_v28  ;;  %v4648_v54 = vld [vmem:[%s5803_s2 + $0xf0] sm:$0xff]  }
 0xd91   :  { %v1877_v60 = vpack.c.bf16 %v1875_v55, %v1873_v36  ;;  %4384 = vmatprep.subr.bf16.mxu0 %v4796_v56  ;;  %v4649_v36 = vld [vmem:[%s5803_s2 + $0xf8] sm:$0xff]  }
 0xd92   :  { %v1878_v61 = vpack.c.bf16 %v1876_v59, %v1874_v57 }
 0xd94   :  { %2039 = vmatprep.mubr.bf16.mxu1 %v1878_v61 }
 0xd95   :  { %2040 = vmatmul.mubr.bf16.vlgmr.msra.gmra.mrb[48].mxu1 %v1877_v60 }
 0xd96   :  { %4404 = vmatprep.mubr.msk.bf16.mxu1 %vm4797_vm1, %v4796_v56  ;;  %4397 = vmatpush3.bf16.msra.mxu1 %v4639_v48 }
 0xd97   :  { %4398 = vmatprep.subr.bf16.mxu1 %v4796_v56 }
 0xd9a   :  { %4399 = vmatpush3.bf16.msra.mxu1 %v4641_v27 }
 0xd9b   :  { %4400 = vmatprep.subr.bf16.mxu1 %v4796_v56 }
 0xd9e   :  { %4401 = vmatpush3.bf16.msra.mxu1 %v4643_v6 }
 0xd9f   :  { %4402 = vmatprep.subr.bf16.mxu1 %v4796_v56 }
 0xda2   :  { %4403 = vmatpush3.bf16.msra.mxu1 %v4645_v29 }
 0xda3   :  { %4414 = vmatprep.subr.bf16.mxu1 %v4796_v56 }
 0xe68   :  { %v4151_v0 = vpop.f32.mrb[48].mxu1 }
 0xe69   :  { %v4152_v1 = vpop.f32.mrb[49].mxu1 }
 0xe6a   :  { %v4153_v2 = vadd.f32 %v4152_v1, %v4151_v0  ;;  %v4154_v18 = vpop.f32.mrb[50].mxu1 }
 0xe6b   :  { %v4155_v4 = vpop.f32.mrb[51].mxu1 }
 0xe6c   :  { %v2048_v58 = vadd.f32 %v4153_v2, %v5273_v42  ;;  %v4156_v62 = vadd.f32 %v4155_v4, %v4154_v18  ;;  %v3922_v18 = vld [vmem:[%s5802_s4 + $0x1f] ss:$0 sm:$0xff] }
 0xe6e   :  { %v5390_v63 = vadd.f32 %v3913_v3, %v2048_v58  ;;  %v2049_v5 = vadd.f32 %v4156_v62, %v5276_v23  ;;  %v3928_v62 = vld [vmem:[%s5802_s4 + $0x20] ss:$0 sm:$0xff] }
 0xe70   :  { %v5393_v7 = vadd.f32 %v3913_v3, %v2049_v5  ;;  %v2059_v8 = vsel %vm576_vm0, %v5390_v63, 0.0 }
 0xe71   :  { %2060 = vadd.xlane.f32.xlu0 %v2059_v8 }
 0xe72   :  { %v2062_v9 = vsel %vm576_vm0, %v5393_v7, 0.0 }
 0xe73   :  { %2063 = vadd.xlane.f32.xlu1 %v2062_v9 }
 0xefe   :  { %v2061_v11 = vpop.xlane.xlu0 %2060 }
 0xeff   :  { %v2065_v12 = vmul.f32 0.015625, %v2061_v11 }
 0xf00   :  { %v2064_v13 = vpop.xlane.xlu1 %2063 }
 0xf01   :  { %v2067_v42 = vsub.f32 %v5390_v63, %v2065_v12  ;;  %v2066_v15 = vmul.f32 0.015625, %v2064_v13  ;;  %v3916_v12 = vld [vmem:[%s5802_s4 + $0x1e] ss:$0 sm:$0xff] }
 0xf03   :  { %v2068_v16 = vsub.f32 %v5393_v7, %v2066_v15  ;;  %v2069_v20 = vmul.f32 %v2067_v42, %v2067_v42 }
 0xf05   :  { %v2071_v23 = vsel %vm576_vm0, %v2069_v20, 0.0  ;;  %v2070_v22 = vmul.f32 %v2068_v16, %v2068_v16 }
 0xf06   :  { %2072 = vadd.xlane.f32.xlu0 %v2071_v23 }
 0xf07   :  { %v2074_v24 = vsel %vm576_vm0, %v2070_v22, 0.0 }
 0xf08   :  { %2075 = vadd.xlane.f32.xlu1 %v2074_v24 }
 0xf93   :  { %v2073_v43 = vpop.xlane.xlu0 %2072 }
 0xf94   :  { %v2077_v30 = vmul.f32 0.015625, %v2073_v43 }
 0xf95   :  { %v2076_v31 = vpop.xlane.xlu1 %2075 }
 0xf96   :  { %v2079_v32 = vadd.f32 1e-05, %v2077_v30  ;;  %v2078_v33 = vmul.f32 0.015625, %v2076_v31 }
 0xf98   :  { %4754 = vrsqrt.f32 %v2079_v32  ;;  %v2080_v34 = vadd.f32 1e-05, %v2078_v33 }
 0xf9a   :  { %4756 = vrsqrt.f32 %v2080_v34 }
 0xfa2   :  { %v4755_v35 = vpop.eup %4754 }
 0xfa3   :  { %v2083_v38 = vmul.f32 %v4755_v35, %v2067_v42 }
 0xfa4   :  { %v4757_v40 = vpop.eup %4756 }
 0xfa5   :  { %v2089_v41 = vmul.f32 %v3914_v37, %v2083_v38  ;;  %v2084_v45 = vmul.f32 %v4757_v40, %v2068_v16 }
 0xfa7   :  { %v2090_v47 = vmul.f32 %v3914_v37, %v2084_v45  ;;  %v2095_v49 = vadd.f32 %v3915_v46, %v2089_v41 }
 0xfa9   :  { %v2096_v50 = vadd.f32 %v3915_v46, %v2090_v47 }
 0xfab   :  { %v5444_v52 = vpack.c.bf16 %v2096_v50, %v2095_v49 }
 0xfad   :  { %4381 = vmatmul.mubr.msk.bf16.vlgmr.msra.gmra.mrb[32].mxu0 %vm576_vm0, %v5444_v52  ;;  %4405 = vmatmul.mubr.msk.bf16.vlgmr.msra.gmra.mrb[52].mxu1 %vm576_vm0, %v5444_v52 }
 0xfae   :  { %4385 = vmatpush3.bf16.msra.mxu0 %v4646_v51  ;;  %4392 = vmatprep.mubr.msk.bf16.mxu0 %vm4797_vm1, %v4796_v56 }
 0xfaf   :  { %4386 = vmatprep.subr.bf16.mxu0 %v4796_v56  ;;  %4416 = vmatprep.mubr.msk.bf16.mxu1 %vm4797_vm1, %v4796_v56 }
 0xfb2   :  { %4387 = vmatpush3.bf16.msra.mxu0 %v4647_v53 }
 0xfb3   :  { %4388 = vmatprep.subr.bf16.mxu0 %v4796_v56 }
 0xfb6   :  { %4389 = vmatpush3.bf16.msra.mxu0 %v4648_v54 }
 0xfb7   :  { %4390 = vmatprep.subr.bf16.mxu0 %v4796_v56 }
 0xfba   :  { %4391 = vmatpush3.bf16.msra.mxu0 %v4649_v36 }
 0xfbb   :  { %4408 = vmatprep.subr.bf16.mxu0 %v4796_v56 }
 0xfbd   :  { %4393 = vmatmul.mubr.msk.bf16.vlgmr.msra.gmra.mrb[36].mxu0 %vm576_vm0, %v5444_v52 }
 0xfbe   :  { %4410 = vmatprep.mubr.msk.bf16.mxu0 %vm4797_vm1, %v4796_v56 }
0x1080   :  { %v2172_v55 = vpop.f32.mrb[32].mxu0  ;;  %v2328_v57 = vpop.f32.mrb[52].mxu1 }
0x1081   :  { %v4382_v59 = vpop.f32.mrb[33].mxu0  ;;  %v4406_v60 = vpop.f32.mrb[53].mxu1  ;;  %v2329_v13 = vadd.f32 %v3928_v62, %v2328_v57  ;;  %v2173_v16 = vadd.f32 %v3916_v12, %v2172_v55 }
0x1082   :  { %v2175_v61 = vpop.f32.mrb[34].mxu0  ;;  %v2331_v0 = vpop.f32.mrb[54].mxu1 }
0x1083   :  { %v4383_v1 = vpop.f32.mrb[35].mxu0  ;;  %v4407_v2 = vpop.f32.mrb[55].mxu1  ;;  %v2332_v20 = vadd.f32 %v3928_v62, %v2331_v0  ;;  %v2459_v22 = vpack.c.bf16 %v2329_v13, %v2329_v13  ;;  %v2176_v24 = vadd.f32 %v3916_v12, %v2175_v61  ;;  %v2335_v25 = vpack.c.bf16 %v2173_v16, %v2173_v16  ;;  %v4653_v62 = vld [vmem:[%s5803_s2 + $0x148] sm:$0xff]   ;;  %v4658_v12 = vld [vmem:[%s5803_s2 + $0x160] sm:$0xff]  }
0x1084   :  { %v4650_v1 = vld [vmem:[%s5803_s2 + $0x120] sm:$0xff]   ;;  %v4659_v13 = vld [vmem:[%s5803_s2 + $0x168] sm:$0xff]  }
0x1085   :  { %v2460_v48 = vpack.c.bf16 %v2332_v20, %v2332_v20  ;;  %v2465_v26 = vsel %vm1025_vm3, %v2459_v22, 0  ;;  %v2336_v27 = vpack.c.bf16 %v2176_v24, %v2176_v24 }
0x1087   :  { %v2511_v39 = vsel %vm1025_vm3, %v2460_v48, 0 }
0x1090   :  { %v2250_v3 = vpop.f32.mrb[36].mxu0 }
0x1091   :  { %v2251_v4 = vadd.f32 %v3922_v18, %v2250_v3  ;;  %v4394_v58 = vpop.f32.mrb[37].mxu0  ;;  %v4651_v3 = vld [vmem:[%s5803_s2 + $0x140] sm:$0xff]  }
0x1092   :  { %v2253_v5 = vpop.f32.mrb[38].mxu0  ;;  %v4652_v58 = vld [vmem:[%s5803_s2 + $0x128] sm:$0xff]  }
0x1093   :  { %v2337_v8 = vpack.c.bf16 %v2251_v4, %v2251_v4  ;;  %v2254_v9 = vadd.f32 %v3922_v18, %v2253_v5  ;;  %v4395_v11 = vpop.f32.mrb[39].mxu0  ;;  %v4654_v5 = vld [vmem:[%s5803_s2 + $0x130] sm:$0xff]  }
0x1094   :  { %v4657_v11 = vld [vmem:[%s5803_s2 + $0x158] sm:$0xff]  }
0x1095   :  { %v2343_v42 = vsel %vm898_vm2, %v2337_v8, 0  ;;  %v2338_v15 = vpack.c.bf16 %v2254_v9, %v2254_v9  ;;  %v4655_v8 = vld [vmem:[%s5803_s2 + $0x150] sm:$0xff]   ;;  %v4656_v9 = vld [vmem:[%s5803_s2 + $0x138] sm:$0xff]  }
0x1096   :  { %4409 = vmatpush3.bf16.xpose.msra.mxu0 %v2343_v42  ;;  %v4660_v42 = vld [vmem:[%s5803_s2 + $0x170] sm:$0xff]  }
0x1097   :  { %v2389_v23 = vsel %vm898_vm2, %v2338_v15, 0  ;;  %4420 = vmatprep.subr.bf16.mxu0 %v4796_v56  ;;  %v4661_v15 = vld [vmem:[%s5803_s2 + $0x178] sm:$0xff]  }
0x1098   :  { %4415 = vmatpush3.bf16.xpose.msra.mxu1 %v2389_v23 }
0x1099   :  { %4426 = vmatprep.subr.bf16.mxu1 %v4796_v56 }
0x109d   :  { %4411 = vmatmul.mubr.msk.bf16.vlgmr.msra.gmra.mrb[40].mxu0 %vm898_vm2, %v2335_v25 }
0x109e   :  { %4421 = vmatpush3.bf16.msra.mxu0 %v2465_v26  ;;  %4422 = vmatprep.mubr.msk.bf16.mxu0 %vm4797_vm1, %v4796_v56 }
0x109f   :  { %4417 = vmatmul.mubr.msk.bf16.vlgmr.msra.gmra.mrb[56].mxu1 %vm898_vm2, %v2336_v27  ;;  %4432 = vmatprep.subr.bf16.mxu0 %v4796_v56 }
0x10a0   :  { %4427 = vmatpush3.bf16.msra.mxu1 %v2511_v39  ;;  %4428 = vmatprep.mubr.msk.bf16.mxu1 %vm4797_vm1, %v4796_v56 }
0x10a1   :  { %4444 = vmatprep.subr.bf16.mxu1 %v4796_v56 }
0x1170   :  { %v2379_v6 = vpop.f32.mrb[40].mxu0 }
0x1171   :  { %v2431_v28 = vmul.f32 0.17677669, %v2379_v6  ;;  %v4412_v29 = vpop.f32.mrb[41].mxu0 }
0x1172   :  { %v2382_v43 = vpop.f32.mrb[42].mxu0  ;;  %v2425_v30 = vpop.f32.mrb[56].mxu1 }
0x1173   :  { %v2432_v31 = vmul.f32 0.17677669, %v2425_v30  ;;  %v4413_v32 = vpop.f32.mrb[43].mxu0  ;;  %v4418_v33 = vpop.f32.mrb[57].mxu1  ;;  %v2433_v34 = vadd.f32 %v2431_v28, %v5172_v14 }
0x1174   :  { %v2428_v35 = vpop.f32.mrb[58].mxu1 }
0x1175   :  { %v4419_v37 = vpop.f32.mrb[59].mxu1  ;;  %v2435_v38 = vsel %vm995_vm5, %v2433_v34, -inf  ;;  %v2434_v40 = vadd.f32 %v2432_v31, %v5172_v14  ;;  %v3938_v35 = vld [vmem:[%s5802_s4 + $0x21] ss:$0 sm:$0xff] }
0x1176   :  { %2436 = vmax.xlane.f32.xlu1 %v2435_v38 }
0x1177   :  { %v2438_v41 = vsel %vm995_vm5, %v2434_v40, -inf }
0x1178   :  { %2439 = vmax.xlane.f32.xlu0 %v2438_v41 }
0x1203   :  { %v2437_v45 = vpop.xlane.xlu1 %2436 }
0x1204   :  { %v2441_v46 = vsub.f32 %v2433_v34, %v2437_v45 }
0x1205   :  { %v2440_v47 = vpop.xlane.xlu0 %2439 }
0x1206   :  { %v2443_v49 = vmul.f32 1.442695, %v2441_v46  ;;  %v2442_v50 = vsub.f32 %v2434_v40, %v2440_v47  ;;  %v3950_v46 = vld [vmem:[%s5802_s4 + $0x23] ss:$0 sm:$0xff] }
0x1208   :  { %4758 = vpow2.f32 %v2443_v49  ;;  %v2445_v51 = vmul.f32 1.442695, %v2442_v50 }
0x120a   :  { %4760 = vpow2.f32 %v2445_v51 }
0x1212   :  { %v4759_v53 = vpop.eup %4758 }
0x1213   :  { %v2447_v54 = vsel %vm995_vm5, %v4759_v53, 0.0 }
0x1214   :  { %v4761_v36 = vpop.eup %4760  ;;  %2448 = vadd.xlane.f32.xlu1 %v2447_v54 }
0x1215   :  { %v2450_v55 = vsel %vm995_vm5, %v4761_v36, 0.0 }
0x1216   :  { %2451 = vadd.xlane.f32.xlu0 %v2450_v55 }
0x12a1   :  { %v2449_v57 = vpop.xlane.xlu1 %2448 }
0x12a2   :  { %4762 = vrcp.f32 %v2449_v57 }
0x12a3   :  { %v2452_v59 = vpop.xlane.xlu0 %2451 }
0x12a4   :  { %4764 = vrcp.f32 %v2452_v59 }
0x12ac   :  { %v4763_v60 = vpop.eup %4762 }
0x12ad   :  { %v2454_v61 = vmul.f32 %v4763_v60, %v4759_v53 }
0x12ae   :  { %v4765_v0 = vpop.eup %4764 }
0x12af   :  { %v2456_v2 = vmul.f32 %v4765_v0, %v4761_v36  ;;  %v2457_v18 = vpack.c.bf16 %v2454_v61, %v2454_v61 }
0x12b1   :  { %4423 = vmatmul.mubr.msk.bf16.vlgmr.msra.gmra.mrb[44].mxu0 %vm995_vm5, %v2457_v18  ;;  %v2458_v4 = vpack.c.bf16 %v2456_v2, %v2456_v2 }
0x12b2   :  { %4433 = vmatpush3.bf16.msra.mxu0 %v4650_v1  ;;  %4440 = vmatprep.mubr.msk.bf16.mxu0 %vm4797_vm1, %v4796_v56 }
0x12b3   :  { %4429 = vmatmul.mubr.msk.bf16.vlgmr.msra.gmra.mrb[60].mxu1 %vm995_vm5, %v2458_v4  ;;  %4434 = vmatprep.subr.bf16.mxu0 %v4796_v56 }
0x12b4   :  { %4445 = vmatpush3.bf16.msra.mxu1 %v4651_v3  ;;  %4452 = vmatprep.mubr.msk.bf16.mxu1 %vm4797_vm1, %v4796_v56 }
0x12b5   :  { %4446 = vmatprep.subr.bf16.mxu1 %v4796_v56 }
0x12b6   :  { %4435 = vmatpush3.bf16.msra.mxu0 %v4652_v58 }
0x12b7   :  { %4436 = vmatprep.subr.bf16.mxu0 %v4796_v56 }
0x12b8   :  { %4447 = vmatpush3.bf16.msra.mxu1 %v4653_v62 }
0x12b9   :  { %4448 = vmatprep.subr.bf16.mxu1 %v4796_v56 }
0x12ba   :  { %4437 = vmatpush3.bf16.msra.mxu0 %v4654_v5 }
0x12bb   :  { %4438 = vmatprep.subr.bf16.mxu0 %v4796_v56 }
0x12bc   :  { %4449 = vmatpush3.bf16.msra.mxu1 %v4655_v8 }
0x12bd   :  { %4450 = vmatprep.subr.bf16.mxu1 %v4796_v56 }
0x12be   :  { %4439 = vmatpush3.bf16.msra.mxu0 %v4656_v9 }
0x12bf   :  { %4456 = vmatprep.subr.bf16.mxu0 %v4796_v56 }
0x12c0   :  { %4451 = vmatpush3.bf16.msra.mxu1 %v4657_v11 }
0x12c1   :  { %4441 = vmatmul.mubr.msk.bf16.vlgmr.msra.gmra.mrb[48].mxu0 %vm576_vm0, %v5444_v52  ;;  %4468 = vmatprep.subr.bf16.mxu1 %v4796_v56 }
0x12c2   :  { %4457 = vmatpush3.bf16.msra.mxu0 %v4658_v12  ;;  %4464 = vmatprep.mubr.msk.bf16.mxu0 %vm4797_vm1, %v4796_v56 }
0x12c3   :  { %4453 = vmatmul.mubr.msk.bf16.vlgmr.msra.gmra.mrb[64].mxu1 %vm576_vm0, %v5444_v52  ;;  %4458 = vmatprep.subr.bf16.mxu0 %v4796_v56 }
0x12c4   :  { %4470 = vmatprep.mubr.msk.bf16.mxu1 %vm4797_vm1, %v4796_v56 }
0x12c6   :  { %4459 = vmatpush3.bf16.msra.mxu0 %v4659_v13 }
0x12c7   :  { %4460 = vmatprep.subr.bf16.mxu0 %v4796_v56 }
0x12ca   :  { %4461 = vmatpush3.bf16.msra.mxu0 %v4660_v42 }
0x12cb   :  { %4462 = vmatprep.subr.bf16.mxu0 %v4796_v56 }
0x12ce   :  { %4463 = vmatpush3.bf16.msra.mxu0 %v4661_v15 }
0x12cf   :  { %4480 = vmatprep.subr.bf16.mxu0 %v4796_v56 }
0x12d1   :  { %4465 = vmatmul.mubr.msk.bf16.vlgmr.msra.gmra.mrb[52].mxu0 %vm576_vm0, %v5444_v52  ;;  %v3944_v52 = vld [vmem:[%s5802_s4 + $0x22] ss:$0 sm:$0xff] }
0x12d2   :  { %4482 = vmatprep.mubr.msk.bf16.mxu0 %vm4797_vm1, %v4796_v56 }
0x1384   :  { %v5566_v16 = vpop.f32.mrb[44].mxu0 }
0x1385   :  { %v4424_v20 = vpop.f32.mrb[45].mxu0 }
0x1386   :  { %v2504_v23 = vpop.f32.mrb[46].mxu0  ;;  %v5568_v22 = vpop.f32.mrb[60].mxu1 }
0x1387   :  { %v2553_v24 = vpack.c.bf16 %v5568_v22, %v5566_v16  ;;  %v4425_v25 = vpop.f32.mrb[47].mxu0  ;;  %v4430_v48 = vpop.f32.mrb[61].mxu1 }
0x1388   :  { %v2550_v26 = vpop.f32.mrb[62].mxu1 }
0x1389   :  { %v4431_v27 = vpop.f32.mrb[63].mxu1 }
0x1394   :  { %v2629_v39 = vpop.f32.mrb[48].mxu0 }
0x1395   :  { %v4442_v6 = vpop.f32.mrb[49].mxu0  ;;  %v2630_v40 = vadd.f32 %v3938_v35, %v2629_v39 }
0x1396   :  { %v2632_v28 = vpop.f32.mrb[50].mxu0  ;;  %v2707_v29 = vpop.f32.mrb[64].mxu1 }
0x1397   :  { %v2708_v43 = vadd.f32 %v3944_v52, %v2707_v29  ;;  %v4443_v30 = vpop.f32.mrb[51].mxu0  ;;  %v4454_v31 = vpop.f32.mrb[65].mxu1  ;;  %v2792_v45 = vpack.c.bf16 %v2630_v40, %v2630_v40  ;;  %v2633_v50 = vadd.f32 %v3938_v35, %v2632_v28  ;;  %v4663_v35 = vld [vmem:[%s5800_s1 + $0x1a8] sm:$0xff]  }
0x1398   :  { %v2710_v32 = vpop.f32.mrb[66].mxu1 }
0x1399   :  { %v2794_v33 = vpack.c.bf16 %v2708_v43, %v2708_v43  ;;  %v4455_v34 = vpop.f32.mrb[67].mxu1  ;;  %v2711_v38 = vadd.f32 %v3944_v52, %v2710_v32  ;;  %v2793_v59 = vpack.c.bf16 %v2633_v50, %v2633_v50 }
0x139b   :  { %v2800_v37 = vsel %vm898_vm2, %v2794_v33, 0  ;;  %v2795_v41 = vpack.c.bf16 %v2711_v38, %v2711_v38  ;;  %v4662_v33 = vld [vmem:[%s5800_s1 + $0x1a0] sm:$0xff]   ;;  %v4665_v38 = vld [vmem:[%s5800_s1 + $0x1b8] sm:$0xff]  }
0x139c   :  { %4469 = vmatpush3.bf16.xpose.msra.mxu1 %v2800_v37  ;;  %v4664_v37 = vld [vmem:[%s5800_s1 + $0x1b0] sm:$0xff]  }
0x139d   :  { %4474 = vmatprep.subr.bf16.mxu1 %v4796_v56  ;;  %v2846_v47 = vsel %vm898_vm2, %v2795_v41, 0 }
0x13a3   :  { %4471 = vmatmul.mubr.msk.bf16.vlgmr.msra.gmra.mrb[68].mxu1 %vm898_vm2, %v2792_v45 }
0x13a4   :  { %v2785_v49 = vpop.f32.mrb[52].mxu0  ;;  %4475 = vmatpush3.bf16.xpose.msra.mxu1 %v2846_v47  ;;  %4476 = vmatprep.mubr.msk.bf16.mxu1 %vm4797_vm1, %v4796_v56 }
0x13a5   :  { %v2786_v51 = vadd.f32 %v3950_v46, %v2785_v49  ;;  %v4466_v53 = vpop.f32.mrb[53].mxu0  ;;  %4486 = vmatprep.subr.bf16.mxu1 %v4796_v56 }
0x13a6   :  { %v2788_v54 = vpop.f32.mrb[54].mxu0 }
0x13a7   :  { %v2916_v36 = vpack.c.bf16 %v2786_v51, %v2786_v51  ;;  %v2789_v55 = vadd.f32 %v3950_v46, %v2788_v54  ;;  %v4467_v57 = vpop.f32.mrb[55].mxu0 }
0x13a9   :  { %v2922_v60 = vsel %vm1025_vm3, %v2916_v36, 0  ;;  %v2917_v61 = vpack.c.bf16 %v2789_v55, %v2789_v55 }
0x13aa   :  { %4481 = vmatpush3.bf16.msra.mxu0 %v2922_v60 }
0x13ab   :  { %v2968_v0 = vsel %vm1025_vm3, %v2917_v61, 0  ;;  %4477 = vmatmul.mubr.msk.bf16.vlgmr.msra.gmra.mrb[72].mxu1 %vm898_vm2, %v2793_v59  ;;  %4492 = vmatprep.subr.bf16.mxu0 %v4796_v56  ;;  %v3966_v59 = vld [vmem:[%s5802_s4 + $0x12] ss:$0 sm:$0xff] }
0x13ac   :  { %4487 = vmatpush3.bf16.msra.mxu1 %v2968_v0  ;;  %4488 = vmatprep.mubr.msk.bf16.mxu1 %vm4797_vm1, %v4796_v56 }
0x13ad   :  { %4500 = vmatprep.subr.bf16.mxu1 %v4796_v56 }
0x1476   :  { %v2836_v1 = vpop.f32.mrb[68].mxu1 }
0x1477   :  { %v2888_v2 = vmul.f32 0.17677669, %v2836_v1  ;;  %v4472_v18 = vpop.f32.mrb[69].mxu1 }
0x1478   :  { %v2839_v3 = vpop.f32.mrb[70].mxu1 }
0x1479   :  { %v4473_v4 = vpop.f32.mrb[71].mxu1  ;;  %v2890_v58 = vadd.f32 %v2888_v2, %v5172_v14 }
0x147b   :  { %v2892_v62 = vsel %vm995_vm5, %v2890_v58, -inf }
0x147c   :  { %2893 = vmax.xlane.f32.xlu0 %v2892_v62 }
0x147e   :  { %v2882_v5 = vpop.f32.mrb[72].mxu1 }
0x147f   :  { %v2889_v8 = vmul.f32 0.17677669, %v2882_v5  ;;  %v4478_v9 = vpop.f32.mrb[73].mxu1 }
0x1480   :  { %v2885_v11 = vpop.f32.mrb[74].mxu1 }
0x1481   :  { %v4479_v12 = vpop.f32.mrb[75].mxu1  ;;  %v2891_v13 = vadd.f32 %v2889_v8, %v5172_v14 }
0x1483   :  { %v2895_v42 = vsel %vm995_vm5, %v2891_v13, -inf }
0x1484   :  { %2896 = vmax.xlane.f32.xlu1 %v2895_v42 }
0x1509   :  { %v2894_v15 = vpop.xlane.xlu0 %2893 }
0x150a   :  { %v2898_v20 = vsub.f32 %v2890_v58, %v2894_v15  ;;  %v4668_v15 = vld [vmem:[%s5804_s3 + $0x44] ss:$8 sps:$4 sm:$0xff]  }
0x150c   :  { %v2900_v23 = vmul.f32 1.442695, %v2898_v20  ;;  %v4666_v20 = vld [vmem:[%s5804_s3 + $0x40] ss:$8 sps:$4 sm:$0xff]  }
0x150e   :  { %4766 = vpow2.f32 %v2900_v23  ;;  %v4671_v23 = vld [vmem:[%s5804_s3 + $0x54] ss:$8 sps:$4 sm:$0xff]  }
0x1511   :  { %v2897_v25 = vpop.xlane.xlu1 %2896 }
0x1512   :  { %v2899_v48 = vsub.f32 %v2891_v13, %v2897_v25  ;;  %v4669_v25 = vld [vmem:[%s5804_s3 + $0x50] ss:$8 sps:$4 sm:$0xff]  }
0x1514   :  { %v2902_v26 = vmul.f32 1.442695, %v2899_v48  ;;  %v4674_v48 = vld [vmem:[%s5804_s3 + $0x64] ss:$8 sps:$4 sm:$0xff]  }
0x1516   :  { %4768 = vpow2.f32 %v2902_v26  ;;  %v4672_v26 = vld [vmem:[%s5804_s3 + $0x60] ss:$8 sps:$4 sm:$0xff]  }
0x1518   :  { %v4767_v27 = vpop.eup %4766 }
0x1519   :  { %v2904_v39 = vsel %vm995_vm5, %v4767_v27, 0.0 }
0x151a   :  { %2905 = vadd.xlane.f32.xlu0 %v2904_v39  ;;  %v4677_v39 = vld [vmem:[%s5804_s3 + $0x74] ss:$8 sps:$4 sm:$0xff]  }
0x1520   :  { %v4769_v52 = vpop.eup %4768 }
0x1521   :  { %v2907_v6 = vsel %vm995_vm5, %v4769_v52, 0.0 }
0x1522   :  { %2908 = vadd.xlane.f32.xlu1 %v2907_v6 }
0x15a7   :  { %v2906_v14 = vpop.xlane.xlu0 %2905 }
0x15a8   :  { %4770 = vrcp.f32 %v2906_v14 }
0x15af   :  { %v2909_v28 = vpop.xlane.xlu1 %2908 }
0x15b0   :  { %4772 = vrcp.f32 %v2909_v28 }
0x15b2   :  { %v4771_v29 = vpop.eup %4770 }
0x15b3   :  { %v2911_v43 = vmul.f32 %v4771_v29, %v4767_v27  ;;  %v4675_v27 = vld [vmem:[%s5804_s3 + $0x70] ss:$8 sps:$4 sm:$0xff]  }
0x15b5   :  { %v2914_v30 = vpack.c.bf16 %v2911_v43, %v2911_v43 }
0x15b7   :  { %4483 = vmatmul.mubr.msk.bf16.vlgmr.msra.gmra.mrb[56].mxu0 %vm995_vm5, %v2914_v30 }
0x15b8   :  { %4496 = vmatprep.mubr.msk.bf16.mxu0 %vm4797_vm1, %v4796_v56  ;;  %4493 = vmatpush3.bf16.msra.mxu0 %v4664_v37  ;;  %v3968_v37 = vld [vmem:[%s5802_s4 + $0x14] ss:$0 sm:$0xff] }
0x15b9   :  { %4494 = vmatprep.subr.bf16.mxu0 %v4796_v56 }
0x15ba   :  { %v4773_v31 = vpop.eup %4772 }
0x15bb   :  { %v2913_v32 = vmul.f32 %v4773_v31, %v4769_v52  ;;  %v3967_v31 = vld [vmem:[%s5802_s4 + $0x13] ss:$0 sm:$0xff] }
0x15bc   :  { %4495 = vmatpush3.bf16.msra.mxu0 %v4665_v38 }
0x15bd   :  { %v2915_v34 = vpack.c.bf16 %v2913_v32, %v2913_v32  ;;  %3241 = vmatprep.subr.bf16.mxu0 %v4668_v15 }
0x15bf   :  { %4489 = vmatmul.mubr.msk.bf16.vlgmr.msra.gmra.mrb[76].mxu1 %vm995_vm5, %v2915_v34 }
0x15c0   :  { %4501 = vmatpush3.bf16.msra.mxu1 %v4662_v33  ;;  %4504 = vmatprep.mubr.msk.bf16.mxu1 %vm4797_vm1, %v4796_v56 }
0x15c1   :  { %4502 = vmatprep.subr.bf16.mxu1 %v4796_v56 }
0x15c4   :  { %4503 = vmatpush3.bf16.msra.mxu1 %v4663_v35 }
0x15c7   :  { %4505 = vmatmul.mubr.msk.bf16.vlgmr.msra.gmra.mrb[80].mxu1 %vm898_vm2, %v2553_v24 }
0x168a   :  { %v2958_v40 = vpop.f32.mrb[56].mxu0 }
0x168b   :  { %v4484_v41 = vpop.f32.mrb[57].mxu0 }
0x168c   :  { %v2961_v45 = vpop.f32.mrb[58].mxu0 }
0x168d   :  { %v4485_v46 = vpop.f32.mrb[59].mxu0 }
0x168e   :  { %v4678_v46 = vld [vmem:[%s5800_s1 + $0x280] sm:$0xff]  }
0x168f   :  { %4209 = vmatprep.subr.bf16.mxu1 %v4678_v46 }
0x1692   :  { %v3004_v47 = vpop.f32.mrb[76].mxu1 }
0x1693   :  { %v3010_v16 = vpack.c.bf16 %v3004_v47, %v2958_v40  ;;  %v4490_v22 = vpop.f32.mrb[77].mxu1  ;;  %v4679_v47 = vld [vmem:[%s5800_s1 + $0x240] sm:$0xff]  }
0x1694   :  { %v3007_v24 = vpop.f32.mrb[78].mxu1  ;;  %4210 = vmatpush3.bf16.msra.mxu1 %v4679_v47  ;;  %v4681_v22 = vld [vmem:[%s5800_s1 + $0x248] sm:$0xff]  }
0x1695   :  { %v4491_v49 = vpop.f32.mrb[79].mxu1  ;;  %4497 = vmatmul.mubr.msk.bf16.vlgmr.msra.gmra.mrb[60].mxu0 %vm898_vm2, %v3010_v16  ;;  %v4680_v16 = vld [vmem:[%s5800_s1 + $0x288] sm:$0xff]   ;;  %v4682_v24 = vld [vmem:[%s5800_s1 + $0x290] sm:$0xff]  }
0x1696   :  { %3273 = vmatprep.mubr.bf16.mxu0 %v4799_v44  ;;  %3242 = vmatpush1.bf16.msra.mxu0 %v4666_v20  ;;  %v4683_v49 = vld [vmem:[%s5800_s1 + $0x250] sm:$0xff]  }
0x1697   :  { %3243 = vmatprep.subr.bf16.mxu0 %v4671_v23  ;;  %4211 = vmatprep.subr.bf16.mxu1 %v4680_v16 }
0x1698   :  { %4212 = vmatpush3.bf16.msra.mxu1 %v4681_v22 }
0x1699   :  { %4213 = vmatprep.subr.bf16.mxu1 %v4682_v24 }
0x169a   :  { %v3120_v50 = vpop.f32.mrb[80].mxu1  ;;  %3244 = vmatpush1.bf16.msra.mxu0 %v4669_v25 }
0x169b   :  { %v4506_v51 = vpop.f32.mrb[81].mxu1  ;;  %3245 = vmatprep.subr.bf16.mxu0 %v4674_v48 }
0x169c   :  { %v3123_v53 = vpop.f32.mrb[82].mxu1  ;;  %4214 = vmatpush3.bf16.msra.mxu1 %v4683_v49  ;;  %v4685_v51 = vld [vmem:[%s5800_s1 + $0x258] sm:$0xff]   ;;  %v3999_v49 = vld [vmem:[%s5802_s4 + $0x15] ss:$0 sm:$0xff] }
0x169d   :  { %v4507_v54 = vpop.f32.mrb[83].mxu1 }
0x169e   :  { %3246 = vmatpush1.bf16.msra.mxu0 %v4672_v26  ;;  %v4687_v54 = vld [vmem:[%s5800_s1 + $0x260] sm:$0xff]  }
0x169f   :  { %3247 = vmatprep.subr.bf16.mxu0 %v4677_v39 }
0x16a2   :  { %3248 = vmatpush1.bf16.msra.mxu0 %v4675_v27 }
0x16a3   :  { %4508 = vmatprep.subr.bf16.mxu0 %v4796_v56 }
0x1768   :  { %v3064_v36 = vpop.f32.mrb[60].mxu0 }
0x1769   :  { %v3121_v55 = vadd.f32 %v3120_v50, %v3064_v36  ;;  %v4498_v57 = vpop.f32.mrb[61].mxu0  ;;  %v4684_v50 = vld [vmem:[%s5800_s1 + $0x298] sm:$0xff]   ;;  %v4688_v36 = vld [vmem:[%s5800_s1 + $0x2a8] sm:$0xff]  }
0x176a   :  { %v3067_v60 = vpop.f32.mrb[62].mxu0  ;;  %4215 = vmatprep.subr.bf16.mxu1 %v4684_v50  ;;  %v4690_v57 = vld [vmem:[%s5800_s1 + $0x2b0] sm:$0xff]  }
0x176b   :  { %v3127_v61 = vadd.f32 %v3121_v55, %v5390_v63  ;;  %v3124_v0 = vadd.f32 %v3123_v53, %v3067_v60  ;;  %v4499_v1 = vpop.f32.mrb[63].mxu0  ;;  %4216 = vmatpush3.bf16.msra.mxu1 %v4685_v51  ;;  %v4686_v53 = vld [vmem:[%s5800_s1 + $0x2a0] sm:$0xff]   ;;  %v4689_v55 = vld [vmem:[%s5800_s1 + $0x268] sm:$0xff]   ;;  %v4692_v60 = vld [vmem:[%s5800_s1 + $0x2b8] sm:$0xff]  }
0x176c   :  { %4217 = vmatprep.subr.bf16.mxu1 %v4686_v53 }
0x176d   :  { %v5631_v2 = vadd.f32 %v3966_v59, %v3127_v61  ;;  %v3128_v18 = vadd.f32 %v3124_v0, %v5393_v7  ;;  %v4693_v61 = vld [vmem:[%s5800_s1 + $0x278] sm:$0xff]   ;;  %v3969_v0 = vld [vmem:[%s5805_s5 + $0x1] ss:$4 sm:$0x3] }
0x176e   :  { %v3191_v1 = vrot.slane %v3969_v0, %v5374_v19 }
0x176f   :  { %v5634_v3 = vadd.f32 %v3966_v59, %v3128_v18  ;;  %v3138_v4 = vsel %vm576_vm0, %v5631_v2, 0.0  ;;  %4218 = vmatpush3.bf16.msra.mxu1 %v4687_v54  ;;  %v4691_v59 = vld [vmem:[%s5800_s1 + $0x270] sm:$0xff]   ;;  %v3195_v18 = vrot.slane %v3969_v0, %v5380_v21 }
0x1770   :  { %3139 = vadd.xlane.f32.xlu0 %v3138_v4  ;;  %4219 = vmatprep.subr.bf16.mxu1 %v4688_v36 }
0x1771   :  { %v3141_v58 = vsel %vm576_vm0, %v5634_v3, 0.0 }
0x1772   :  { %3142 = vadd.xlane.f32.xlu1 %v3141_v58 }
0x1773   :  { %4220 = vmatpush3.bf16.msra.mxu1 %v4689_v55 }
0x1774   :  { %4221 = vmatprep.subr.bf16.mxu1 %v4690_v57 }
0x1777   :  { %4222 = vmatpush3.bf16.msra.mxu1 %v4691_v59 }
0x1778   :  { %4223 = vmatprep.subr.bf16.mxu1 %v4692_v60 }
0x177b   :  { %4224 = vmatpush3.bf16.msra.mxu1 %v4693_v61 }
0x17fd   :  { %v3140_v62 = vpop.xlane.xlu0 %3139 }
0x17fe   :  { %v3144_v5 = vmul.f32 0.015625, %v3140_v62 }
0x17ff   :  { %v3143_v8 = vpop.xlane.xlu1 %3142 }
0x1800   :  { %v3146_v63 = vsub.f32 %v5631_v2, %v3144_v5  ;;  %v3145_v9 = vmul.f32 0.015625, %v3143_v8 }
0x1802   :  { %v3147_v11 = vsub.f32 %v5634_v3, %v3145_v9  ;;  %v3148_v12 = vmul.f32 %v3146_v63, %v3146_v63 }
0x1804   :  { %v3150_v7 = vsel %vm576_vm0, %v3148_v12, 0.0  ;;  %v3149_v13 = vmul.f32 %v3147_v11, %v3147_v11 }
0x1805   :  { %3151 = vadd.xlane.f32.xlu0 %v3150_v7 }
0x1806   :  { %v3153_v42 = vsel %vm576_vm0, %v3149_v13, 0.0 }
0x1807   :  { %3154 = vadd.xlane.f32.xlu1 %v3153_v42 }
0x1892   :  { %v3152_v52 = vpop.xlane.xlu0 %3151 }
0x1893   :  { %v3156_v6 = vmul.f32 0.015625, %v3152_v52 }
0x1894   :  { %v3155_v14 = vpop.xlane.xlu1 %3154 }
0x1895   :  { %v3158_v28 = vadd.f32 1e-05, %v3156_v6  ;;  %v3157_v29 = vmul.f32 0.015625, %v3155_v14 }
0x1897   :  { %4774 = vrsqrt.f32 %v3158_v28  ;;  %v3159_v43 = vadd.f32 1e-05, %v3157_v29 }
0x1899   :  { %4776 = vrsqrt.f32 %v3159_v43 }
0x18a1   :  { %v4775_v30 = vpop.eup %4774 }
0x18a2   :  { %v3162_v32 = vmul.f32 %v4775_v30, %v3146_v63 }
0x18a3   :  { %v4777_v33 = vpop.eup %4776 }
0x18a4   :  { %v3168_v34 = vmul.f32 %v3967_v31, %v3162_v32  ;;  %v3163_v35 = vmul.f32 %v4777_v33, %v3147_v11 }
0x18a6   :  { %v3169_v38 = vmul.f32 %v3967_v31, %v3163_v35  ;;  %v3174_v40 = vadd.f32 %v3968_v37, %v3168_v34 }
0x18a8   :  { %v3175_v41 = vadd.f32 %v3968_v37, %v3169_v38 }
0x18aa   :  { %v3176_v45 = vpack.c.bf16 %v3175_v41, %v3174_v40 }
0x18ac   :  { %3978 = vmatmul.mubr.msk.bf16.vlgmr.msra.gmra.mrb[64].mxu0 %vm576_vm0, %v3176_v45 }
0x18ad   :  { %4516 = vmatprep.mubr.msk.bf16.mxu0 %vm4797_vm1, %v4796_v56 }
0x197f   :  { %v3275_v4 = vpop.f32.mrb[64].mxu0 }
0x1980   :  { %v3276_v58 = vadd.f32 %v3275_v4, %v3191_v1  ;;  %v3277_v62 = vpop.f32.mrb[65].mxu0  ;;  %v4694_v4 = vld [vmem:[%s5800_s1 + $0x2c0] sm:$0xff]  }
0x1981   :  { %v3278_v5 = vadd.f32 %v3277_v62, %v3195_v18  ;;  %v3279_v8 = vpop.f32.mrb[66].mxu0  ;;  %4509 = vmatpush3.bf16.msra.mxu0 %v4694_v4  ;;  %v4696_v62 = vld [vmem:[%s5800_s1 + $0x2d0] sm:$0xff]  }
0x1982   :  { %v3979_v63 = vmul.f32 -1.702, %v3276_v58  ;;  %v3280_v9 = vadd.f32 %v3279_v8, %v3191_v1  ;;  %v3281_v11 = vpop.f32.mrb[67].mxu0  ;;  %4510 = vmatprep.subr.bf16.mxu0 %v4796_v56  ;;  %v4700_v8 = vld [vmem:[%s5804_s3 + $0x84] ss:$8 sps:$4 sm:$0xff]  }
0x1983   :  { %v3980_v12 = vmul.f32 -1.702, %v3278_v5  ;;  %v3282_v7 = vadd.f32 %v3281_v11, %v3195_v18 }
0x1984   :  { %v3292_v13 = vmul.f32 1.442695, %v3979_v63  ;;  %v3981_v42 = vmul.f32 -1.702, %v3280_v9 }
0x1985   :  { %v3294_v15 = vmul.f32 1.442695, %v3980_v12  ;;  %v3982_v20 = vmul.f32 -1.702, %v3282_v7 }
0x1986   :  { %4778 = vpow2.f32 %v3292_v13  ;;  %v3296_v23 = vmul.f32 1.442695, %v3981_v42 }
0x1987   :  { %4780 = vpow2.f32 %v3294_v15  ;;  %v3298_v25 = vmul.f32 1.442695, %v3982_v20 }
0x1988   :  { %4782 = vpow2.f32 %v3296_v23 }
0x1989   :  { %4784 = vpow2.f32 %v3298_v25 }
0x1990   :  { %v4779_v48 = vpop.eup %4778 }
0x1991   :  { %v4781_v26 = vpop.eup %4780  ;;  %v3300_v27 = vadd.f32 1.0, %v4779_v48 }
0x1992   :  { %v4783_v39 = vpop.eup %4782  ;;  %v3301_v52 = vadd.f32 1.0, %v4781_v26 }
0x1993   :  { %v4785_v6 = vpop.eup %4784  ;;  %4786 = vrcp.f32 %v3300_v27  ;;  %v3302_v14 = vadd.f32 1.0, %v4783_v39 }
0x1994   :  { %4788 = vrcp.f32 %v3301_v52  ;;  %v3303_v28 = vadd.f32 1.0, %v4785_v6 }
0x1995   :  { %4790 = vrcp.f32 %v3302_v14 }
0x1996   :  { %4792 = vrcp.f32 %v3303_v28  ;;  %v4698_v28 = vld [vmem:[%s5804_s3 + $0x80] ss:$8 sps:$4 sm:$0xff]  }
0x199d   :  { %v4787_v29 = vpop.eup %4786 }
0x199e   :  { %v4789_v43 = vpop.eup %4788  ;;  %v3312_v32 = vmul.f32 %v4787_v29, %v3276_v58  ;;  %v4695_v58 = vld [vmem:[%s5800_s1 + $0x2c8] sm:$0xff]  }
0x199f   :  { %v4791_v30 = vpop.eup %4790  ;;  %v3313_v34 = vmul.f32 %v4789_v43, %v3278_v5  ;;  %4511 = vmatpush3.bf16.msra.mxu0 %v4695_v58  ;;  %v4697_v5 = vld [vmem:[%s5800_s1 + $0x2d8] sm:$0xff]  }
0x19a0   :  { %v4793_v31 = vpop.eup %4792  ;;  %v3314_v33 = vmul.f32 %v4791_v30, %v3280_v9  ;;  %4512 = vmatprep.subr.bf16.mxu0 %v4796_v56  ;;  %v4703_v43 = vld [vmem:[%s5804_s3 + $0x94] ss:$8 sps:$4 sm:$0xff]   ;;  %v4701_v30 = vld [vmem:[%s5804_s3 + $0x90] ss:$8 sps:$4 sm:$0xff]  }
0x19a1   :  { %v3315_v35 = vmul.f32 %v4793_v31, %v3282_v7  ;;  %v4000_v7 = vld [vmem:[%s5802_s4 + $0x16] ss:$0 sm:$0xff]  ;;  %v4706_v31 = vld [vmem:[%s5804_s3 + $0xa4] ss:$8 sps:$4 sm:$0xff]  }
0x19a2   :  { %v3316_v37 = vpack.c.bf16 %v3314_v33, %v3312_v32  ;;  %v4704_v32 = vld [vmem:[%s5804_s3 + $0xa0] ss:$8 sps:$4 sm:$0xff]   ;;  %v4709_v33 = vld [vmem:[%s5804_s3 + $0xb4] ss:$8 sps:$4 sm:$0xff]  }
0x19a3   :  { %v3317_v38 = vpack.c.bf16 %v3315_v35, %v3313_v34  ;;  %4513 = vmatpush3.bf16.msra.mxu0 %v4696_v62 }
0x19a4   :  { %4514 = vmatprep.subr.bf16.mxu0 %v4796_v56  ;;  %v4001_v56 = vld [vmem:[%s5802_s4 + $0x17] ss:$0 sm:$0xff] }
0x19a5   :  { %3478 = vmatprep.mubr.bf16.mxu1 %v3317_v38 }
0x19a6   :  { %3479 = vmatmul.mubr.bf16.vlgmr.msra.gmra.mrb[84].mxu1 %v3316_v37 }
0x19a7   :  { %4515 = vmatpush3.bf16.msra.mxu0 %v4697_v5 }
0x19a8   :  { %3695 = vmatprep.subr.bf16.mxu0 %v4700_v8 }
0x1a79   :  { %v4225_v40 = vpop.f32.mrb[84].mxu1 }
0x1a7a   :  { %v4226_v41 = vpop.f32.mrb[85].mxu1 }
0x1a7b   :  { %v4227_v45 = vadd.f32 %v4226_v41, %v4225_v40  ;;  %v4228_v46 = vpop.f32.mrb[86].mxu1  ;;  %v4007_v41 = vld [vmem:[%s5805_s5 + $0x2] ss:$4 sm:$0x3] }
0x1a7c   :  { %v4229_v47 = vpop.f32.mrb[87].mxu1 }
0x1a7d   :  { %v4230_v16 = vadd.f32 %v4229_v47, %v4228_v46  ;;  %v3487_v22 = vadd.f32 %v4227_v45, %v5631_v2  ;;  %v4800_v45 = vmov 1966171168   ;;  %v3645_v47 = vrot.slane %v4007_v41, %v5374_v19 }
0x1a7e   :  { %v3740_v46 = vunpack.c.l.s4 %v4800_v45 }
0x1a7f   :  { %v3488_v24 = vadd.f32 %v4230_v16, %v5634_v3  ;;  %v3494_v51 = vadd.f32 %v3999_v49, %v3487_v22  ;;  %v3649_v16 = vrot.slane %v4007_v41, %v5380_v21 }
0x1a80   :  { %v3741_v22 = vunpack.c.0.s8 %v3740_v46 }
0x1a81   :  { %v3495_v50 = vadd.f32 %v3999_v49, %v3488_v24 }
0x1a83   :  { %v3500_v53 = vrot.slane %v3495_v50, 7 }
0x1a85   :  { %v3502_v54 = vsel %vm3501_vm6, %v3500_v53, %v3494_v51  ;;  %v3744_v53 = vsub.s32 %v3741_v22, %v5371_v17 }
0x1a86   :  { %v3505_v36 = vsel %vm3504_vm7, %v3502_v54, 0.0 }
0x1a87   :  { %3506 = vadd.xlane.f32.xlu0 %v3505_v36 }
0x1b14   :  { %v3507_v55 = vpop.xlane.xlu0 %3506 }
0x1b15   :  { %v3508_v57 = vmul.f32 0.015625, %v3507_v55 }
0x1b17   :  { %v3510_v59 = vrot.slane %v3508_v57, 1  ;;  %v3513_v60 = vsub.f32 %v3494_v51, %v3508_v57 }
0x1b19   :  { %v3514_v2 = vsub.f32 %v3495_v50, %v3510_v59  ;;  %v3515_v3 = vmul.f32 %v3513_v60, %v3513_v60 }
0x1b1b   :  { %v3516_v61 = vmul.f32 %v3514_v2, %v3514_v2 }
0x1b1d   :  { %v3519_v0 = vrot.slane %v3516_v61, 7 }
0x1b1f   :  { %v3520_v1 = vsel %vm3501_vm6, %v3519_v0, %v3515_v3 }
0x1b20   :  { %v3522_v18 = vsel %vm3504_vm7, %v3520_v1, 0.0 }
0x1b21   :  { %3523 = vadd.xlane.f32.xlu1 %v3522_v18 }
0x1bae   :  { %v3524_v63 = vpop.xlane.xlu1 %3523 }
0x1baf   :  { %v3525_v9 = vmul.f32 0.015625, %v3524_v63 }
0x1bb1   :  { %v3526_v11 = vadd.f32 1e-05, %v3525_v9 }
0x1bb3   :  { %4794 = vrsqrt.f32 %v3526_v11 }
0x1bbd   :  { %v4795_v12 = vpop.eup %4794 }
0x1bbe   :  { %v3529_v13 = vrot.slane %v4795_v12, 1  ;;  %v3532_v42 = vmul.f32 %v4795_v12, %v3513_v60 }
0x1bc0   :  { %v3533_v15 = vmul.f32 %v3529_v13, %v3514_v2  ;;  %v3538_v20 = vmul.f32 %v4000_v7, %v3532_v42 }
0x1bc2   :  { %v3539_v23 = vmul.f32 %v4000_v7, %v3533_v15  ;;  %v3544_v25 = vadd.f32 %v4001_v56, %v3538_v20 }
0x1bc4   :  { %v3545_v48 = vadd.f32 %v4001_v56, %v3539_v23  ;;  %v3546_v26 = vpack.c.bf16 %v3544_v25, %v3544_v25 }
0x1bc6   :  { %v3547_v27 = vpack.c.bf16 %v3545_v48, %v3545_v48  ;;  %v3558_v52 = vunpack.c.l.b16 %v3546_v26 }
0x1bc8   :  { %v3559_v39 = vunpack.c.l.b16 %v3547_v27 }
0x1bca   :  { %v3560_v6 = vrot.slane %v3559_v39, 7 }
0x1bcc   :  { %v3561_v14 = vsel %vm3501_vm6, %v3560_v6, %v3558_v52 }
0x1bcd   :  { %v3562_v29 = vpack.c.b16 %v3561_v14, %v3561_v14 }
0x1bcf   :  { %4517 = vmatmul.mubr.msk.bf16.vlgmr.msra.gmra.mrb[68].mxu0 %vm576_vm0, %v3562_v29 }
0x1bd0   :  { %3696 = vmatpush1.bf16.msra.mxu0 %v4698_v28  ;;  %3727 = vmatprep.mubr.bf16.mxu0 %v4799_v44  ;;  %v4707_v44 = vld [vmem:[%s5804_s3 + $0xb0] ss:$8 sps:$4 sm:$0xff]  }
0x1bd1   :  { %3697 = vmatprep.subr.bf16.mxu0 %v4703_v43 }
0x1bd4   :  { %3698 = vmatpush1.bf16.msra.mxu0 %v4701_v30 }
0x1bd5   :  { %3699 = vmatprep.subr.bf16.mxu0 %v4706_v31 }
0x1bd8   :  { %3700 = vmatpush1.bf16.msra.mxu0 %v4704_v32 }
0x1bd9   :  { %3701 = vmatprep.subr.bf16.mxu0 %v4709_v33 }
0x1bdc   :  { %3702 = vmatpush1.bf16.msra.mxu0 %v4707_v44 }
0x1ca2   :  { %v3624_v34 = vpop.f32.mrb[68].mxu0 }
0x1ca3   :  { %v3630_v35 = vpack.c.bf16 %v3624_v34, %v3624_v34  ;;  %v4518_v37 = vpop.f32.mrb[69].mxu0 }
0x1ca4   :  { %v3627_v38 = vpop.f32.mrb[70].mxu0 }
0x1ca5   :  { %v4519_v40 = vpop.f32.mrb[71].mxu0  ;;  %4016 = vmatmul.mubr.msk.bf16.vlgmr.msra.gmra.mrb[72].mxu0 %vm576_vm0, %v3630_v35 }
0x1d78   :  { %v3729_v24 = vpop.f32.mrb[72].mxu0 }
0x1d79   :  { %v3730_v49 = vadd.f32 %v3729_v24, %v3645_v47  ;;  %v3731_v50 = vpop.f32.mrb[73].mxu0 }
0x1d7a   :  { %v3732_v51 = vadd.f32 %v3731_v50, %v3649_v16  ;;  %v3733_v54 = vpop.f32.mrb[74].mxu0 }
0x1d7b   :  { %v3734_v36 = vpop.f32.mrb[75].mxu0 }
0x1d7c   :  { %v3738_v55 = vcombine.low %v3730_v49, %v3732_v51 }
0x1d7e   :  { %v3745_v57 = vrot.slane %v3738_v55, %v3744_v53 }
0x1d80   :  { %v3746_v59 = vcombine.high %v3745_v57, %v3745_v57  ;;  %v3753_v60 = vrot.slane %v3745_v57, %v3744_v53 }
0x1d82   :  { %v3760_v2 = vrot.slane %v3746_v59, %v3744_v53  ;;  %3767 = vst.msk [vmem:[%s5806_s6] sm:$0x3] %vm3765_vm8, %v3753_v60 }
0x1d84   :  { %3768 = vst.msk [vmem:[%s5806_s6 + $0x2] sm:$0x3] %vm3765_vm8, %v3760_v2 }

</bundles_post_ra>
